<compile_context>
chip_gen: v5e
topology: v5e:2x2
jax: 0.10.0
libtpu: 0.0.40
codegen_flags: <defaults>
</compile_context>

<pallas_src>
import functools

import jax
import jax.numpy as jnp
from jax import lax
from jax.experimental import pallas as pl
from jax.experimental.pallas import tpu as pltpu


def _conv3x3_im2col(stage_ref, w_ref, *, W, HW, off, ok_left, ok_right):
    """One 3x3 conv as three kh-chunked MXU matmuls accumulated in f32.

    stage_ref: (C, S) VMEM staging buffer; zero-padded image interior starts at
               lane offset `off`.
    w_ref:     (3, C, 3*C) packed weights; w_ref[kh][cout, kw*C + cin].
    Returns (C, HW) f32.
    """
    acc = None
    for kh in range(3):
        dh = kh - 1
        taps = []
        for kw in range(3):
            dw = kw - 1
            start = off + dh * W + dw                  # static lane offset
            patch = stage_ref[:, start:start + HW]     # (C, HW)
            if dw == -1:
                patch = jnp.where(ok_left, patch, 0.0)
            elif dw == 1:
                patch = jnp.where(ok_right, patch, 0.0)
            taps.append(patch)
        patches = jnp.concatenate(taps, axis=0)        # (3C, HW): one chunk live
        # Load this kh's weight chunk right here (short live range).
        d = jnp.dot(w_ref[kh], patches,
                    preferred_element_type=jnp.float32,
                    precision=lax.Precision.HIGHEST)
        acc = d if acc is None else acc + d
    return acc


def roifuser_kernel(x_ref, w1_ref, w2_ref, out_ref, stage_ref, *, W, off):
    # x_ref:     (Bblk, C, H*W)  spatially flattened images (lane-dense)
    # w1_ref:    (3, C, 3*C)     conv1 weights, [kh][cout, kw*C + cin]
    # w2_ref:    (3, C, 3*C)     conv2 weights
    # out_ref:   (Bblk, C, H*W)
    # stage_ref: (C, S)          VMEM staging; interior at [:, off:off+H*W]
    Bblk, C, HW = x_ref.shape
    S = stage_ref.shape[1]

    # Zero only the border strips (interior is fully overwritten each use).
    # Unconditional per grid step: scratch is per-core, never gate on program_id.
    stage_ref[:, :off] = jnp.zeros((C, off), stage_ref.dtype)
    stage_ref[:, off + HW:] = jnp.zeros((C, S - off - HW), stage_ref.dtype)

    # (1, HW) row-edge masks; jnp.where broadcasts them over channel sublanes.
    w_idx = lax.broadcasted_iota(jnp.int32, (1, HW), 1) % W
    ok_left = w_idx >= 1            # valid when reading pixel (h+dh, w-1)
    ok_right = w_idx <= W - 2       # valid when reading pixel (h+dh, w+1)

    conv = functools.partial(_conv3x3_im2col, stage_ref,
                             W=W, HW=HW, off=off,
                             ok_left=ok_left, ok_right=ok_right)

    for b in range(Bblk):                                   # Bblk==1 when batch is on the grid
        stage_ref[:, off:off + HW] = x_ref[b].astype(stage_ref.dtype)  # aligned store
        c1 = conv(w1_ref)                                    # (C, HW) f32
        stage_ref[:, off:off + HW] = c1                      # aligned store
        c2 = conv(w2_ref)
        out_ref[b] = c2.astype(out_ref.dtype)                # lane-dense store


def _pack_weights(w_oihw):
    # OIHW -> (kh, cout, kw*Cin + cin): one (C, 3C) chunk per kh so the in-kernel
    # per-chunk weight access is a leading-dim index, not a 48-lane lane-slice.
    C = w_oihw.shape[0]
    return jnp.transpose(w_oihw, (2, 0, 3, 1)).reshape(3, C, 3 * C)


def _wants_batch_parallel_grid():
    # v7x has 2 TensorCores per chip -> a "parallel" batch grid axis is ~2x.
    # On single-TC v5e/v6e, extra grid steps on a sub-microsecond body are pure
    # pipeline overhead, so keep grid=(1,) there.
    try:
        return "v7" in jax.devices()[0].device_kind.lower()
    except Exception:
        return False


def roi_fuser(x_nchw, w1_oihw, w2_oihw, *, batch_parallel=None):
    """ROIFuser forward: conv2(conv1(x)). x: (B, C, H, W); weights: (C, C, 3, 3)."""
    B, C, H, W = x_nchw.shape
    HW = H * W
    OFF = 128                      # lane-aligned interior offset
    assert W + 1 <= OFF, "leading zero pad must cover the widest tap shift"
    S = OFF + HW + OFF
    assert S - OFF - HW >= W + 1, "trailing zero pad must cover the widest tap shift"

    if batch_parallel is None:
        batch_parallel = _wants_batch_parallel_grid()

    # Wrapper-side glue: reshapes / weight packing only (no activation transposes).
    x_flat = x_nchw.reshape(B, C, HW)
    w1p = _pack_weights(w1_oihw)
    w2p = _pack_weights(w2_oihw)

    kernel = functools.partial(roifuser_kernel, W=W, off=OFF)

    if batch_parallel:
        grid = (B,)
        x_spec = pl.BlockSpec((1, C, HW), lambda b: (b, 0, 0))
        out_spec = pl.BlockSpec((1, C, HW), lambda b: (b, 0, 0))
        w_spec = pl.BlockSpec((3, C, 3 * C), lambda b: (0, 0, 0))
        semantics = ("parallel",)
    else:
        grid = (1,)
        x_spec = pl.BlockSpec((B, C, HW), lambda i: (0, 0, 0))
        out_spec = pl.BlockSpec((B, C, HW), lambda i: (0, 0, 0))
        w_spec = pl.BlockSpec((3, C, 3 * C), lambda i: (0, 0, 0))
        semantics = ("arbitrary",)

    # Cost hint so XLA can schedule/overlap this tiny launch-bound custom call.
    flops = 2 * 2 * C * (9 * C) * HW * B                      # 2 convs of C x 9C x HW MACs
    bytes_accessed = (2 * B * C * HW + 2 * 9 * C * C) * jnp.dtype(x_nchw.dtype).itemsize

    out_flat = pl.pallas_call(
        kernel,
        out_shape=jax.ShapeDtypeStruct((B, C, HW), x_nchw.dtype),
        grid_spec=pltpu.PrefetchScalarGridSpec(
            num_scalar_prefetch=0,
            grid=grid,
            in_specs=[x_spec, w_spec, w_spec],
            out_specs=out_spec,
            scratch_shapes=[pltpu.VMEM((C, S), jnp.float32)],
        ),
        compiler_params=pltpu.CompilerParams(
            dimension_semantics=semantics,
        ),
        cost_estimate=pl.CostEstimate(
            flops=flops, transcendentals=0, bytes_accessed=bytes_accessed),
    )(x_flat, w1p, w2p)

    return out_flat.reshape(B, C, H, W)


def _reference(x_nchw, w1_oihw, w2_oihw):
    dn = ("NCHW", "OIHW", "NCHW")
    p = lax.Precision.HIGHEST
    c1 = lax.conv_general_dilated(x_nchw, w1_oihw, window_strides=(1, 1),
                                  padding=((1, 1), (1, 1)), dimension_numbers=dn,
                                  precision=p)
    c2 = lax.conv_general_dilated(c1, w2_oihw, window_strides=(1, 1),
                                  padding=((1, 1), (1, 1)), dimension_numbers=dn,
                                  precision=p)
    return c2


if __name__ == "__main__":
    dims = 16       # channel count (dims in ROIFuser.__init__)
    B, H, W = 2, 16, 16

    key = jax.random.PRNGKey(0)
    kx, kw1, kw2 = jax.random.split(key, 3)

    x = jax.random.normal(kx, (B, dims, H, W), dtype=jnp.float32)
    # Conv2d(dims, dims, 3, 1, 1, bias=False) weights: (out_ch, in_ch, 3, 3)
    w1 = 0.1 * jax.random.normal(kw1, (dims, dims, 3, 3), dtype=jnp.float32)
    w2 = 0.1 * jax.random.normal(kw2, (dims, dims, 3, 3), dtype=jnp.float32)

    out = roi_fuser(x, w1, w2)
    out = jax.block_until_ready(out)

    ref = _reference(x, w1, w2)
    assert out.shape == (B, dims, H, W)
    assert jnp.allclose(out, ref, rtol=1e-4, atol=1e-4), "mismatch vs XLA conv reference"

    print("KERNEL_OK")
</pallas_src>

<mosaic_0001>
module attributes {stable_mosaic.version = 11 : i64} {
  func.func @roifuser_kernel(%arg0: i32, %arg1: memref<2x16x256xf32, #tpu.memory_space<vmem>>, %arg2: memref<3x16x48xf32, #tpu.memory_space<vmem>>, %arg3: memref<3x16x48xf32, #tpu.memory_space<vmem>>, %arg4: memref<2x16x256xf32, #tpu.memory_space<vmem>>, %arg5: memref<16x512xf32, #tpu.memory_space<vmem>>) attributes {dimension_semantics = [#tpu.dimension_semantics<arbitrary>], iteration_bounds = array<i64: 1>, scalar_prefetch = 0 : i64, scratch_operands = 1 : i64, tpu.core_type = #tpu.core_type<tc>, window_params = [{pipeline_mode = #tpu.pipeline_mode<synchronous>, transform_indices = @transform_0, window_bounds = array<i64: 2, 16, 256>}, {pipeline_mode = #tpu.pipeline_mode<synchronous>, transform_indices = @transform_1, window_bounds = array<i64: 3, 16, 48>}, {pipeline_mode = #tpu.pipeline_mode<synchronous>, transform_indices = @transform_2, window_bounds = array<i64: 3, 16, 48>}, {pipeline_mode = #tpu.pipeline_mode<synchronous>, transform_indices = @transform_3, window_bounds = array<i64: 2, 16, 256>}]} {
    %cst = arith.constant 0.000000e+00 : f32
    %0 = vector.broadcast %cst : f32 to vector<16x128xf32>
    %c0 = arith.constant 0 : index
    %c0_0 = arith.constant 0 : index
    %1 = vector.load %arg5[%c0, %c0_0] : memref<16x512xf32, #tpu.memory_space<vmem>>, vector<16x128xf32>
    tpu.vector_store %arg5[%c0, %c0_0], %0 {strides = array<i32>} : memref<16x512xf32, #tpu.memory_space<vmem>>, vector<16x128xf32>,
    %cst_1 = arith.constant 0.000000e+00 : f32
    %2 = vector.broadcast %cst_1 : f32 to vector<16x128xf32>
    %c0_2 = arith.constant 0 : index
    %c384 = arith.constant 384 : index
    %3 = vector.load %arg5[%c0_2, %c384] : memref<16x512xf32, #tpu.memory_space<vmem>>, vector<16x128xf32>
    tpu.vector_store %arg5[%c0_2, %c384], %2 {strides = array<i32>} : memref<16x512xf32, #tpu.memory_space<vmem>>, vector<16x128xf32>,
    %4 = tpu.iota {dimensions = array<i32: 1>} : vector<1x256xi32>
    %c16_i32 = arith.constant 16 : i32
    %c0_i32 = arith.constant 0 : i32
    %5 = arith.cmpi eq, %c16_i32, %c0_i32 : i32
    %c1_i32 = arith.constant 1 : i32
    %6 = arith.select %5, %c1_i32, %c16_i32 : i32
    %7 = vector.broadcast %6 : i32 to vector<1x256xi32>
    %8 = arith.remsi %4, %7 : vector<1x256xi32>
    %c0_i32_3 = arith.constant 0 : i32
    %9 = vector.broadcast %c0_i32_3 : i32 to vector<1x256xi32>
    %10 = arith.cmpi ne, %8, %9 : vector<1x256xi32>
    %c0_i32_4 = arith.constant 0 : i32
    %11 = vector.broadcast %c0_i32_4 : i32 to vector<1x256xi32>
    %12 = arith.cmpi slt, %8, %11 : vector<1x256xi32>
    %c0_i32_5 = arith.constant 0 : i32
    %13 = arith.cmpi slt, %6, %c0_i32_5 : i32
    %14 = vector.broadcast %13 : i1 to vector<1x256xi1>
    %15 = vector.broadcast %14 : vector<1x256xi1> to vector<1x256xi1>
    %16 = arith.xori %12, %15 : vector<1x256xi1>
    %17 = arith.andi %16, %10 : vector<1x256xi1>
    %18 = vector.broadcast %6 : i32 to vector<1x256xi32>
    %19 = arith.addi %8, %18 : vector<1x256xi32>
    %20 = arith.select %17, %19, %8 : vector<1x256xi1>, vector<1x256xi32>
    %c1_i32_6 = arith.constant 1 : i32
    %21 = vector.broadcast %c1_i32_6 : i32 to vector<1x256xi32>
    %22 = arith.cmpi sge, %20, %21 : vector<1x256xi32>
    %c14_i32 = arith.constant 14 : i32
    %23 = vector.broadcast %c14_i32 : i32 to vector<1x256xi32>
    %24 = arith.cmpi sle, %20, %23 : vector<1x256xi32>
    %c0_7 = arith.constant 0 : index
    %c0_8 = arith.constant 0 : index
    %c0_9 = arith.constant 0 : index
    %25 = vector.load %arg1[%c0_7, %c0_8, %c0_9] : memref<2x16x256xf32, #tpu.memory_space<vmem>>, vector<1x16x256xf32>
    %26 = vector.shape_cast %25 : vector<1x16x256xf32> to vector<16x256xf32>
    %c0_10 = arith.constant 0 : index
    %c128 = arith.constant 128 : index
    %27 = vector.load %arg5[%c0_10, %c128] : memref<16x512xf32, #tpu.memory_space<vmem>>, vector<16x256xf32>
    tpu.vector_store %arg5[%c0_10, %c128], %26 {strides = array<i32>} : memref<16x512xf32, #tpu.memory_space<vmem>>, vector<16x256xf32>,
    %c0_11 = arith.constant 0 : index
    %c111 = arith.constant 111 : index
    %28 = vector.load %arg5[%c0_11, %c111] : memref<16x512xf32, #tpu.memory_space<vmem>>, vector<16x256xf32>
    %cst_12 = arith.constant 0.000000e+00 : f32
    %29 = vector.shape_cast %22 : vector<1x256xi1> to vector<1x256xi1>
    %30 = vector.broadcast %29 : vector<1x256xi1> to vector<16x256xi1>
    %31 = vector.broadcast %cst_12 : f32 to vector<16x256xf32>
    %32 = arith.select %30, %28, %31 : vector<16x256xi1>, vector<16x256xf32>
    %c0_13 = arith.constant 0 : index
    %c112 = arith.constant 112 : index
    %33 = vector.load %arg5[%c0_13, %c112] : memref<16x512xf32, #tpu.memory_space<vmem>>, vector<16x256xf32>
    %c0_14 = arith.constant 0 : index
    %c113 = arith.constant 113 : index
    %34 = vector.load %arg5[%c0_14, %c113] : memref<16x512xf32, #tpu.memory_space<vmem>>, vector<16x256xf32>
    %cst_15 = arith.constant 0.000000e+00 : f32
    %35 = vector.shape_cast %24 : vector<1x256xi1> to vector<1x256xi1>
    %36 = vector.broadcast %35 : vector<1x256xi1> to vector<16x256xi1>
    %37 = vector.broadcast %cst_15 : f32 to vector<16x256xf32>
    %38 = arith.select %36, %34, %37 : vector<16x256xi1>, vector<16x256xf32>
    %39 = tpu.concatenate %32, %33, %38 in 0 : vector<16x256xf32>, vector<16x256xf32>, vector<16x256xf32> -> vector<48x256xf32>
    %c0_16 = arith.constant 0 : index
    %c0_17 = arith.constant 0 : index
    %c0_18 = arith.constant 0 : index
    %40 = vector.load %arg2[%c0_16, %c0_17, %c0_18] : memref<3x16x48xf32, #tpu.memory_space<vmem>>, vector<1x16x48xf32>
    %41 = vector.shape_cast %40 : vector<1x16x48xf32> to vector<16x48xf32>
    %cst_19 = arith.constant dense<0.000000e+00> : vector<16x256xf32>
    %42 = tpu.matmul %41, %39, %cst_19 {dimension_numbers = #tpu.dot_dimension_numbers<[1], [0], [0], [1], [0, 0, 1, 1], [], []>, precision = #tpu.contract_precision<fp32>} : vector<16x48xf32>, vector<48x256xf32>, vector<16x256xf32> -> vector<16x256xf32>
    %c0_20 = arith.constant 0 : index
    %c127 = arith.constant 127 : index
    %43 = vector.load %arg5[%c0_20, %c127] : memref<16x512xf32, #tpu.memory_space<vmem>>, vector<16x256xf32>
    %cst_21 = arith.constant 0.000000e+00 : f32
    %44 = vector.shape_cast %22 : vector<1x256xi1> to vector<1x256xi1>
    %45 = vector.broadcast %44 : vector<1x256xi1> to vector<16x256xi1>
    %46 = vector.broadcast %cst_21 : f32 to vector<16x256xf32>
    %47 = arith.select %45, %43, %46 : vector<16x256xi1>, vector<16x256xf32>
    %c0_22 = arith.constant 0 : index
    %c128_23 = arith.constant 128 : index
    %48 = vector.load %arg5[%c0_22, %c128_23] : memref<16x512xf32, #tpu.memory_space<vmem>>, vector<16x256xf32>
    %c0_24 = arith.constant 0 : index
    %c129 = arith.constant 129 : index
    %49 = vector.load %arg5[%c0_24, %c129] : memref<16x512xf32, #tpu.memory_space<vmem>>, vector<16x256xf32>
    %cst_25 = arith.constant 0.000000e+00 : f32
    %50 = vector.shape_cast %24 : vector<1x256xi1> to vector<1x256xi1>
    %51 = vector.broadcast %50 : vector<1x256xi1> to vector<16x256xi1>
    %52 = vector.broadcast %cst_25 : f32 to vector<16x256xf32>
    %53 = arith.select %51, %49, %52 : vector<16x256xi1>, vector<16x256xf32>
    %54 = tpu.concatenate %47, %48, %53 in 0 : vector<16x256xf32>, vector<16x256xf32>, vector<16x256xf32> -> vector<48x256xf32>
    %c1 = arith.constant 1 : index
    %c0_26 = arith.constant 0 : index
    %c0_27 = arith.constant 0 : index
    %55 = vector.load %arg2[%c1, %c0_26, %c0_27] : memref<3x16x48xf32, #tpu.memory_space<vmem>>, vector<1x16x48xf32>
    %56 = vector.shape_cast %55 : vector<1x16x48xf32> to vector<16x48xf32>
    %cst_28 = arith.constant dense<0.000000e+00> : vector<16x256xf32>
    %57 = tpu.matmul %56, %54, %cst_28 {dimension_numbers = #tpu.dot_dimension_numbers<[1], [0], [0], [1], [0, 0, 1, 1], [], []>, precision = #tpu.contract_precision<fp32>} : vector<16x48xf32>, vector<48x256xf32>, vector<16x256xf32> -> vector<16x256xf32>
    %58 = arith.addf %42, %57 : vector<16x256xf32>
    %c0_29 = arith.constant 0 : index
    %c143 = arith.constant 143 : index
    %59 = vector.load %arg5[%c0_29, %c143] : memref<16x512xf32, #tpu.memory_space<vmem>>, vector<16x256xf32>
    %cst_30 = arith.constant 0.000000e+00 : f32
    %60 = vector.shape_cast %22 : vector<1x256xi1> to vector<1x256xi1>
    %61 = vector.broadcast %60 : vector<1x256xi1> to vector<16x256xi1>
    %62 = vector.broadcast %cst_30 : f32 to vector<16x256xf32>
    %63 = arith.select %61, %59, %62 : vector<16x256xi1>, vector<16x256xf32>
    %c0_31 = arith.constant 0 : index
    %c144 = arith.constant 144 : index
    %64 = vector.load %arg5[%c0_31, %c144] : memref<16x512xf32, #tpu.memory_space<vmem>>, vector<16x256xf32>
    %c0_32 = arith.constant 0 : index
    %c145 = arith.constant 145 : index
    %65 = vector.load %arg5[%c0_32, %c145] : memref<16x512xf32, #tpu.memory_space<vmem>>, vector<16x256xf32>
    %cst_33 = arith.constant 0.000000e+00 : f32
    %66 = vector.shape_cast %24 : vector<1x256xi1> to vector<1x256xi1>
    %67 = vector.broadcast %66 : vector<1x256xi1> to vector<16x256xi1>
    %68 = vector.broadcast %cst_33 : f32 to vector<16x256xf32>
    %69 = arith.select %67, %65, %68 : vector<16x256xi1>, vector<16x256xf32>
    %70 = tpu.concatenate %63, %64, %69 in 0 : vector<16x256xf32>, vector<16x256xf32>, vector<16x256xf32> -> vector<48x256xf32>
    %c2 = arith.constant 2 : index
    %c0_34 = arith.constant 0 : index
    %c0_35 = arith.constant 0 : index
    %71 = vector.load %arg2[%c2, %c0_34, %c0_35] : memref<3x16x48xf32, #tpu.memory_space<vmem>>, vector<1x16x48xf32>
    %72 = vector.shape_cast %71 : vector<1x16x48xf32> to vector<16x48xf32>
    %cst_36 = arith.constant dense<0.000000e+00> : vector<16x256xf32>
    %73 = tpu.matmul %72, %70, %cst_36 {dimension_numbers = #tpu.dot_dimension_numbers<[1], [0], [0], [1], [0, 0, 1, 1], [], []>, precision = #tpu.contract_precision<fp32>} : vector<16x48xf32>, vector<48x256xf32>, vector<16x256xf32> -> vector<16x256xf32>
    %74 = arith.addf %58, %73 : vector<16x256xf32>
    %c0_37 = arith.constant 0 : index
    %c128_38 = arith.constant 128 : index
    %75 = vector.load %arg5[%c0_37, %c128_38] : memref<16x512xf32, #tpu.memory_space<vmem>>, vector<16x256xf32>
    tpu.vector_store %arg5[%c0_37, %c128_38], %74 {strides = array<i32>} : memref<16x512xf32, #tpu.memory_space<vmem>>, vector<16x256xf32>,
    %c0_39 = arith.constant 0 : index
    %c111_40 = arith.constant 111 : index
    %76 = vector.load %arg5[%c0_39, %c111_40] : memref<16x512xf32, #tpu.memory_space<vmem>>, vector<16x256xf32>
    %cst_41 = arith.constant 0.000000e+00 : f32
    %77 = vector.shape_cast %22 : vector<1x256xi1> to vector<1x256xi1>
    %78 = vector.broadcast %77 : vector<1x256xi1> to vector<16x256xi1>
    %79 = vector.broadcast %cst_41 : f32 to vector<16x256xf32>
    %80 = arith.select %78, %76, %79 : vector<16x256xi1>, vector<16x256xf32>
    %c0_42 = arith.constant 0 : index
    %c112_43 = arith.constant 112 : index
    %81 = vector.load %arg5[%c0_42, %c112_43] : memref<16x512xf32, #tpu.memory_space<vmem>>, vector<16x256xf32>
    %c0_44 = arith.constant 0 : index
    %c113_45 = arith.constant 113 : index
    %82 = vector.load %arg5[%c0_44, %c113_45] : memref<16x512xf32, #tpu.memory_space<vmem>>, vector<16x256xf32>
    %cst_46 = arith.constant 0.000000e+00 : f32
    %83 = vector.shape_cast %24 : vector<1x256xi1> to vector<1x256xi1>
    %84 = vector.broadcast %83 : vector<1x256xi1> to vector<16x256xi1>
    %85 = vector.broadcast %cst_46 : f32 to vector<16x256xf32>
    %86 = arith.select %84, %82, %85 : vector<16x256xi1>, vector<16x256xf32>
    %87 = tpu.concatenate %80, %81, %86 in 0 : vector<16x256xf32>, vector<16x256xf32>, vector<16x256xf32> -> vector<48x256xf32>
    %c0_47 = arith.constant 0 : index
    %c0_48 = arith.constant 0 : index
    %c0_49 = arith.constant 0 : index
    %88 = vector.load %arg3[%c0_47, %c0_48, %c0_49] : memref<3x16x48xf32, #tpu.memory_space<vmem>>, vector<1x16x48xf32>
    %89 = vector.shape_cast %88 : vector<1x16x48xf32> to vector<16x48xf32>
    %cst_50 = arith.constant dense<0.000000e+00> : vector<16x256xf32>
    %90 = tpu.matmul %89, %87, %cst_50 {dimension_numbers = #tpu.dot_dimension_numbers<[1], [0], [0], [1], [0, 0, 1, 1], [], []>, precision = #tpu.contract_precision<fp32>} : vector<16x48xf32>, vector<48x256xf32>, vector<16x256xf32> -> vector<16x256xf32>
    %c0_51 = arith.constant 0 : index
    %c127_52 = arith.constant 127 : index
    %91 = vector.load %arg5[%c0_51, %c127_52] : memref<16x512xf32, #tpu.memory_space<vmem>>, vector<16x256xf32>
    %cst_53 = arith.constant 0.000000e+00 : f32
    %92 = vector.shape_cast %22 : vector<1x256xi1> to vector<1x256xi1>
    %93 = vector.broadcast %92 : vector<1x256xi1> to vector<16x256xi1>
    %94 = vector.broadcast %cst_53 : f32 to vector<16x256xf32>
    %95 = arith.select %93, %91, %94 : vector<16x256xi1>, vector<16x256xf32>
    %c0_54 = arith.constant 0 : index
    %c128_55 = arith.constant 128 : index
    %96 = vector.load %arg5[%c0_54, %c128_55] : memref<16x512xf32, #tpu.memory_space<vmem>>, vector<16x256xf32>
    %c0_56 = arith.constant 0 : index
    %c129_57 = arith.constant 129 : index
    %97 = vector.load %arg5[%c0_56, %c129_57] : memref<16x512xf32, #tpu.memory_space<vmem>>, vector<16x256xf32>
    %cst_58 = arith.constant 0.000000e+00 : f32
    %98 = vector.shape_cast %24 : vector<1x256xi1> to vector<1x256xi1>
    %99 = vector.broadcast %98 : vector<1x256xi1> to vector<16x256xi1>
    %100 = vector.broadcast %cst_58 : f32 to vector<16x256xf32>
    %101 = arith.select %99, %97, %100 : vector<16x256xi1>, vector<16x256xf32>
    %102 = tpu.concatenate %95, %96, %101 in 0 : vector<16x256xf32>, vector<16x256xf32>, vector<16x256xf32> -> vector<48x256xf32>
    %c1_59 = arith.constant 1 : index
    %c0_60 = arith.constant 0 : index
    %c0_61 = arith.constant 0 : index
    %103 = vector.load %arg3[%c1_59, %c0_60, %c0_61] : memref<3x16x48xf32, #tpu.memory_space<vmem>>, vector<1x16x48xf32>
    %104 = vector.shape_cast %103 : vector<1x16x48xf32> to vector<16x48xf32>
    %cst_62 = arith.constant dense<0.000000e+00> : vector<16x256xf32>
    %105 = tpu.matmul %104, %102, %cst_62 {dimension_numbers = #tpu.dot_dimension_numbers<[1], [0], [0], [1], [0, 0, 1, 1], [], []>, precision = #tpu.contract_precision<fp32>} : vector<16x48xf32>, vector<48x256xf32>, vector<16x256xf32> -> vector<16x256xf32>
    %106 = arith.addf %90, %105 : vector<16x256xf32>
    %c0_63 = arith.constant 0 : index
    %c143_64 = arith.constant 143 : index
    %107 = vector.load %arg5[%c0_63, %c143_64] : memref<16x512xf32, #tpu.memory_space<vmem>>, vector<16x256xf32>
    %cst_65 = arith.constant 0.000000e+00 : f32
    %108 = vector.shape_cast %22 : vector<1x256xi1> to vector<1x256xi1>
    %109 = vector.broadcast %108 : vector<1x256xi1> to vector<16x256xi1>
    %110 = vector.broadcast %cst_65 : f32 to vector<16x256xf32>
    %111 = arith.select %109, %107, %110 : vector<16x256xi1>, vector<16x256xf32>
    %c0_66 = arith.constant 0 : index
    %c144_67 = arith.constant 144 : index
    %112 = vector.load %arg5[%c0_66, %c144_67] : memref<16x512xf32, #tpu.memory_space<vmem>>, vector<16x256xf32>
    %c0_68 = arith.constant 0 : index
    %c145_69 = arith.constant 145 : index
    %113 = vector.load %arg5[%c0_68, %c145_69] : memref<16x512xf32, #tpu.memory_space<vmem>>, vector<16x256xf32>
    %cst_70 = arith.constant 0.000000e+00 : f32
    %114 = vector.shape_cast %24 : vector<1x256xi1> to vector<1x256xi1>
    %115 = vector.broadcast %114 : vector<1x256xi1> to vector<16x256xi1>
    %116 = vector.broadcast %cst_70 : f32 to vector<16x256xf32>
    %117 = arith.select %115, %113, %116 : vector<16x256xi1>, vector<16x256xf32>
    %118 = tpu.concatenate %111, %112, %117 in 0 : vector<16x256xf32>, vector<16x256xf32>, vector<16x256xf32> -> vector<48x256xf32>
    %c2_71 = arith.constant 2 : index
    %c0_72 = arith.constant 0 : index
    %c0_73 = arith.constant 0 : index
    %119 = vector.load %arg3[%c2_71, %c0_72, %c0_73] : memref<3x16x48xf32, #tpu.memory_space<vmem>>, vector<1x16x48xf32>
    %120 = vector.shape_cast %119 : vector<1x16x48xf32> to vector<16x48xf32>
    %cst_74 = arith.constant dense<0.000000e+00> : vector<16x256xf32>
    %121 = tpu.matmul %120, %118, %cst_74 {dimension_numbers = #tpu.dot_dimension_numbers<[1], [0], [0], [1], [0, 0, 1, 1], [], []>, precision = #tpu.contract_precision<fp32>} : vector<16x48xf32>, vector<48x256xf32>, vector<16x256xf32> -> vector<16x256xf32>
    %122 = arith.addf %106, %121 : vector<16x256xf32>
    %c0_75 = arith.constant 0 : index
    %c0_76 = arith.constant 0 : index
    %c0_77 = arith.constant 0 : index
    %123 = vector.load %arg4[%c0_75, %c0_76, %c0_77] : memref<2x16x256xf32, #tpu.memory_space<vmem>>, vector<1x16x256xf32>
    %124 = vector.shape_cast %123 : vector<1x16x256xf32> to vector<16x256xf32>
    %125 = vector.shape_cast %122 : vector<16x256xf32> to vector<1x16x256xf32>
    tpu.vector_store %arg4[%c0_75, %c0_76, %c0_77], %125 {strides = array<i32>} : memref<2x16x256xf32, #tpu.memory_space<vmem>>, vector<1x16x256xf32>,
    %c1_78 = arith.constant 1 : index
    %c0_79 = arith.constant 0 : index
    %c0_80 = arith.constant 0 : index
    %126 = vector.load %arg1[%c1_78, %c0_79, %c0_80] : memref<2x16x256xf32, #tpu.memory_space<vmem>>, vector<1x16x256xf32>
    %127 = vector.shape_cast %126 : vector<1x16x256xf32> to vector<16x256xf32>
    %c0_81 = arith.constant 0 : index
    %c128_82 = arith.constant 128 : index
    %128 = vector.load %arg5[%c0_81, %c128_82] : memref<16x512xf32, #tpu.memory_space<vmem>>, vector<16x256xf32>
    tpu.vector_store %arg5[%c0_81, %c128_82], %127 {strides = array<i32>} : memref<16x512xf32, #tpu.memory_space<vmem>>, vector<16x256xf32>,
    %c0_83 = arith.constant 0 : index
    %c111_84 = arith.constant 111 : index
    %129 = vector.load %arg5[%c0_83, %c111_84] : memref<16x512xf32, #tpu.memory_space<vmem>>, vector<16x256xf32>
    %cst_85 = arith.constant 0.000000e+00 : f32
    %130 = vector.shape_cast %22 : vector<1x256xi1> to vector<1x256xi1>
    %131 = vector.broadcast %130 : vector<1x256xi1> to vector<16x256xi1>
    %132 = vector.broadcast %cst_85 : f32 to vector<16x256xf32>
    %133 = arith.select %131, %129, %132 : vector<16x256xi1>, vector<16x256xf32>
    %c0_86 = arith.constant 0 : index
    %c112_87 = arith.constant 112 : index
    %134 = vector.load %arg5[%c0_86, %c112_87] : memref<16x512xf32, #tpu.memory_space<vmem>>, vector<16x256xf32>
    %c0_88 = arith.constant 0 : index
    %c113_89 = arith.constant 113 : index
    %135 = vector.load %arg5[%c0_88, %c113_89] : memref<16x512xf32, #tpu.memory_space<vmem>>, vector<16x256xf32>
    %cst_90 = arith.constant 0.000000e+00 : f32
    %136 = vector.shape_cast %24 : vector<1x256xi1> to vector<1x256xi1>
    %137 = vector.broadcast %136 : vector<1x256xi1> to vector<16x256xi1>
    %138 = vector.broadcast %cst_90 : f32 to vector<16x256xf32>
    %139 = arith.select %137, %135, %138 : vector<16x256xi1>, vector<16x256xf32>
    %140 = tpu.concatenate %133, %134, %139 in 0 : vector<16x256xf32>, vector<16x256xf32>, vector<16x256xf32> -> vector<48x256xf32>
    %c0_91 = arith.constant 0 : index
    %c0_92 = arith.constant 0 : index
    %c0_93 = arith.constant 0 : index
    %141 = vector.load %arg2[%c0_91, %c0_92, %c0_93] : memref<3x16x48xf32, #tpu.memory_space<vmem>>, vector<1x16x48xf32>
    %142 = vector.shape_cast %141 : vector<1x16x48xf32> to vector<16x48xf32>
    %cst_94 = arith.constant dense<0.000000e+00> : vector<16x256xf32>
    %143 = tpu.matmul %142, %140, %cst_94 {dimension_numbers = #tpu.dot_dimension_numbers<[1], [0], [0], [1], [0, 0, 1, 1], [], []>, precision = #tpu.contract_precision<fp32>} : vector<16x48xf32>, vector<48x256xf32>, vector<16x256xf32> -> vector<16x256xf32>
    %c0_95 = arith.constant 0 : index
    %c127_96 = arith.constant 127 : index
    %144 = vector.load %arg5[%c0_95, %c127_96] : memref<16x512xf32, #tpu.memory_space<vmem>>, vector<16x256xf32>
    %cst_97 = arith.constant 0.000000e+00 : f32
    %145 = vector.shape_cast %22 : vector<1x256xi1> to vector<1x256xi1>
    %146 = vector.broadcast %145 : vector<1x256xi1> to vector<16x256xi1>
    %147 = vector.broadcast %cst_97 : f32 to vector<16x256xf32>
    %148 = arith.select %146, %144, %147 : vector<16x256xi1>, vector<16x256xf32>
    %c0_98 = arith.constant 0 : index
    %c128_99 = arith.constant 128 : index
    %149 = vector.load %arg5[%c0_98, %c128_99] : memref<16x512xf32, #tpu.memory_space<vmem>>, vector<16x256xf32>
    %c0_100 = arith.constant 0 : index
    %c129_101 = arith.constant 129 : index
    %150 = vector.load %arg5[%c0_100, %c129_101] : memref<16x512xf32, #tpu.memory_space<vmem>>, vector<16x256xf32>
    %cst_102 = arith.constant 0.000000e+00 : f32
    %151 = vector.shape_cast %24 : vector<1x256xi1> to vector<1x256xi1>
    %152 = vector.broadcast %151 : vector<1x256xi1> to vector<16x256xi1>
    %153 = vector.broadcast %cst_102 : f32 to vector<16x256xf32>
    %154 = arith.select %152, %150, %153 : vector<16x256xi1>, vector<16x256xf32>
    %155 = tpu.concatenate %148, %149, %154 in 0 : vector<16x256xf32>, vector<16x256xf32>, vector<16x256xf32> -> vector<48x256xf32>
    %c1_103 = arith.constant 1 : index
    %c0_104 = arith.constant 0 : index
    %c0_105 = arith.constant 0 : index
    %156 = vector.load %arg2[%c1_103, %c0_104, %c0_105] : memref<3x16x48xf32, #tpu.memory_space<vmem>>, vector<1x16x48xf32>
    %157 = vector.shape_cast %156 : vector<1x16x48xf32> to vector<16x48xf32>
    %cst_106 = arith.constant dense<0.000000e+00> : vector<16x256xf32>
    %158 = tpu.matmul %157, %155, %cst_106 {dimension_numbers = #tpu.dot_dimension_numbers<[1], [0], [0], [1], [0, 0, 1, 1], [], []>, precision = #tpu.contract_precision<fp32>} : vector<16x48xf32>, vector<48x256xf32>, vector<16x256xf32> -> vector<16x256xf32>
    %159 = arith.addf %143, %158 : vector<16x256xf32>
    %c0_107 = arith.constant 0 : index
    %c143_108 = arith.constant 143 : index
    %160 = vector.load %arg5[%c0_107, %c143_108] : memref<16x512xf32, #tpu.memory_space<vmem>>, vector<16x256xf32>
    %cst_109 = arith.constant 0.000000e+00 : f32
    %161 = vector.shape_cast %22 : vector<1x256xi1> to vector<1x256xi1>
    %162 = vector.broadcast %161 : vector<1x256xi1> to vector<16x256xi1>
    %163 = vector.broadcast %cst_109 : f32 to vector<16x256xf32>
    %164 = arith.select %162, %160, %163 : vector<16x256xi1>, vector<16x256xf32>
    %c0_110 = arith.constant 0 : index
    %c144_111 = arith.constant 144 : index
    %165 = vector.load %arg5[%c0_110, %c144_111] : memref<16x512xf32, #tpu.memory_space<vmem>>, vector<16x256xf32>
    %c0_112 = arith.constant 0 : index
    %c145_113 = arith.constant 145 : index
    %166 = vector.load %arg5[%c0_112, %c145_113] : memref<16x512xf32, #tpu.memory_space<vmem>>, vector<16x256xf32>
    %cst_114 = arith.constant 0.000000e+00 : f32
    %167 = vector.shape_cast %24 : vector<1x256xi1> to vector<1x256xi1>
    %168 = vector.broadcast %167 : vector<1x256xi1> to vector<16x256xi1>
    %169 = vector.broadcast %cst_114 : f32 to vector<16x256xf32>
    %170 = arith.select %168, %166, %169 : vector<16x256xi1>, vector<16x256xf32>
    %171 = tpu.concatenate %164, %165, %170 in 0 : vector<16x256xf32>, vector<16x256xf32>, vector<16x256xf32> -> vector<48x256xf32>
    %c2_115 = arith.constant 2 : index
    %c0_116 = arith.constant 0 : index
    %c0_117 = arith.constant 0 : index
    %172 = vector.load %arg2[%c2_115, %c0_116, %c0_117] : memref<3x16x48xf32, #tpu.memory_space<vmem>>, vector<1x16x48xf32>
    %173 = vector.shape_cast %172 : vector<1x16x48xf32> to vector<16x48xf32>
    %cst_118 = arith.constant dense<0.000000e+00> : vector<16x256xf32>
    %174 = tpu.matmul %173, %171, %cst_118 {dimension_numbers = #tpu.dot_dimension_numbers<[1], [0], [0], [1], [0, 0, 1, 1], [], []>, precision = #tpu.contract_precision<fp32>} : vector<16x48xf32>, vector<48x256xf32>, vector<16x256xf32> -> vector<16x256xf32>
    %175 = arith.addf %159, %174 : vector<16x256xf32>
    %c0_119 = arith.constant 0 : index
    %c128_120 = arith.constant 128 : index
    %176 = vector.load %arg5[%c0_119, %c128_120] : memref<16x512xf32, #tpu.memory_space<vmem>>, vector<16x256xf32>
    tpu.vector_store %arg5[%c0_119, %c128_120], %175 {strides = array<i32>} : memref<16x512xf32, #tpu.memory_space<vmem>>, vector<16x256xf32>,
    %c0_121 = arith.constant 0 : index
    %c111_122 = arith.constant 111 : index
    %177 = vector.load %arg5[%c0_121, %c111_122] : memref<16x512xf32, #tpu.memory_space<vmem>>, vector<16x256xf32>
    %cst_123 = arith.constant 0.000000e+00 : f32
    %178 = vector.shape_cast %22 : vector<1x256xi1> to vector<1x256xi1>
    %179 = vector.broadcast %178 : vector<1x256xi1> to vector<16x256xi1>
    %180 = vector.broadcast %cst_123 : f32 to vector<16x256xf32>
    %181 = arith.select %179, %177, %180 : vector<16x256xi1>, vector<16x256xf32>
    %c0_124 = arith.constant 0 : index
    %c112_125 = arith.constant 112 : index
    %182 = vector.load %arg5[%c0_124, %c112_125] : memref<16x512xf32, #tpu.memory_space<vmem>>, vector<16x256xf32>
    %c0_126 = arith.constant 0 : index
    %c113_127 = arith.constant 113 : index
    %183 = vector.load %arg5[%c0_126, %c113_127] : memref<16x512xf32, #tpu.memory_space<vmem>>, vector<16x256xf32>
    %cst_128 = arith.constant 0.000000e+00 : f32
    %184 = vector.shape_cast %24 : vector<1x256xi1> to vector<1x256xi1>
    %185 = vector.broadcast %184 : vector<1x256xi1> to vector<16x256xi1>
    %186 = vector.broadcast %cst_128 : f32 to vector<16x256xf32>
    %187 = arith.select %185, %183, %186 : vector<16x256xi1>, vector<16x256xf32>
    %188 = tpu.concatenate %181, %182, %187 in 0 : vector<16x256xf32>, vector<16x256xf32>, vector<16x256xf32> -> vector<48x256xf32>
    %c0_129 = arith.constant 0 : index
    %c0_130 = arith.constant 0 : index
    %c0_131 = arith.constant 0 : index
    %189 = vector.load %arg3[%c0_129, %c0_130, %c0_131] : memref<3x16x48xf32, #tpu.memory_space<vmem>>, vector<1x16x48xf32>
    %190 = vector.shape_cast %189 : vector<1x16x48xf32> to vector<16x48xf32>
    %cst_132 = arith.constant dense<0.000000e+00> : vector<16x256xf32>
    %191 = tpu.matmul %190, %188, %cst_132 {dimension_numbers = #tpu.dot_dimension_numbers<[1], [0], [0], [1], [0, 0, 1, 1], [], []>, precision = #tpu.contract_precision<fp32>} : vector<16x48xf32>, vector<48x256xf32>, vector<16x256xf32> -> vector<16x256xf32>
    %c0_133 = arith.constant 0 : index
    %c127_134 = arith.constant 127 : index
    %192 = vector.load %arg5[%c0_133, %c127_134] : memref<16x512xf32, #tpu.memory_space<vmem>>, vector<16x256xf32>
    %cst_135 = arith.constant 0.000000e+00 : f32
    %193 = vector.shape_cast %22 : vector<1x256xi1> to vector<1x256xi1>
    %194 = vector.broadcast %193 : vector<1x256xi1> to vector<16x256xi1>
    %195 = vector.broadcast %cst_135 : f32 to vector<16x256xf32>
    %196 = arith.select %194, %192, %195 : vector<16x256xi1>, vector<16x256xf32>
    %c0_136 = arith.constant 0 : index
    %c128_137 = arith.constant 128 : index
    %197 = vector.load %arg5[%c0_136, %c128_137] : memref<16x512xf32, #tpu.memory_space<vmem>>, vector<16x256xf32>
    %c0_138 = arith.constant 0 : index
    %c129_139 = arith.constant 129 : index
    %198 = vector.load %arg5[%c0_138, %c129_139] : memref<16x512xf32, #tpu.memory_space<vmem>>, vector<16x256xf32>
    %cst_140 = arith.constant 0.000000e+00 : f32
    %199 = vector.shape_cast %24 : vector<1x256xi1> to vector<1x256xi1>
    %200 = vector.broadcast %199 : vector<1x256xi1> to vector<16x256xi1>
    %201 = vector.broadcast %cst_140 : f32 to vector<16x256xf32>
    %202 = arith.select %200, %198, %201 : vector<16x256xi1>, vector<16x256xf32>
    %203 = tpu.concatenate %196, %197, %202 in 0 : vector<16x256xf32>, vector<16x256xf32>, vector<16x256xf32> -> vector<48x256xf32>
    %c1_141 = arith.constant 1 : index
    %c0_142 = arith.constant 0 : index
    %c0_143 = arith.constant 0 : index
    %204 = vector.load %arg3[%c1_141, %c0_142, %c0_143] : memref<3x16x48xf32, #tpu.memory_space<vmem>>, vector<1x16x48xf32>
    %205 = vector.shape_cast %204 : vector<1x16x48xf32> to vector<16x48xf32>
    %cst_144 = arith.constant dense<0.000000e+00> : vector<16x256xf32>
    %206 = tpu.matmul %205, %203, %cst_144 {dimension_numbers = #tpu.dot_dimension_numbers<[1], [0], [0], [1], [0, 0, 1, 1], [], []>, precision = #tpu.contract_precision<fp32>} : vector<16x48xf32>, vector<48x256xf32>, vector<16x256xf32> -> vector<16x256xf32>
    %207 = arith.addf %191, %206 : vector<16x256xf32>
    %c0_145 = arith.constant 0 : index
    %c143_146 = arith.constant 143 : index
    %208 = vector.load %arg5[%c0_145, %c143_146] : memref<16x512xf32, #tpu.memory_space<vmem>>, vector<16x256xf32>
    %cst_147 = arith.constant 0.000000e+00 : f32
    %209 = vector.shape_cast %22 : vector<1x256xi1> to vector<1x256xi1>
    %210 = vector.broadcast %209 : vector<1x256xi1> to vector<16x256xi1>
    %211 = vector.broadcast %cst_147 : f32 to vector<16x256xf32>
    %212 = arith.select %210, %208, %211 : vector<16x256xi1>, vector<16x256xf32>
    %c0_148 = arith.constant 0 : index
    %c144_149 = arith.constant 144 : index
    %213 = vector.load %arg5[%c0_148, %c144_149] : memref<16x512xf32, #tpu.memory_space<vmem>>, vector<16x256xf32>
    %c0_150 = arith.constant 0 : index
    %c145_151 = arith.constant 145 : index
    %214 = vector.load %arg5[%c0_150, %c145_151] : memref<16x512xf32, #tpu.memory_space<vmem>>, vector<16x256xf32>
    %cst_152 = arith.constant 0.000000e+00 : f32
    %215 = vector.shape_cast %24 : vector<1x256xi1> to vector<1x256xi1>
    %216 = vector.broadcast %215 : vector<1x256xi1> to vector<16x256xi1>
    %217 = vector.broadcast %cst_152 : f32 to vector<16x256xf32>
    %218 = arith.select %216, %214, %217 : vector<16x256xi1>, vector<16x256xf32>
    %219 = tpu.concatenate %212, %213, %218 in 0 : vector<16x256xf32>, vector<16x256xf32>, vector<16x256xf32> -> vector<48x256xf32>
    %c2_153 = arith.constant 2 : index
    %c0_154 = arith.constant 0 : index
    %c0_155 = arith.constant 0 : index
    %220 = vector.load %arg3[%c2_153, %c0_154, %c0_155] : memref<3x16x48xf32, #tpu.memory_space<vmem>>, vector<1x16x48xf32>
    %221 = vector.shape_cast %220 : vector<1x16x48xf32> to vector<16x48xf32>
    %cst_156 = arith.constant dense<0.000000e+00> : vector<16x256xf32>
    %222 = tpu.matmul %221, %219, %cst_156 {dimension_numbers = #tpu.dot_dimension_numbers<[1], [0], [0], [1], [0, 0, 1, 1], [], []>, precision = #tpu.contract_precision<fp32>} : vector<16x48xf32>, vector<48x256xf32>, vector<16x256xf32> -> vector<16x256xf32>
    %223 = arith.addf %207, %222 : vector<16x256xf32>
    %c1_157 = arith.constant 1 : index
    %c0_158 = arith.constant 0 : index
    %c0_159 = arith.constant 0 : index
    %224 = vector.load %arg4[%c1_157, %c0_158, %c0_159] : memref<2x16x256xf32, #tpu.memory_space<vmem>>, vector<1x16x256xf32>
    %225 = vector.shape_cast %224 : vector<1x16x256xf32> to vector<16x256xf32>
    %226 = vector.shape_cast %223 : vector<16x256xf32> to vector<1x16x256xf32>
    tpu.vector_store %arg4[%c1_157, %c0_158, %c0_159], %226 {strides = array<i32>} : memref<2x16x256xf32, #tpu.memory_space<vmem>>, vector<1x16x256xf32>,
    return
  }
  func.func @transform_0(%arg0: i32) -> (i32, i32, i32) {
    %c0_i32 = arith.constant 0 : i32
    %c0_i32_0 = arith.constant 0 : i32
    %c0_i32_1 = arith.constant 0 : i32
    %c0_i32_2 = arith.constant 0 : i32
    return %c0_i32, %c0_i32_0, %c0_i32_1 : i32, i32, i32
  }
  func.func @transform_1(%arg0: i32) -> (i32, i32, i32) {
    %c0_i32 = arith.constant 0 : i32
    %c0_i32_0 = arith.constant 0 : i32
    %c0_i32_1 = arith.constant 0 : i32
    %c0_i32_2 = arith.constant 0 : i32
    return %c0_i32, %c0_i32_0, %c0_i32_1 : i32, i32, i32
  }
  func.func @transform_2(%arg0: i32) -> (i32, i32, i32) {
    %c0_i32 = arith.constant 0 : i32
    %c0_i32_0 = arith.constant 0 : i32
    %c0_i32_1 = arith.constant 0 : i32
    %c0_i32_2 = arith.constant 0 : i32
    return %c0_i32, %c0_i32_0, %c0_i32_1 : i32, i32, i32
  }
  func.func @transform_3(%arg0: i32) -> (i32, i32, i32) {
    %c0_i32 = arith.constant 0 : i32
    %c0_i32_0 = arith.constant 0 : i32
    %c0_i32_1 = arith.constant 0 : i32
    %c0_i32_2 = arith.constant 0 : i32
    return %c0_i32, %c0_i32_0, %c0_i32_1 : i32, i32, i32
  }
}

</mosaic_0001>

<bundles_post_ra>
// kernel: tpu_custom_call.1
= control target key start
LH: loop header
LB: loop body
LE: loop exit
PB: predicated region body
PF: predicated region fallthrough
CT: control target
= control target key end

     0   :  { %8 = vsyncpa [#allocation4], 0  ;;  %s11264_s0 = inlined_call_operand.hbm [shape: f32[2,16,256], index: 0, kind: input, shape index: {}]   ;;  %s11265_s1 = inlined_call_operand.hbm [shape: f32[3,16,48], index: 1, kind: input, shape index: {}]   ;;  %s11266_s2 = inlined_call_operand.hbm [shape: f32[3,16,48], index: 2, kind: input, shape index: {}]   ;;  %s11267_s3 = inlined_call_operand.hbm [shape: f32[2,16,256], index: 3, kind: output, shape index: {}]  }
   0x1   :  { %9 = vsyncpa [#allocation7], 0  ;;  %s28_s14 = sshll.u32 %s11265_s1, 4  ;;  %s29_s14 = int_to_ptr.hbm [resolvable:$true] %s28_s14 }
   0x2   :  { %10 = vsyncpa [#allocation5], 0  ;;  %s7206_s15 = smov [#allocation6]   ;;  %s15_s19 = sshll.u32 %s11264_s0, 4  ;;  %s16_s19 = int_to_ptr.hbm [resolvable:$true] %s15_s19 }
   0x3   :  { %s30_s16 = sshll.u32 %s7206_s15, 4  ;;  %s7207_s20 = smov 128   ;;  %s31_s16 = int_to_ptr.vmem [resolvable:$true] %s30_s16 }
   0x4   :  { %s7208_s21 = smov 8   ;;  %s7209_s22 = smov [#allocation3]  }
   0x5   :  { %36 = dma.hbm_to_vmem [thread:$0]  %s29_s14, 768, %s31_s16, [#allocation7], %s7207_s20, %s7207_s20, %s7208_s21  }
   0x6   :  { %s17_s23 = sshll.u32 %s7209_s22, 4  ;;  %s7210_s24 = smov 256   ;;  %s18_s23 = int_to_ptr.vmem [resolvable:$true] %s17_s23 }
   0x7   :  { %s7211_s25 = smov 16   ;;  %s41_s27 = sshll.u32 %s11266_s2, 4  ;;  %s42_s27 = int_to_ptr.hbm [resolvable:$true] %s41_s27 }
   0x8   :  { %23 = dma.hbm_to_vmem [thread:$0]  %s16_s19, 1024, %s18_s23, [#allocation4], %s7210_s24, %s7210_s24, %s7211_s25  }
   0x9   :  { %s7212_s28 = smov [#allocation8]  }
   0xa   :  { %s43_s0 = sshll.u32 %s7212_s28, 4  ;;  %s44_s0 = int_to_ptr.vmem [resolvable:$true] %s43_s0 }
   0xb   :  { %49 = dma.hbm_to_vmem [thread:$0]  %s42_s27, 768, %s44_s0, [#allocation7], %s7207_s20, %s7207_s20, %s7208_s21  }
   0xc   :  { %7200 = dma.done.wait [#allocation4], 1024  }
   0xd   :  { %7201 = vsyncadd [#allocation4], 4294966272 }
   0xe   :  { %7202 = dma.done.wait [#allocation7], 1536  }
   0xf   :  { %7203 = vsyncadd [#allocation7], 4294965760  ;;  %v11268_v0 = vmov 0.0   ;;  %s7214_s29 = smov 1   ;;  %v7256_v1 = vld [vmem:[#allocation3 + $0x10] sm:$0xff]  ;;  %v7258_v2 = vld [vmem:[#allocation3] sm:$0xff]  ;;  %v66_v6 = vlaneseq }
  0x10   :  { %6941 = vrot.lane.b32.xlu2 %v11268_v0, %s7214_s29  ;;  %s7215_s30 = smov 127   ;;  %v7266_v3 = vld [vmem:[#allocation3 + $0x18] sm:$0xff]  ;;  %v7268_v4 = vld [vmem:[#allocation3 + $0x8] sm:$0xff]  ;;  %s7216_s2 = smov 15   ;;  %v261_v9 = vld [vmem:[#allocation6 + $0x10] sm:$0xff]  ;;  %vm263_vm0 = vcmask 392192  }
  0x11   :  { %241 = vrot.lane.b32.xlu0 %v7256_v1, %s7215_s30  ;;  %235 = vrot.lane.b32.xlu1 %v7258_v2, %s7215_s30  ;;  %s7217_s4 = smov 17   ;;  %s7218_s5 = smov 111   ;;  %v67_v7 = vand.u32 127, %v66_v6  ;;  %v265_v12 = vsel %vm263_vm0, %v261_v9, 0  ;;  %vm210_vm1 = vcmask 7168   ;;  %v7347_v15 = vand.u32 4294901760, %v7256_v1 }
  0x12   :  { %s7219_s6 = smov 112   ;;  %s7220_s7 = smov 113   ;;  %v7349_v16 = vand.u32 4294901760, %v265_v12  ;;  %v11293_v17 = vmov 0  ;;  %vm247_vm3 = vcmask 1039360   ;;  %v11296_v25 = vmov 0 }
  0x13   :  { %v73_v11 = vand.u32 15, %v67_v7  ;;  %v7360_v21 = vsub.f32 %v7256_v1, %v7347_v15  ;;  %v68_v23 = vadd.s32 128, %v67_v7  ;;  %v7372_v28 = vand.u32 4294901760, %v7258_v2  ;;  %v262_v31 = vld [vmem:[#allocation6 + $0x18] sm:$0xff]  ;;  %s7221_s8 = smov [#allocation9]   ;;  %s6910_s12 = sshll.u32 %s11267_s3, 4  ;;  %s6911_s12 = int_to_ptr.hbm [resolvable:$true] %s6910_s12 }
  0x14   :  { %v7363_v22 = vsub.f32 %v265_v12, %v7349_v16  ;;  %v268_v40 = vsel %vm263_vm0, %v262_v31, 0  ;;  %v11299_v48 = vmov 0  ;;  %v11302_v58 = vmov 0  ;;  %s6908_s9 = sshll.u32 %s7221_s8, 4  ;;  %s6909_s9 = int_to_ptr.vmem [resolvable:$true] %s6908_s9 }
  0x15   :  { %vm7351_vm2 = vcmp.ge.s32.totalorder %v73_v11, 1  ;;  %vm7367_vm4 = vcmp.le.s32.totalorder %v73_v11, 14  ;;  %v333_v30 = vand.u32 4294901760, %v7360_v21  ;;  %v80_v36 = vand.u32 15, %v68_v23 }
  0x16   :  { %v11294_v17 = vsel %vm7351_vm2, 4294967295, %v11293_v17  ;;  %v11297_v25 = vsel %vm7367_vm4, 4294967295, %v11296_v25  ;;  %v7375_v29 = vand.u32 4294901760, %v7363_v22  ;;  %v7394_v41 = vsub.f32 %v7258_v2, %v7372_v28 }
  0x17   :  { %11295 = vst [vmem:[#allocation13_spill] sm:$0xff] %v11294_v17  ;;  %v7401_v43 = vsub.f32 %v7360_v21, %v333_v30  ;;  %vm7414_vm5 = vcmp.ge.s32.totalorder %v80_v36, 1  ;;  %v7418_v49 = vand.u32 4294901760, %v268_v40  ;;  %vm7430_vm6 = vcmp.le.s32.totalorder %v80_v36, 14 }
  0x18   :  { %206 = vrot.lane.b32.xlu2 %v7256_v1, %s7214_s29  ;;  %11298 = vst [vmem:[#allocation14_spill] sm:$0xff] %v11297_v25  ;;  %v295_v42 = vsub.f32 %v7363_v22, %v7375_v29  ;;  %v11300_v48 = vsel %vm7414_vm5, 4294967295, %v11299_v48  ;;  %v11303_v58 = vsel %vm7430_vm6, 4294967295, %v11302_v58  ;;  %v339_v59 = vand.u32 4294901760, %v7394_v41 }
  0x19   :  { %243 = vrot.lane.b32.xlu0 %v7266_v3, %s7215_s30  ;;  %237 = vrot.lane.b32.xlu1 %v7268_v4, %s7215_s30  ;;  %11301 = vst [vmem:[#allocation15_spill] sm:$0xff] %v11300_v48  ;;  %v335_v57 = vand.u32 4294901760, %v7401_v43  ;;  %v7449_v6 = vsub.f32 %v268_v40, %v7418_v49  ;;  %vm162_vm7 = vcmask 121856   ;;  %vm187_vm8 = vcmask 130048  }
  0x1a   :  { %v7427_v56 = vand.u32 4294901760, %v295_v42  ;;  %11304 = vst [vmem:[#allocation16_spill] sm:$0xff] %v11303_v58  ;;  %v340_v12 = vsub.f32 %v7394_v41, %v339_v59  ;;  %vm133_vm9 = vcmask 138240   ;;  %vm1281_vm10 = vcmask 908288  }
  0x1b   :  { %vm1306_vm11 = vcmask 916480   ;;  %vm1256_vm12 = vcmask 924672  }
  0x20   :  { %208 = vrot.lane.b32.xlu2 %v7266_v3, %s7214_s29 }
  0x21   :  { %200 = vrot.lane.b32.xlu0 %v7258_v2, %s7214_s29  ;;  %6946 = vrot.lane.b32.xlu1 %v11268_v0, %s7215_s30 }
  0x28   :  { %158 = vrot.lane.b32.xlu2 %v7256_v1, %s7216_s2 }
  0x29   :  { %202 = vrot.lane.b32.xlu0 %v7268_v4, %s7214_s29  ;;  %6951 = vrot.lane.b32.xlu1 %v11268_v0, %s7216_s2 }
  0x30   :  { %183 = vrot.lane.b32.xlu2 %v7256_v1, %s7211_s25 }
  0x31   :  { %152 = vrot.lane.b32.xlu0 %v7258_v2, %s7216_s2  ;;  %6956 = vrot.lane.b32.xlu1 %v11268_v0, %s7211_s25 }
  0x38   :  { %129 = vrot.lane.b32.xlu2 %v7256_v1, %s7217_s4 }
  0x39   :  { %177 = vrot.lane.b32.xlu0 %v7258_v2, %s7211_s25  ;;  %6961 = vrot.lane.b32.xlu1 %v11268_v0, %s7217_s4 }
  0x40   :  { %154 = vrot.lane.b32.xlu2 %v7268_v4, %s7216_s2 }
  0x41   :  { %123 = vrot.lane.b32.xlu0 %v7258_v2, %s7217_s4  ;;  %160 = vrot.lane.b32.xlu1 %v7266_v3, %s7216_s2 }
  0x48   :  { %131 = vrot.lane.b32.xlu2 %v7266_v3, %s7217_s4 }
  0x49   :  { %185 = vrot.lane.b32.xlu0 %v7266_v3, %s7211_s25  ;;  %179 = vrot.lane.b32.xlu1 %v7268_v4, %s7211_s25 }
  0x50   :  { %1277 = vrot.lane.b32.xlu2 %v7266_v3, %s7218_s5 }
  0x51   :  { %125 = vrot.lane.b32.xlu0 %v7268_v4, %s7217_s4  ;;  %1275 = vrot.lane.b32.xlu1 %v7256_v1, %s7218_s5 }
  0x58   :  { %1300 = vrot.lane.b32.xlu2 %v7256_v1, %s7219_s6 }
  0x59   :  { %1269 = vrot.lane.b32.xlu0 %v7258_v2, %s7218_s5  ;;  %1271 = vrot.lane.b32.xlu1 %v7268_v4, %s7218_s5 }
  0x60   :  { %1296 = vrot.lane.b32.xlu2 %v7268_v4, %s7219_s6 }
  0x61   :  { %1302 = vrot.lane.b32.xlu0 %v7266_v3, %s7219_s6  ;;  %1294 = vrot.lane.b32.xlu1 %v7258_v2, %s7219_s6 }
  0x68   :  { %1244 = vrot.lane.b32.xlu2 %v7258_v2, %s7220_s7 }
  0x69   :  { %1250 = vrot.lane.b32.xlu0 %v7256_v1, %s7220_s7  ;;  %1252 = vrot.lane.b32.xlu1 %v7266_v3, %s7220_s7 }
  0x6a   :  { %v7340_v5 = vpop.permute.xlu2 %6941 }
  0x6b   :  { %v6943_v10 = vunpack.i.l.bf16 %v7340_v5  ;;  %v6944_v47 = vunpack.i.h.bf16 %v7340_v5  ;;  %v7446_v5 = vand.u32 4294901760, %v7266_v3 }
  0x70   :  { %6971 = vrot.lane.b32.xlu2 %v11268_v0, %s7219_s6 }
  0x71   :  { %1246 = vrot.lane.b32.xlu0 %v7268_v4, %s7220_s7  ;;  %6966 = vrot.lane.b32.xlu1 %v11268_v0, %s7218_s5 }
  0x72   :  { %v207_v8 = vpop.permute.xlu2 %206 }
  0x73   :  { %v213_v18 = vsel %vm210_vm1, %v6943_v10, %v207_v8 }
  0x74   :  { %v221_v20 = vsel %vm7351_vm2, %v213_v18, 0.0 }
  0x75   :  { %v7365_v24 = vand.u32 4294901760, %v221_v20 }
  0x77   :  { %v7389_v39 = vsub.f32 %v221_v20, %v7365_v24 }
  0x79   :  { %6976 = vrot.lane.b32.xlu0 %v11268_v0, %s7220_s7  ;;  %v345_v53 = vand.u32 4294901760, %v7389_v39 }
  0x7a   :  { %v209_v19 = vpop.permute.xlu2 %208 }
  0x7b   :  { %v214_v50 = vsel %vm210_vm1, %v207_v8, %v209_v19  ;;  %v346_v42 = vsub.f32 %v7389_v39, %v345_v53 }
  0x82   :  { %v7411_v46 = vpop.permute.xlu2 %158 }
  0x83   :  { %v242_v13 = vpop.permute.xlu0 %241  ;;  %v236_v14 = vpop.permute.xlu1 %235 }
  0x8a   :  { %v7484_v31 = vpop.permute.xlu2 %183 }
  0x8b   :  { %v244_v26 = vpop.permute.xlu0 %243  ;;  %v238_v27 = vpop.permute.xlu1 %237 }
  0x8c   :  { %v250_v32 = vsel %vm247_vm3, %v242_v13, %v244_v26  ;;  %v248_v33 = vsel %vm247_vm3, %v236_v14, %v238_v27  ;;  %v7466_v14 = vand.u32 4294901760, %v7268_v4 }
  0x8d   :  { %v258_v34 = vsel %vm7367_vm4, %v250_v32, 0.0  ;;  %v256_v35 = vsel %vm7367_vm4, %v248_v33, 0.0 }
  0x8e   :  { %v7384_v37 = vand.u32 4294901760, %v258_v34  ;;  %v7386_v38 = vand.u32 4294901760, %v256_v35 }
  0x90   :  { %281 = vmatpush.msra.mxu0 %v7384_v37  ;;  %414 = vmatpush.msra.mxu3 %v7384_v37  ;;  %v7406_v44 = vsub.f32 %v258_v34, %v7384_v37  ;;  %v7409_v45 = vsub.f32 %v256_v35, %v7386_v38  ;;  %v7495_v35 = vsub.f32 %v7266_v3, %v7446_v5  ;;  %v341_v3 = vand.u32 4294901760, %v340_v12 }
  0x92   :  { %283 = vmatpush.msra.mxu0 %v7386_v38  ;;  %376 = vmatpush.msra.mxu2 %v7406_v44  ;;  %v321_v51 = vand.u32 4294901760, %v7406_v44  ;;  %v327_v52 = vand.u32 4294901760, %v7409_v45 }
  0x93   :  { %416 = vmatpush.msra.mxu3 %v7386_v38  ;;  %v201_v54 = vpop.permute.xlu0 %200  ;;  %v6947_v55 = vpop.permute.xlu1 %6946 }
  0x94   :  { %v211_v60 = vsel %vm210_vm1, %v6944_v47, %v201_v54  ;;  %v6949_v61 = vunpack.i.h.bf16 %v6947_v55  ;;  %v6948_v62 = vunpack.i.l.bf16 %v6947_v55  ;;  %285 = vmatpush.msra.mxu0 %v7347_v15  ;;  %379 = vmatpush.msra.mxu2 %v7409_v45  ;;  %v322_v63 = vsub.f32 %v7406_v44, %v321_v51 }
  0x95   :  { %v219_v1 = vsel %vm7351_vm2, %v211_v60, 0.0  ;;  %418 = vmatpush.msra.mxu3 %v7347_v15  ;;  %v328_v2 = vsub.f32 %v7409_v45, %v327_v52  ;;  %v7510_v47 = vsub.f32 %v7268_v4, %v7466_v14 }
  0x96   :  { %v7451_v7 = vand.u32 4294901760, %v219_v1  ;;  %v249_v8 = vsel %vm247_vm3, %v238_v27, %v6949_v61  ;;  %v251_v9 = vsel %vm247_vm3, %v244_v26, %v6948_v62  ;;  %287 = vmatpush.msra.mxu0 %v7372_v28  ;;  %382 = vmatpush.msra.mxu2 %v7360_v21  ;;  %v323_v10 = vand.u32 4294901760, %v322_v63 }
  0x97   :  { %420 = vmatpush.msra.mxu3 %v7372_v28  ;;  %v259_v11 = vsel %vm7430_vm6, %v251_v9, 0.0  ;;  %v257_v13 = vsel %vm7430_vm6, %v249_v8, 0.0  ;;  %v329_v18 = vand.u32 4294901760, %v328_v2  ;;  %v222_v26 = vsel %vm7414_vm5, %v214_v50, 0.0 }
  0x98   :  { %289 = vmatpush.msra.mxu0 %v7365_v24  ;;  %324 = vmatpush.msra.mxu1 %v323_v10  ;;  %v7470_v19 = vsub.f32 %v219_v1, %v7451_v7  ;;  %v7472_v20 = vand.u32 4294901760, %v259_v11  ;;  %v7474_v23 = vand.u32 4294901760, %v257_v13  ;;  %v7481_v27 = vand.u32 4294901760, %v7449_v6 }
  0x99   :  { %385 = vmatpush.msra.mxu2 %v7394_v41  ;;  %422 = vmatpush.msra.mxu3 %v7365_v24  ;;  %v7504_v43 = vand.u32 4294901760, %v222_v26  ;;  %v347_v63 = vand.u32 4294901760, %v346_v42  ;;  %v581_v1 = vand.u32 4294901760, %v7510_v47 }
  0x9a   :  { %291 = vmatpush.msra.mxu0 %v7451_v7  ;;  %330 = vmatpush.msra.mxu1 %v329_v18  ;;  %v351_v32 = vand.u32 4294901760, %v7470_v19  ;;  %v7488_v33 = vsub.f32 %v259_v11, %v7472_v20  ;;  %v7491_v34 = vsub.f32 %v257_v13, %v7474_v23  ;;  %v303_v60 = vsub.f32 %v7449_v6, %v7481_v27  ;;  %v7558_v11 = vpop.permute.xlu2 %129 }
  0x9b   :  { %388 = vmatpush.msra.mxu2 %v7389_v39  ;;  %424 = vmatpush.msra.mxu3 %v7451_v7  ;;  %v203_v36 = vpop.permute.xlu0 %202  ;;  %v7499_v40 = vpop.permute.xlu1 %6951  ;;  %v7534_v62 = vsub.f32 %v222_v26, %v7504_v43  ;;  %v582_v12 = vsub.f32 %v7510_v47, %v581_v1 }
  0x9c   :  { %v212_v44 = vsel %vm210_vm1, %v201_v54, %v203_v36  ;;  %297 = vmatmul.f32.vlgmr.msra.gmra.mxu0 %v7427_v56  ;;  %336 = vmatpush.msra.mxu1 %v335_v57  ;;  %v563_v55 = vand.u32 4294901760, %v7488_v33  ;;  %v569_v54 = vand.u32 4294901760, %v7491_v34  ;;  %v352_v4 = vsub.f32 %v7470_v19, %v351_v32 }
  0x9d   :  { %v220_v50 = vsel %vm7414_vm5, %v212_v44, 0.0  ;;  %451 = vmatpush.msrb.mxu0 %v321_v51  ;;  %391 = vmatpush.msra.mxu2 %v7470_v19  ;;  %v575_v57 = vand.u32 4294901760, %v7495_v35  ;;  %v587_v13 = vand.u32 4294901760, %v7534_v62  ;;  %v6953_v18 = vunpack.i.l.bf16 %v7499_v40 }
  0x9e   :  { %394 = vmatmul.f32.vlgmr.msra.gmra.mxu2 %v7363_v22  ;;  %428 = vmatmul.f32.vlgmr.msra.gmra.mxu3 %v7375_v29  ;;  %v7525_v51 = vand.u32 4294901760, %v220_v50  ;;  %v564_v61 = vsub.f32 %v7488_v33, %v563_v55  ;;  %v570_v2 = vsub.f32 %v7491_v34, %v569_v54  ;;  %v353_v8 = vand.u32 4294901760, %v352_v4 }
  0x9f   :  { %455 = vmatpush.msrb.mxu0 %v327_v52  ;;  %523 = vmatpush.msrb.mxu2 %v7472_v20  ;;  %v7540_v52 = vand.u32 4294901760, %v303_v60  ;;  %v576_v9 = vsub.f32 %v7495_v35, %v575_v57  ;;  %v6954_v36 = vunpack.i.h.bf16 %v7499_v40  ;;  %v583_v42 = vand.u32 4294901760, %v582_v12 }
  0xa0   :  { %342 = vmatpush.msra.mxu1 %v341_v3  ;;  %v565_v45 = vand.u32 4294901760, %v564_v61  ;;  %v7549_v10 = vsub.f32 %v220_v50, %v7525_v51  ;;  %v571_v41 = vand.u32 4294901760, %v570_v2  ;;  %v588_v39 = vsub.f32 %v7534_v62, %v587_v13 }
  0xa1   :  { %459 = vmatpush.msrb.mxu0 %v333_v30  ;;  %525 = vmatpush.msrb.mxu2 %v7474_v23 }
  0xa2   :  { %348 = vmatpush.msra.mxu1 %v347_v63  ;;  %566 = vmatpush.msrb.mxu3 %v565_v45  ;;  %v593_v26 = vand.u32 4294901760, %v7549_v10  ;;  %v155_v3 = vpop.permute.xlu2 %154 }
  0xa3   :  { %463 = vmatpush.msrb.mxu0 %v339_v59  ;;  %527 = vmatpush.msrb.mxu2 %v7446_v5  ;;  %v7554_v21 = vpop.permute.xlu0 %152  ;;  %v7556_v30 = vpop.permute.xlu1 %6956  ;;  %v577_v59 = vand.u32 4294901760, %v576_v9 }
  0xa4   :  { %354 = vmatpush.msra.mxu1 %v353_v8  ;;  %305 = vmatmul.f32.gmra.mxu0 %v7540_v52  ;;  %v594_v44 = vsub.f32 %v7549_v10, %v593_v26  ;;  %v163_v19 = vsel %vm162_vm7, %v6954_v36, %v7554_v21 }
  0xa5   :  { %356 = vmatmul.f32.vlgmr.msra.gmra.mxu1 %v7349_v16  ;;  %467 = vmatpush.msrb.mxu0 %v345_v53  ;;  %v171_v50 = vsel %vm7367_vm4, %v163_v19, 0.0 }
  0xa6   :  { %492 = vmatpush.msrb.mxu1 %v7384_v37  ;;  %529 = vmatpush.msrb.mxu2 %v7466_v14  ;;  %v165_v37 = vsel %vm162_vm7, %v6953_v18, %v7411_v46  ;;  %v595_v4 = vand.u32 4294901760, %v594_v44 }
  0xa7   :  { %572 = vmatpush.msrb.mxu3 %v571_v41  ;;  %399 = vmatmul.f32.gmra.mxu2 %v7449_v6 }
  0xa8   :  { %434 = vmatmul.f32.gmra.mxu3 %v7481_v27  ;;  %471 = vmatpush.msrb.mxu0 %v351_v32  ;;  %v173_v32 = vsel %vm7367_vm4, %v165_v37, 0.0  ;;  %v196_v37 = vld [vmem:[#allocation6] sm:$0xff] }
  0xa9   :  { %494 = vmatpush.msrb.mxu1 %v7386_v38  ;;  %531 = vmatpush.msrb.mxu2 %v7504_v43  ;;  %v589_v38 = vand.u32 4294901760, %v588_v39  ;;  %v7606_v61 = vand.u32 4294901760, %v173_v32 }
  0xaa   :  { %578 = vmatpush.msrb.mxu3 %v577_v59  ;;  %618 = vmatpush.msra.mxu0 %v7488_v33  ;;  %v7612_v33 = vand.u32 4294901760, %v171_v50 }
  0xab   :  { %496 = vmatpush.msrb.mxu1 %v7347_v15  ;;  %v7586_v53 = vpop.permute.xlu0 %177  ;;  %v6962_v40 = vpop.permute.xlu1 %6961  ;;  %533 = vmatpush.msrb.mxu2 %v7525_v51  ;;  %v6958_v15 = vunpack.i.l.bf16 %v7556_v30  ;;  %v7626_v45 = vsub.f32 %v173_v32, %v7606_v61 }
  0xac   :  { %584 = vmatpush.msrb.mxu3 %v583_v42  ;;  %621 = vmatpush.msra.mxu0 %v7491_v34  ;;  %v6963_v60 = vunpack.i.l.bf16 %v6962_v40 }
  0xad   :  { %693 = vmatpush.msra.mxu2 %v563_v55  ;;  %498 = vmatpush.msrb.mxu1 %v7372_v28  ;;  %v6959_v28 = vunpack.i.h.bf16 %v7556_v30  ;;  %v190_v34 = vsel %vm187_vm8, %v6958_v15, %v7484_v31  ;;  %v6964_v55 = vunpack.i.h.bf16 %v6962_v40  ;;  %v164_v30 = vsel %vm162_vm7, %v7554_v21, %v155_v3 }
  0xae   :  { %590 = vmatpush.msrb.mxu3 %v589_v38  ;;  %624 = vmatpush.msra.mxu0 %v7495_v35  ;;  %v7630_v35 = vand.u32 4294901760, %v190_v34  ;;  %v172_v18 = vsel %vm7430_vm6, %v164_v30, 0.0  ;;  %v755_v3 = vsel %vm263_vm0, %v196_v37, 0 }
  0xaf   :  { %697 = vmatpush.msra.mxu2 %v569_v54  ;;  %360 = vmatmul.f32.gmra.mxu1 %v7418_v49  ;;  %v136_v54 = vsel %vm133_vm9, %v6963_v60, %v7558_v11  ;;  %v7706_v40 = vand.u32 4294901760, %v172_v18 }
  0xb0   :  { %473 = vmatmul.f32.vlgmr.msrb.gmra.mxu0 %v7349_v16  ;;  %500 = vmatpush.msrb.mxu1 %v7365_v24 }
  0xb1   :  { %596 = vmatpush.msrb.mxu3 %v595_v4  ;;  %627 = vmatpush.msra.mxu0 %v7510_v47  ;;  %v132_v47 = vpop.permute.xlu2 %131 }
  0xb2   :  { %701 = vmatpush.msra.mxu2 %v575_v57  ;;  %502 = vmatpush.msrb.mxu1 %v7451_v7  ;;  %v188_v57 = vsel %vm187_vm8, %v6959_v28, %v7586_v53  ;;  %v7642_v7 = vsub.f32 %v171_v50, %v7612_v33  ;;  %v137_v36 = vsel %vm133_vm9, %v7558_v11, %v132_v47 }
  0xb3   :  { %539 = vmatmul.f32.vlgmr.msrb.gmra.mxu2 %v7427_v56  ;;  %v7623_v24 = vpop.permute.xlu0 %123  ;;  %v161_v63 = vpop.permute.xlu1 %160  ;;  %598 = vmatmul.f32.vlgmr.msrb.gmra.mxu3 %v7349_v16  ;;  %v144_v56 = vsel %vm7351_vm2, %v136_v54, 0.0  ;;  %v7649_v8 = vand.u32 4294901760, %v188_v57  ;;  %v145_v19 = vsel %vm7414_vm5, %v137_v36, 0.0  ;;  %v7738_v28 = vsub.f32 %v172_v18, %v7706_v40 }
  0xb4   :  { %630 = vmatpush.msra.mxu0 %v7534_v62  ;;  %734 = vmatpush.msra.mxu3 %v7472_v20  ;;  %v134_v2 = vsel %vm133_vm9, %v6964_v55, %v7623_v24  ;;  %v7661_v9 = vand.u32 4294901760, %v144_v56 }
  0xb5   :  { %656 = vmatpush.msra.mxu1 %v7472_v20  ;;  %705 = vmatpush.msra.mxu2 %v581_v1  ;;  %v811_v20 = vand.u32 4294901760, %v7626_v45  ;;  %v7659_v1 = vsub.f32 %v190_v34, %v7630_v35  ;;  %v142_v62 = vsel %vm7351_vm2, %v134_v2, 0.0  ;;  %v7740_v34 = vand.u32 4294901760, %v145_v19 }
  0xb6   :  { %633 = vmatpush.msra.mxu0 %v7549_v10  ;;  %736 = vmatpush.msra.mxu3 %v7474_v23  ;;  %v7677_v10 = vsub.f32 %v188_v57, %v7649_v8  ;;  %v7685_v41 = vand.u32 4294901760, %v142_v62  ;;  %v7690_v59 = vsub.f32 %v144_v56, %v7661_v9  ;;  %v7755_v56 = vand.u32 4294901760, %v755_v3 }
  0xb7   :  { %658 = vmatpush.msra.mxu1 %v7474_v23  ;;  %709 = vmatpush.msra.mxu2 %v587_v13  ;;  %v166_v23 = vsel %vm162_vm7, %v7411_v46, %v161_v63  ;;  %v812_v46 = vsub.f32 %v7626_v45, %v811_v20  ;;  %v7769_v30 = vsub.f32 %v145_v19, %v7740_v34 }
  0xb8   :  { %771 = vmatpush.msrb.mxu0 %v7606_v61  ;;  %738 = vmatpush.msra.mxu3 %v7446_v5  ;;  %v174_v13 = vsel %vm7430_vm6, %v166_v23, 0.0  ;;  %v829_v11 = vand.u32 4294901760, %v7677_v10  ;;  %v7712_v44 = vsub.f32 %v142_v62, %v7685_v41  ;;  %v197_v23 = vld [vmem:[#allocation6 + $0x8] sm:$0xff] }
  0xb9   :  { %660 = vmatpush.msra.mxu1 %v7446_v5  ;;  %713 = vmatpush.msra.mxu2 %v593_v26  ;;  %v817_v5 = vand.u32 4294901760, %v7642_v7  ;;  %v823_v26 = vand.u32 4294901760, %v7659_v1  ;;  %v7700_v39 = vand.u32 4294901760, %v174_v13  ;;  %v7726_v15 = vpop.permute.xlu2 %1277 }
  0xba   :  { %477 = vmatmul.f32.gmra.mxu0 %v7418_v49  ;;  %504 = vmatmul.f32.vlgmr.msrb.gmra.mxu1 %v7349_v16  ;;  %v830_v55 = vsub.f32 %v7677_v10, %v829_v11  ;;  %v841_v57 = vand.u32 4294901760, %v7712_v44 }
  0xbb   :  { %740 = vmatpush.msra.mxu3 %v7466_v14  ;;  %v186_v12 = vpop.permute.xlu0 %185  ;;  %v180_v21 = vpop.permute.xlu1 %179  ;;  %773 = vmatpush.msrb.mxu0 %v7612_v33  ;;  %v818_v42 = vsub.f32 %v7642_v7, %v817_v5  ;;  %v7730_v50 = vsub.f32 %v174_v13, %v7700_v39  ;;  %v7780_v13 = vsub.f32 %v755_v3, %v7755_v56 }
  0xbc   :  { %866 = vmatpush.msrb.mxu2 %v7626_v45  ;;  %662 = vmatpush.msra.mxu1 %v7466_v14  ;;  %v813_v14 = vand.u32 4294901760, %v812_v46  ;;  %v189_v60 = vsel %vm187_vm8, %v7586_v53, %v180_v21  ;;  %v831_v62 = vand.u32 4294901760, %v830_v55  ;;  %v1059_v21 = vand.u32 4294901760, %v7738_v28 }
  0xbd   :  { %547 = vmatmul.f32.gmra.mxu2 %v7540_v52  ;;  %602 = vmatmul.f32.gmra.mxu3 %v7418_v49  ;;  %v191_v52 = vsel %vm187_vm8, %v7484_v31, %v186_v12  ;;  %v824_v31 = vsub.f32 %v7659_v1, %v823_v26  ;;  %v819_v32 = vand.u32 4294901760, %v818_v42  ;;  %v7760_v47 = vand.u32 4294901760, %v189_v60 }
  0xbe   :  { %775 = vmatpush.msrb.mxu0 %v7630_v35  ;;  %742 = vmatpush.msra.mxu3 %v7504_v43  ;;  %v7724_v38 = vand.u32 4294901760, %v191_v52  ;;  %v842_v12 = vsub.f32 %v7712_v44, %v841_v57  ;;  %v7809_v37 = vand.u32 4294901760, %v7780_v13 }
  0xbf   :  { %869 = vmatpush.msrb.mxu2 %v7642_v7  ;;  %664 = vmatpush.msra.mxu1 %v7504_v43  ;;  %v835_v43 = vand.u32 4294901760, %v7690_v59  ;;  %v825_v53 = vand.u32 4294901760, %v824_v31  ;;  %v7783_v18 = vsub.f32 %v189_v60, %v7760_v47  ;;  %v1060_v7 = vsub.f32 %v7738_v28, %v1059_v21 }
  0xc0   :  { %777 = vmatpush.msrb.mxu0 %v7649_v8  ;;  %744 = vmatpush.msra.mxu3 %v7525_v51  ;;  %v7758_v2 = vsub.f32 %v191_v52, %v7724_v38  ;;  %v843_v52 = vand.u32 4294901760, %v842_v12 }
  0xc1   :  { %872 = vmatpush.msrb.mxu2 %v7659_v1  ;;  %666 = vmatpush.msra.mxu1 %v7525_v51  ;;  %v836_v63 = vsub.f32 %v7690_v59, %v835_v43  ;;  %v1071_v31 = vand.u32 4294901760, %v7783_v18  ;;  %v1061_v60 = vand.u32 4294901760, %v1060_v7 }
  0xc2   :  { %904 = vmatpush.msrb.mxu3 %v7606_v61  ;;  %779 = vmatpush.msrb.mxu0 %v7661_v9 }
  0xc3   :  { %814 = vmatpush.msrb.mxu1 %v813_v14  ;;  %v126_v4 = vpop.permute.xlu0 %125  ;;  %v7735_v51 = vpop.permute.xlu1 %1275  ;;  %875 = vmatpush.msrb.mxu2 %v7677_v10  ;;  %v837_v46 = vand.u32 4294901760, %v836_v63 }
  0xc4   :  { %906 = vmatpush.msrb.mxu3 %v7612_v33  ;;  %v135_v54 = vsel %vm133_vm9, %v7623_v24, %v126_v4  ;;  %508 = vmatmul.f32.gmra.mxu1 %v7418_v49  ;;  %v1053_v24 = vand.u32 4294901760, %v7730_v50  ;;  %v785_v4 = vsub.f32 %v7780_v13, %v7809_v37 }
  0xc5   :  { %636 = vmatmul.f32.vlgmr.msra.gmra.mxu0 %v7363_v22  ;;  %820 = vmatpush.msrb.mxu1 %v819_v32  ;;  %v143_v22 = vsel %vm7414_vm5, %v135_v54, 0.0  ;;  %v1077_v32 = vand.u32 4294901760, %v7769_v30 }
  0xc6   :  { %781 = vmatpush.msrb.mxu0 %v7685_v41  ;;  %878 = vmatpush.msrb.mxu2 %v7690_v59  ;;  %v7787_v45 = vand.u32 4294901760, %v143_v22  ;;  %v1054_v36 = vsub.f32 %v7730_v50, %v1053_v24 }
  0xc7   :  { %908 = vmatpush.msrb.mxu3 %v7630_v35  ;;  %715 = vmatmul.f32.vlgmr.msra.gmra.mxu2 %v7349_v16 }
  0xc8   :  { %941 = vmatpush.msra.mxu0 %v811_v20  ;;  %746 = vmatmul.f32.vlgmr.msra.gmra.mxu3 %v7349_v16  ;;  %v1065_v16 = vand.u32 4294901760, %v7758_v2  ;;  %v758_v20 = vsel %vm263_vm0, %v197_v23, 0  ;;  %v7815_v1 = vsub.f32 %v143_v22, %v7787_v45  ;;  %v1055_v3 = vand.u32 4294901760, %v1054_v36 }
  0xc9   :  { %826 = vmatpush.msrb.mxu1 %v825_v53  ;;  %881 = vmatpush.msrb.mxu2 %v7712_v44  ;;  %v7811_v19 = vand.u32 4294901760, %v758_v20  ;;  %v7849_v53 = vand.u32 4294901760, %v785_v4 }
  0xca   :  { %910 = vmatpush.msrb.mxu3 %v7649_v8  ;;  %945 = vmatpush.msra.mxu0 %v817_v5  ;;  %v7806_v5 = vpop.permute.xlu2 %1300 }
  0xcb   :  { %1013 = vmatpush.msra.mxu2 %v7700_v39  ;;  %v1270_v42 = vpop.permute.xlu0 %1269  ;;  %v7797_v14 = vpop.permute.xlu1 %1271  ;;  %832 = vmatpush.msrb.mxu1 %v831_v62  ;;  %v7830_v55 = vsub.f32 %v758_v20, %v7811_v19 }
  0xcc   :  { %912 = vmatpush.msrb.mxu3 %v7661_v9  ;;  %949 = vmatpush.msra.mxu0 %v823_v26  ;;  %v1066_v26 = vsub.f32 %v7758_v2, %v1065_v16 }
  0xcd   :  { %1015 = vmatpush.msra.mxu2 %v7706_v40  ;;  %838 = vmatpush.msrb.mxu1 %v837_v46  ;;  %v7852_v63 = vand.u32 4294901760, %v7830_v55 }
  0xce   :  { %914 = vmatpush.msrb.mxu3 %v7685_v41  ;;  %953 = vmatpush.msra.mxu0 %v829_v11  ;;  %v1067_v10 = vand.u32 4294901760, %v1066_v26  ;;  %v1083_v11 = vand.u32 4294901760, %v7815_v1 }
  0xcf   :  { %1017 = vmatpush.msra.mxu2 %v7724_v38  ;;  %641 = vmatmul.f32.gmra.mxu0 %v7449_v6  ;;  %v1072_v6 = vsub.f32 %v7783_v18, %v1071_v31  ;;  %v793_v44 = vsub.f32 %v7830_v55, %v7852_v63 }
  0xd0   :  { %670 = vmatmul.f32.vlgmr.msra.gmra.mxu1 %v7375_v29  ;;  %1056 = vmatpush.msra.mxu3 %v1055_v3  ;;  %v1078_v29 = vsub.f32 %v7769_v30, %v1077_v32  ;;  %v1084_v59 = vsub.f32 %v7815_v1, %v1083_v11 }
  0xd1   :  { %844 = vmatpush.msrb.mxu1 %v843_v52  ;;  %1019 = vmatpush.msra.mxu2 %v7760_v47  ;;  %v7885_v23 = vand.u32 4294901760, %v793_v44 }
  0xd2   :  { %719 = vmatmul.f32.gmra.mxu2 %v7418_v49  ;;  %750 = vmatmul.f32.gmra.mxu3 %v7418_v49  ;;  %v1073_v49 = vand.u32 4294901760, %v1072_v6  ;;  %v1079_v22 = vand.u32 4294901760, %v1078_v29 }
  0xd3   :  { %982 = vmatpush.msra.mxu1 %v7606_v61  ;;  %v7843_v54 = vpop.permute.xlu0 %1302  ;;  %v1295_v61 = vpop.permute.xlu1 %1294  ;;  %1062 = vmatpush.msra.mxu3 %v1061_v60 }
  0xd4   :  { %957 = vmatpush.msra.mxu0 %v835_v43  ;;  %1021 = vmatpush.msra.mxu2 %v7740_v34  ;;  %v1284_v43 = vsel %vm1281_vm10, %v7735_v51, %v7726_v15 }
  0xd5   :  { %984 = vmatpush.msra.mxu1 %v7612_v33  ;;  %1068 = vmatpush.msra.mxu3 %v1067_v10  ;;  %v7861_v33 = vpop.permute.xlu2 %1296  ;;  %v1292_v51 = vsel %vm7367_vm4, %v1284_v43, 0.0 }
  0xd6   :  { %961 = vmatpush.msra.mxu0 %v841_v57  ;;  %1023 = vmatpush.msra.mxu2 %v7787_v45  ;;  %v1282_v57 = vsel %vm1281_vm10, %v1270_v42, %v7797_v14  ;;  %v1307_v46 = vsel %vm1306_vm11, %v1295_v61, %v7861_v33 }
  0xd7   :  { %986 = vmatpush.msra.mxu1 %v7630_v35  ;;  %1074 = vmatpush.msra.mxu3 %v1073_v49  ;;  %v1085_v35 = vand.u32 4294901760, %v1084_v59  ;;  %v7931_v36 = vand.u32 4294901760, %v1307_v46  ;;  %v1316_v59 = vld [vmem:[#allocation6 + $0x20] sm:$0xff] }
  0xd8   :  { %676 = vmatmul.f32.gmra.mxu1 %v7481_v27  ;;  %787 = vmatmul.f32.vlgmr.msrb.gmra.mxu0 %v7849_v53 }
  0xd9   :  { %988 = vmatpush.msra.mxu1 %v7649_v8  ;;  %1080 = vmatpush.msra.mxu3 %v1079_v22 }
  0xda   :  { %1108 = vmatpush.msrb.mxu0 %v7730_v50  ;;  %884 = vmatmul.f32.vlgmr.msrb.gmra.mxu2 %v7780_v13  ;;  %v1309_v50 = vsel %vm1306_vm11, %v7806_v5, %v7843_v54  ;;  %v7951_v5 = vsub.f32 %v1307_v46, %v7931_v36 }
  0xdb   :  { %990 = vmatpush.msra.mxu1 %v7661_v9  ;;  %v1251_v27 = vpop.permute.xlu0 %1250  ;;  %v7876_v8 = vpop.permute.xlu1 %1252  ;;  %918 = vmatmul.f32.vlgmr.msrb.gmra.mxu3 %v7809_v37  ;;  %v1290_v9 = vsel %vm7367_vm4, %v1282_v57, 0.0  ;;  %v7905_v62 = vand.u32 4294901760, %v1309_v50 }
  0xdc   :  { %1111 = vmatpush.msrb.mxu0 %v7738_v28  ;;  %1183 = vmatpush.msrb.mxu2 %v1053_v24  ;;  %v7896_v24 = vand.u32 4294901760, %v1292_v51  ;;  %v1393_v61 = vand.u32 4294901760, %v7951_v5 }
  0xdd   :  { %992 = vmatpush.msra.mxu1 %v7685_v41  ;;  %1086 = vmatpush.msra.mxu3 %v1085_v35  ;;  %v7900_v41 = vand.u32 4294901760, %v1290_v9  ;;  %v1245_v28 = vpop.permute.xlu2 %1244  ;;  %v7929_v20 = vsub.f32 %v1309_v50, %v7905_v62 }
  0xde   :  { %1114 = vmatpush.msrb.mxu0 %v7758_v2  ;;  %1187 = vmatpush.msrb.mxu2 %v1059_v21  ;;  %v7917_v21 = vsub.f32 %v1292_v51, %v7896_v24 }
  0xdf   :  { %1224 = vmatpush.msrb.mxu3 %v7700_v39  ;;  %v1387_v26 = vand.u32 4294901760, %v7929_v20 }
  0xe0   :  { %1117 = vmatpush.msrb.mxu0 %v7783_v18  ;;  %846 = vmatmul.f32.vlgmr.msrb.gmra.mxu1 %v7755_v56  ;;  %v1259_v18 = vsel %vm1256_vm12, %v1251_v27, %v7876_v8 }
  0xe1   :  { %1191 = vmatpush.msrb.mxu2 %v1065_v16  ;;  %795 = vmatmul.f32.gmra.mxu0 %v7885_v23  ;;  %v7922_v16 = vsub.f32 %v1290_v9, %v7900_v41  ;;  %v1267_v52 = vsel %vm7351_vm2, %v1259_v18, 0.0 }
  0xe2   :  { %1120 = vmatpush.msrb.mxu0 %v7769_v30  ;;  %1146 = vmatpush.msrb.mxu1 %v7700_v39 }
  0xe3   :  { %1195 = vmatpush.msrb.mxu2 %v1071_v31  ;;  %1226 = vmatpush.msrb.mxu3 %v7706_v40  ;;  %v7914_v2 = vpop.permute.xlu0 %1246  ;;  %v6967_v12 = vpop.permute.xlu1 %6966  ;;  %v1381_v7 = vand.u32 4294901760, %v7922_v16 }
  0xe4   :  { %889 = vmatmul.f32.gmra.mxu2 %v7830_v55  ;;  %924 = vmatmul.f32.gmra.mxu3 %v7852_v63  ;;  %v6968_v39 = vunpack.i.l.bf16 %v6967_v12  ;;  %v1257_v42 = vsel %vm1256_vm12, %v1245_v28, %v7914_v2  ;;  %v1319_v28 = vsel %vm263_vm0, %v1316_v59, 0 }
  0xe5   :  { %1123 = vmatpush.msrb.mxu0 %v7815_v1  ;;  %1148 = vmatpush.msrb.mxu1 %v7706_v40  ;;  %v1375_v40 = vand.u32 4294901760, %v7917_v21  ;;  %v1265_v1 = vsel %vm7351_vm2, %v1257_v42, 0.0  ;;  %v1382_v10 = vsub.f32 %v7922_v16, %v1381_v7  ;;  %v8034_v42 = vand.u32 4294901760, %v1319_v28 }
  0xe6   :  { %1199 = vmatpush.msrb.mxu2 %v1077_v32  ;;  %1228 = vmatpush.msrb.mxu3 %v7724_v38  ;;  %v1285_v30 = vsel %vm1281_vm10, %v7726_v15, %v6968_v39  ;;  %v7958_v15 = vand.u32 4294901760, %v1267_v52 }
  0xe7   :  { %1150 = vmatpush.msrb.mxu1 %v7724_v38  ;;  %v6969_v38 = vunpack.i.h.bf16 %v6967_v12  ;;  %v1293_v31 = vsel %vm7430_vm6, %v1285_v30, 0.0  ;;  %v1376_v60 = vsub.f32 %v7917_v21, %v1375_v40  ;;  %v1383_v35 = vand.u32 4294901760, %v1382_v10 }
  0xe8   :  { %1203 = vmatpush.msrb.mxu2 %v1083_v11  ;;  %1230 = vmatpush.msrb.mxu3 %v7760_v47  ;;  %v1388_v11 = vsub.f32 %v7929_v20, %v1387_v26 }
  0xe9   :  { %1152 = vmatpush.msrb.mxu1 %v7760_v47  ;;  %963 = vmatmul.f32.vlgmr.msra.gmra.mxu0 %v7755_v56  ;;  %v6972_v47 = vpop.permute.xlu2 %6971  ;;  %v1283_v4 = vsel %vm1281_vm10, %v7797_v14, %v6969_v38  ;;  %v7987_v14 = vsub.f32 %v1267_v52, %v7958_v15  ;;  %v1377_v22 = vand.u32 4294901760, %v1376_v60 }
  0xea   :  { %1232 = vmatpush.msrb.mxu3 %v7740_v34  ;;  %850 = vmatmul.f32.gmra.mxu1 %v7811_v19  ;;  %v6974_v3 = vunpack.i.h.bf16 %v6972_v47  ;;  %v6973_v29 = vunpack.i.l.bf16 %v6972_v47  ;;  %v1291_v49 = vsel %vm7430_vm6, %v1283_v4, 0.0  ;;  %v1389_v51 = vand.u32 4294901760, %v1388_v11  ;;  %v1317_v47 = vld [vmem:[#allocation6 + $0x28] sm:$0xff] }
  0xeb   :  { %1154 = vmatpush.msrb.mxu1 %v7740_v34  ;;  %1335 = vmatpush.msra.mxu0 %v7896_v24  ;;  %v6977_v32 = vpop.permute.xlu0 %6976  ;;  %v7971_v34 = vand.u32 4294901760, %v1265_v1  ;;  %v8015_v50 = vand.u32 4294901760, %v1291_v49  ;;  %v8067_v4 = vsub.f32 %v1319_v28, %v8034_v42  ;;  %v1322_v11 = vsel %vm263_vm0, %v1317_v47, 0 }
  0xec   :  { %1234 = vmatpush.msrb.mxu3 %v7787_v45  ;;  %1029 = vmatmul.f32.vlgmr.msra.gmra.mxu2 %v7849_v53  ;;  %v6978_v6 = vunpack.i.l.bf16 %v6977_v32  ;;  %v6979_v53 = vunpack.i.h.bf16 %v6977_v32  ;;  %v1308_v44 = vsel %vm1306_vm11, %v7861_v33, %v6974_v3  ;;  %v1310_v27 = vsel %vm1306_vm11, %v7843_v54, %v6973_v29 }
  0xed   :  { %1088 = vmatmul.f32.vlgmr.msra.gmra.mxu3 %v7755_v56  ;;  %1156 = vmatpush.msrb.mxu1 %v7787_v45  ;;  %v7983_v45 = vand.u32 4294901760, %v1293_v31  ;;  %v7997_v43 = vsub.f32 %v1265_v1, %v7971_v34  ;;  %v1394_v33 = vsub.f32 %v7951_v5, %v1393_v61  ;;  %v1399_v54 = vand.u32 4294901760, %v7987_v14 }
  0xee   :  { %1430 = vmatpush.msra.mxu2 %v7917_v21  ;;  %1468 = vmatpush.msra.mxu3 %v7896_v24  ;;  %v1260_v57 = vsel %vm1256_vm12, %v7876_v8, %v6978_v6  ;;  %v1258_v8 = vsel %vm1256_vm12, %v7914_v2, %v6979_v53  ;;  %v8023_v12 = vand.u32 4294901760, %v1310_v27  ;;  %v8027_v39 = vand.u32 4294901760, %v1308_v44 }
  0xef   :  { %1337 = vmatpush.msra.mxu0 %v7900_v41  ;;  %v8010_v9 = vsub.f32 %v1293_v31, %v7983_v45  ;;  %v1268_v46 = vsel %vm7414_vm5, %v1260_v57, 0.0  ;;  %v1405_v2 = vand.u32 4294901760, %v7997_v43  ;;  %v1395_v52 = vand.u32 4294901760, %v1394_v33 }
  0xf0   :  { %1433 = vmatpush.msra.mxu2 %v7922_v16  ;;  %1470 = vmatpush.msra.mxu3 %v7900_v41  ;;  %v1400_v30 = vsub.f32 %v7987_v14, %v1399_v54  ;;  %v8041_v38 = vsub.f32 %v1291_v49, %v8015_v50  ;;  %v8043_v1 = vand.u32 4294901760, %v1268_v46  ;;  %v8048_v31 = vsub.f32 %v1310_v27, %v8023_v12 }
  0xf1   :  { %967 = vmatmul.f32.gmra.mxu0 %v7811_v19  ;;  %v1617_v18 = vand.u32 4294901760, %v8010_v9  ;;  %v1406_v32 = vsub.f32 %v7997_v43, %v1405_v2  ;;  %v8058_v60 = vsub.f32 %v1308_v44, %v8027_v39  ;;  %v8090_v16 = vand.u32 4294901760, %v1322_v11 }
  0xf2   :  { %994 = vmatmul.f32.vlgmr.msra.gmra.mxu1 %v7755_v56  ;;  %1339 = vmatpush.msra.mxu0 %v7905_v62  ;;  %v1401_v10 = vand.u32 4294901760, %v1400_v30  ;;  %v1623_v6 = vand.u32 4294901760, %v8041_v38  ;;  %v8072_v29 = vsub.f32 %v1268_v46, %v8043_v1 }
  0xf3   :  { %1378 = vmatpush.msra.mxu1 %v1377_v22  ;;  %1436 = vmatpush.msra.mxu2 %v7929_v20  ;;  %v1407_v21 = vand.u32 4294901760, %v1406_v32  ;;  %v8088_v22 = vand.u32 4294901760, %v8067_v4 }
  0xf4   :  { %1037 = vmatmul.f32.gmra.mxu2 %v7885_v23  ;;  %1341 = vmatpush.msra.mxu0 %v7931_v36  ;;  %v1266_v23 = vsel %vm7414_vm5, %v1258_v8, 0.0  ;;  %v1641_v59 = vand.u32 4294901760, %v8072_v29 }
  0xf5   :  { %1092 = vmatmul.f32.gmra.mxu3 %v7811_v19  ;;  %1384 = vmatpush.msra.mxu1 %v1383_v35  ;;  %v8055_v3 = vand.u32 4294901760, %v1266_v23  ;;  %v1349_v44 = vsub.f32 %v8067_v4, %v8088_v22  ;;  %v8110_v35 = vsub.f32 %v1322_v11, %v8090_v16 }
  0xf6   :  { %1343 = vmatpush.msra.mxu0 %v7958_v15  ;;  %1439 = vmatpush.msra.mxu2 %v7951_v5  ;;  %v1642_v57 = vsub.f32 %v8072_v29, %v1641_v59 }
  0xf7   :  { %1472 = vmatpush.msra.mxu3 %v7905_v62  ;;  %1390 = vmatpush.msra.mxu1 %v1389_v51  ;;  %v8082_v53 = vsub.f32 %v1266_v23, %v8055_v3  ;;  %v1350_v27 = vand.u32 4294901760, %v1349_v44  ;;  %v8126_v51 = vand.u32 4294901760, %v8110_v35 }
  0xf8   :  { %1345 = vmatpush.msra.mxu0 %v7971_v34  ;;  %1442 = vmatpush.msra.mxu2 %v7987_v14  ;;  %v1643_v14 = vand.u32 4294901760, %v1642_v57 }
  0xf9   :  { %1126 = vmatmul.f32.vlgmr.msrb.gmra.mxu0 %v7780_v13  ;;  %1474 = vmatpush.msra.mxu3 %v7931_v36  ;;  %v1618_v13 = vsub.f32 %v8010_v9, %v1617_v18 }
  0xfa   :  { %998 = vmatmul.f32.gmra.mxu1 %v7811_v19  ;;  %1505 = vmatpush.msrb.mxu0 %v1375_v40  ;;  %v1629_v40 = vand.u32 4294901760, %v8048_v31 }
  0xfb   :  { %1445 = vmatpush.msra.mxu2 %v7997_v43  ;;  %1396 = vmatpush.msra.mxu1 %v1395_v52  ;;  %v1619_v49 = vand.u32 4294901760, %v1618_v13 }
  0xfc   :  { %1205 = vmatmul.f32.vlgmr.msrb.gmra.mxu2 %v7755_v56  ;;  %1509 = vmatpush.msrb.mxu0 %v1381_v7  ;;  %v1635_v7 = vand.u32 4294901760, %v8058_v60  ;;  %v1630_v20 = vsub.f32 %v8048_v31, %v1629_v40 }
  0xfd   :  { %1236 = vmatmul.f32.vlgmr.msrb.gmra.mxu3 %v7755_v56  ;;  %1577 = vmatpush.msrb.mxu2 %v7983_v45  ;;  %v1624_v56 = vsub.f32 %v8041_v38, %v1623_v6 }
  0xfe   :  { %1476 = vmatpush.msra.mxu3 %v7958_v15  ;;  %1513 = vmatpush.msrb.mxu0 %v1387_v26  ;;  %v1647_v26 = vand.u32 4294901760, %v8082_v53 }
  0xff   :  { %1579 = vmatpush.msrb.mxu2 %v8015_v50  ;;  %1402 = vmatpush.msra.mxu1 %v1401_v10  ;;  %v1625_v5 = vand.u32 4294901760, %v1624_v56 }
 0x100   :  { %1478 = vmatpush.msra.mxu3 %v7971_v34  ;;  %1517 = vmatpush.msrb.mxu0 %v1393_v61  ;;  %v1636_v61 = vsub.f32 %v8058_v60, %v1635_v7 }
 0x101   :  { %1581 = vmatpush.msrb.mxu2 %v8023_v12  ;;  %1408 = vmatpush.msra.mxu1 %v1407_v21 }
 0x102   :  { %1620 = vmatpush.msrb.mxu3 %v1619_v49  ;;  %1131 = vmatmul.f32.gmra.mxu0 %v7830_v55  ;;  %v1631_v55 = vand.u32 4294901760, %v1630_v20 }
 0x103   :  { %1160 = vmatmul.f32.vlgmr.msrb.gmra.mxu1 %v7809_v37  ;;  %1583 = vmatpush.msrb.mxu2 %v8027_v39  ;;  %v1648_v37 = vsub.f32 %v8082_v53, %v1647_v26 }
 0x104   :  { %1546 = vmatpush.msrb.mxu1 %v7896_v24  ;;  %1521 = vmatpush.msrb.mxu0 %v1399_v54  ;;  %v1637_v24 = vand.u32 4294901760, %v1636_v61 }
 0x105   :  { %1626 = vmatpush.msrb.mxu3 %v1625_v5  ;;  %1209 = vmatmul.f32.gmra.mxu2 %v7811_v19 }
 0x106   :  { %1240 = vmatmul.f32.gmra.mxu3 %v7811_v19  ;;  %1548 = vmatpush.msrb.mxu1 %v7900_v41  ;;  %v1649_v19 = vand.u32 4294901760, %v1648_v37  ;;  %v1357_v41 = vsub.f32 %v8110_v35, %v8126_v51 }
 0x107   :  { %1585 = vmatpush.msrb.mxu2 %v8043_v1  ;;  %1632 = vmatpush.msrb.mxu3 %v1631_v55 }
 0x108   :  { %1550 = vmatpush.msrb.mxu1 %v7905_v62  ;;  %1525 = vmatpush.msrb.mxu0 %v1405_v2  ;;  %v1358_v62 = vand.u32 4294901760, %v1357_v41 }
 0x109   :  { %1638 = vmatpush.msrb.mxu3 %v1637_v24  ;;  %1587 = vmatpush.msrb.mxu2 %v8055_v3 }
 0x10a   :  { %1552 = vmatpush.msrb.mxu1 %v7931_v36  ;;  %1351 = vmatmul.f32.vlgmr.msra.gmra.mxu0 %v1350_v27 }
 0x10b   :  { %1644 = vmatpush.msrb.mxu3 %v1643_v14  ;;  %1166 = vmatmul.f32.gmra.mxu1 %v7852_v63 }
 0x10c   :  { %1554 = vmatpush.msrb.mxu1 %v7958_v15  ;;  %1672 = vmatpush.msra.mxu0 %v8010_v9 }
 0x10d   :  { %1650 = vmatpush.msrb.mxu3 %v1649_v19  ;;  %1448 = vmatmul.f32.vlgmr.msra.gmra.mxu2 %v8067_v4 }
 0x10e   :  { %1482 = vmatmul.f32.vlgmr.msra.gmra.mxu3 %v8088_v22  ;;  %1556 = vmatpush.msrb.mxu1 %v7971_v34 }
 0x10f   :  { %1675 = vmatpush.msra.mxu0 %v8041_v38  ;;  %1747 = vmatpush.msra.mxu2 %v1617_v18 }
 0x110   :  { %1788 = vmatpush.msra.mxu3 %v7983_v45 }
 0x111   :  { %1678 = vmatpush.msra.mxu0 %v8048_v31  ;;  %1751 = vmatpush.msra.mxu2 %v1623_v6 }
 0x112   :  { %1790 = vmatpush.msra.mxu3 %v8015_v50  ;;  %1359 = vmatmul.f32.gmra.mxu0 %v1358_v62 }
 0x113   :  { %1681 = vmatpush.msra.mxu0 %v8058_v60  ;;  %1755 = vmatpush.msra.mxu2 %v1629_v40 }
 0x114   :  { %1792 = vmatpush.msra.mxu3 %v8023_v12  ;;  %1410 = vmatmul.f32.vlgmr.msra.gmra.mxu1 %v8034_v42 }
 0x115   :  { %1684 = vmatpush.msra.mxu0 %v8072_v29  ;;  %1710 = vmatpush.msra.mxu1 %v7983_v45 }
 0x116   :  { %1759 = vmatpush.msra.mxu2 %v1635_v7  ;;  %1794 = vmatpush.msra.mxu3 %v8027_v39 }
 0x117   :  { %1687 = vmatpush.msra.mxu0 %v8082_v53  ;;  %1712 = vmatpush.msra.mxu1 %v8015_v50 }
 0x118   :  { %1763 = vmatpush.msra.mxu2 %v1641_v59  ;;  %1796 = vmatpush.msra.mxu3 %v8043_v1 }
 0x119   :  { %1453 = vmatmul.f32.gmra.mxu2 %v8110_v35  ;;  %1488 = vmatmul.f32.gmra.mxu3 %v8126_v51  ;;  %v8168_v63 = vpop.f32.mrf.mxu0 }
 0x11a   :  { %1714 = vmatpush.msra.mxu1 %v8023_v12  ;;  %1767 = vmatpush.msra.mxu2 %v1647_v26 }
 0x11b   :  { %1798 = vmatpush.msra.mxu3 %v8055_v3  ;;  %1527 = vmatmul.f32.vlgmr.msrb.gmra.mxu0 %v8034_v42 }
 0x11c   :  { %1716 = vmatpush.msra.mxu1 %v8027_v39 }
 0x11d   :  { %1414 = vmatmul.f32.gmra.mxu1 %v8090_v16 }
 0x11e   :  { %1718 = vmatpush.msra.mxu1 %v8043_v1 }
 0x120   :  { %1720 = vmatpush.msra.mxu1 %v8055_v3 }
 0x121   :  { %1593 = vmatmul.f32.vlgmr.msrb.gmra.mxu2 %v1350_v27  ;;  %1652 = vmatmul.f32.vlgmr.msrb.gmra.mxu3 %v8034_v42  ;;  %v395_v36 = vpop.f32.mrf.mxu2  ;;  %v429_v15 = vpop.f32.mrf.mxu3 }
 0x122   :  { %v306_v34 = vpop.f32.mrf.mxu0  ;;  %v357_v45 = vpop.f32.mrf.mxu1 }
 0x123   :  { %1531 = vmatmul.f32.gmra.mxu0 %v8090_v16  ;;  %v358_v44 = vadd.f32 %v357_v45, %v8168_v63 }
 0x125   :  { %1558 = vmatmul.f32.vlgmr.msrb.gmra.mxu1 %v8034_v42  ;;  %v396_v55 = vadd.f32 %v395_v36, %v358_v44 }
 0x127   :  { %v430_v37 = vadd.f32 %v429_v15, %v396_v55 }
 0x129   :  { %1601 = vmatmul.f32.gmra.mxu2 %v1358_v62  ;;  %1656 = vmatmul.f32.gmra.mxu3 %v8090_v16 }
 0x12a   :  { %v400_v43 = vpop.f32.mrf.mxu2 }
 0x12b   :  { %1690 = vmatmul.f32.vlgmr.msra.gmra.mxu0 %v8067_v4  ;;  %v435_v33 = vpop.f32.mrf.mxu3 }
 0x12c   :  { %v361_v9 = vpop.f32.mrf.mxu1 }
 0x12d   :  { %1562 = vmatmul.f32.gmra.mxu1 %v8090_v16  ;;  %v474_v8 = vpop.f32.mrf.mxu0  ;;  %v362_v27 = vadd.f32 %v361_v9, %v306_v34 }
 0x12e   :  { %v475_v24 = vadd.f32 %v474_v8, %v430_v37 }
 0x12f   :  { %v401_v62 = vadd.f32 %v400_v43, %v362_v27 }
 0x131   :  { %1769 = vmatmul.f32.vlgmr.msra.gmra.mxu2 %v8034_v42  ;;  %1800 = vmatmul.f32.vlgmr.msra.gmra.mxu3 %v8034_v42  ;;  %v436_v58 = vadd.f32 %v435_v33, %v401_v62 }
 0x133   :  { %1695 = vmatmul.f32.gmra.mxu0 %v8110_v35 }
 0x135   :  { %1724 = vmatmul.f32.vlgmr.msra.gmra.mxu1 %v8088_v22 }
 0x136   :  { %v540_v50 = vpop.f32.mrf.mxu2  ;;  %v599_v54 = vpop.f32.mrf.mxu3 }
 0x137   :  { %v478_v28 = vpop.f32.mrf.mxu0  ;;  %v505_v46 = vpop.f32.mrf.mxu1 }
 0x138   :  { %v506_v0 = vadd.f32 %v505_v46, %v475_v24  ;;  %v479_v25 = vadd.f32 %v478_v28, %v436_v58 }
 0x139   :  { %1773 = vmatmul.f32.gmra.mxu2 %v8090_v16  ;;  %1804 = vmatmul.f32.gmra.mxu3 %v8090_v16 }
 0x13d   :  { %1730 = vmatmul.f32.gmra.mxu1 %v8126_v51 }
 0x140   :  { %v8187_v12 = vpop.f32.mrf.mxu2  ;;  %v8189_v2 = vpop.f32.mrf.mxu3 }
 0x141   :  { %v509_v39 = vpop.f32.mrf.mxu1 }
 0x142   :  { %v637_v23 = vpop.f32.mrf.mxu0 }
 0x14a   :  { %v8191_v18 = vpop.f32.mrf.mxu2 }
 0x14b   :  { %v8193_v42 = vpop.f32.mrf.mxu3 }
 0x14c   :  { %v8195_v52 = vpop.f32.mrf.mxu0 }
 0x14d   :  { %v671_v30 = vpop.f32.mrf.mxu1 }
 0x155   :  { %v8197_v38 = vpop.f32.mrf.mxu1  ;;  %v8199_v1 = vpop.f32.mrf.mxu2 }
 0x156   :  { %v788_v47 = vpop.f32.mrf.mxu0  ;;  %v8201_v31 = vpop.f32.mrf.mxu3 }
 0x157   :  { %v789_v48 = vadd.f32 %v788_v47, %v506_v0  ;;  %v604_v0 = vadd.f32 %v8189_v2, %v8187_v12 }
 0x15d   :  { %v847_v32 = vpop.f32.mrf.mxu1  ;;  %v885_v60 = vpop.f32.mrf.mxu2 }
 0x15e   :  { %v796_v3 = vpop.f32.mrf.mxu0  ;;  %v919_v13 = vpop.f32.mrf.mxu3  ;;  %v848_v63 = vadd.f32 %v847_v32, %v789_v48 }
 0x160   :  { %v886_v36 = vadd.f32 %v885_v60, %v848_v63 }
 0x162   :  { %v920_v55 = vadd.f32 %v919_v13, %v886_v36 }
 0x166   :  { %v964_v4 = vpop.f32.mrf.mxu0 }
 0x167   :  { %v851_v10 = vpop.f32.mrf.mxu1  ;;  %v890_v6 = vpop.f32.mrf.mxu2  ;;  %v965_v58 = vadd.f32 %v964_v4, %v920_v55 }
 0x168   :  { %v8203_v29 = vpop.f32.mrf.mxu3 }
 0x16e   :  { %v8205_v11 = vpop.f32.mrf.mxu0 }
 0x16f   :  { %v995_v21 = vpop.f32.mrf.mxu1  ;;  %v1030_v40 = vpop.f32.mrf.mxu2 }
 0x170   :  { %v8207_v53 = vpop.f32.mrf.mxu3 }
 0x176   :  { %v8209_v49 = vpop.f32.mrf.mxu0 }
 0x177   :  { %v8211_v22 = vpop.f32.mrf.mxu1  ;;  %v8213_v16 = vpop.f32.mrf.mxu2 }
 0x178   :  { %v8215_v56 = vpop.f32.mrf.mxu3 }
 0x17f   :  { %v8217_v7 = vpop.f32.mrf.mxu0  ;;  %v8219_v59 = vpop.f32.mrf.mxu2 }
 0x180   :  { %v8221_v20 = vpop.f32.mrf.mxu1  ;;  %v8223_v26 = vpop.f32.mrf.mxu3 }
 0x181   :  { %11305 = vst [vmem:[#allocation17_spill] sm:$0xff] %v8223_v26  ;;  %v510_v26 = vadd.f32 %v509_v39, %v479_v25  ;;  %v643_v25 = vadd.f32 %v8195_v52, %v604_v0  ;;  %v996_v39 = vadd.f32 %v995_v21, %v965_v58  ;;  %v11313_v0 = vmov 0.0  }
 0x183   :  { %v797_v44 = vadd.f32 %v796_v3, %v510_v26  ;;  %v678_v60 = vadd.f32 %v8197_v38, %v643_v25 }
 0x185   :  { %v852_v37 = vadd.f32 %v851_v10, %v797_v44 }
 0x187   :  { %v1352_v35 = vpop.f32.mrf.mxu0  ;;  %v891_v28 = vadd.f32 %v890_v6, %v852_v37 }
 0x188   :  { %v8226_v5 = vpop.f32.mrf.mxu1  ;;  %v8228_v61 = vpop.f32.mrf.mxu2 }
 0x189   :  { %11306 = vst [vmem:[#allocation18_spill] sm:$0xff] %v8226_v5  ;;  %v8230_v57 = vpop.f32.mrf.mxu3  ;;  %v600_v5 = vadd.f32 %v599_v54, %v540_v50  ;;  %v926_v12 = vadd.f32 %v8203_v29, %v891_v28 }
 0x18a   :  { %11307 = vst [vmem:[#allocation19_spill] sm:$0xff] %v8228_v61 }
 0x18b   :  { %11308 = vst [vmem:[#allocation20_spill] sm:$0xff] %v8230_v57  ;;  %v638_v57 = vadd.f32 %v637_v23, %v600_v5  ;;  %v969_v52 = vadd.f32 %v8205_v11, %v926_v12 }
 0x18d   :  { %v672_v8 = vadd.f32 %v671_v30, %v638_v57 }
 0x18f   :  { %v1360_v51 = vpop.f32.mrf.mxu0  ;;  %v717_v48 = vadd.f32 %v8191_v18, %v672_v8  ;;  %v721_v18 = vadd.f32 %v8199_v1, %v678_v60 }
 0x190   :  { %v1449_v19 = vpop.f32.mrf.mxu2 }
 0x191   :  { %v1411_v14 = vpop.f32.mrf.mxu1  ;;  %v1483_v41 = vpop.f32.mrf.mxu3  ;;  %v748_v3 = vadd.f32 %v8193_v42, %v717_v48  ;;  %v1000_v42 = vadd.f32 %v8211_v22, %v969_v52  ;;  %v752_v29 = vadd.f32 %v8201_v31, %v721_v18  ;;  %v8336_v48 = vld [vmem:[#allocation3 + $0x38] sm:$0xff] }
 0x192   :  { %v1412_v45 = vadd.f32 %v1411_v14, %v1352_v35  ;;  %v11309_v14 = vld [vmem:[#allocation17_spill] sm:$0xff]  ;;  %v11312_v55 = vld [vmem:[#allocation20_spill] sm:$0xff] }
 0x193   :  { %v1031_v2 = vadd.f32 %v1030_v40, %v748_v3  ;;  %v1039_v1 = vadd.f32 %v8213_v16, %v752_v29 }
 0x194   :  { %v1450_v15 = vadd.f32 %v1449_v19, %v1412_v45 }
 0x195   :  { %v1090_v6 = vadd.f32 %v8207_v53, %v1031_v2  ;;  %v1094_v57 = vadd.f32 %v8215_v56, %v1039_v1  ;;  %v11311_v56 = vld [vmem:[#allocation19_spill] sm:$0xff] }
 0x196   :  { %v1484_v43 = vadd.f32 %v1483_v41, %v1450_v15  ;;  %v11310_v41 = vld [vmem:[#allocation18_spill] sm:$0xff] }
 0x197   :  { %v1128_v40 = vadd.f32 %v8209_v49, %v1090_v6  ;;  %v1133_v16 = vadd.f32 %v8217_v7, %v1094_v57 }
 0x198   :  { %v1528_v17 = vpop.f32.mrf.mxu0 }
 0x199   :  { %v1529_v33 = vadd.f32 %v1528_v17, %v1484_v43  ;;  %v1162_v11 = vadd.f32 %v8221_v20, %v1128_v40  ;;  %v1168_v62 = vadd.f32 %v11310_v41, %v1133_v16 }
 0x19a   :  { %v1415_v61 = vpop.f32.mrf.mxu1 }
 0x19b   :  { %v1416_v46 = vadd.f32 %v1415_v61, %v1360_v51  ;;  %v1207_v31 = vadd.f32 %v8219_v59, %v1162_v11 }
 0x19c   :  { %v1454_v34 = vpop.f32.mrf.mxu2  ;;  %v1489_v9 = vpop.f32.mrf.mxu3 }
 0x19d   :  { %v1455_v23 = vadd.f32 %v1454_v34, %v1416_v46  ;;  %v1238_v19 = vadd.f32 %v11309_v14, %v1207_v31 }
 0x19f   :  { %v1490_v17 = vadd.f32 %v1489_v9, %v1455_v23  ;;  %v1211_v9 = vadd.f32 %v11311_v56, %v1168_v62  ;;  %v4711_v23 = vld [vmem:[#allocation6 + $0x20] sm:$0xff] }
 0x1a0   :  { %v1532_v50 = vpop.f32.mrf.mxu0 }
 0x1a1   :  { %v1533_v4 = vadd.f32 %v1532_v50, %v1490_v17  ;;  %v1242_v37 = vadd.f32 %v11312_v55, %v1211_v9  ;;  %v1959_v50 = vld [vmem:[#allocation8 + $0x10] sm:$0xff] }
 0x1a2   :  { %v1559_v54 = vpop.f32.mrf.mxu1 }
 0x1a3   :  { %v1560_v30 = vadd.f32 %v1559_v54, %v1529_v33  ;;  %v8344_v54 = vld [vmem:[#allocation3 + $0x20] sm:$0xff] }
 0x1a4   :  { %v1594_v47 = vpop.f32.mrf.mxu2  ;;  %v1653_v32 = vpop.f32.mrf.mxu3 }
 0x1a5   :  { %v8238_v13 = vadd.f32 %v1560_v30, %v996_v39  ;;  %v1654_v61 = vadd.f32 %v1653_v32, %v1594_v47  ;;  %v1962_v39 = vsel %vm263_vm0, %v1959_v50, 0 }
 0x1a6   :  { %v8360_v3 = vand.u32 4294901760, %v1962_v39 }
 0x1a7   :  { %1934 = vrot.lane.b32.xlu0 %v8238_v13, %s7215_s30  ;;  %v8374_v52 = vand.u32 4294901760, %v8238_v13 }
 0x1a8   :  { %v1691_v21 = vpop.f32.mrf.mxu0 }
 0x1a9   :  { %v1692_v53 = vadd.f32 %v1691_v21, %v1654_v61  ;;  %v1960_v21 = vld [vmem:[#allocation8 + $0x18] sm:$0xff] }
 0x1aa   :  { %v1563_v10 = vpop.f32.mrf.mxu1  ;;  %v1965_v57 = vsel %vm263_vm0, %v1960_v21, 0 }
 0x1ab   :  { %v1564_v38 = vadd.f32 %v1563_v10, %v1533_v4  ;;  %v8377_v4 = vsub.f32 %v1962_v39, %v8360_v3  ;;  %v8379_v10 = vld [vmem:[#allocation3 + $0x30] sm:$0xff]  ;;  %v8425_v62 = vand.u32 4294901760, %v1965_v57 }
 0x1ac   :  { %v1602_v26 = vpop.f32.mrf.mxu2  ;;  %v1657_v35 = vpop.f32.mrf.mxu3 }
 0x1ad   :  { %v8249_v5 = vadd.f32 %v1564_v38, %v1000_v42  ;;  %v1658_v63 = vadd.f32 %v1657_v35, %v1602_v26  ;;  %v8402_v11 = vand.u32 4294901760, %v8377_v4 }
 0x1af   :  { %1906 = vrot.lane.b32.xlu0 %v8249_v5, %s7214_s29  ;;  %1940 = vrot.lane.b32.xlu1 %v8249_v5, %s7215_s30  ;;  %v8369_v2 = vand.u32 4294901760, %v8249_v5 }
 0x1b0   :  { %v1696_v20 = vpop.f32.mrf.mxu0 }
 0x1b1   :  { %v1697_v36 = vadd.f32 %v1696_v20, %v1658_v63  ;;  %v8387_v38 = vsub.f32 %v8249_v5, %v8369_v2 }
 0x1b2   :  { %v1725_v22 = vpop.f32.mrf.mxu1 }
 0x1b3   :  { %v1726_v49 = vadd.f32 %v1725_v22, %v1692_v53 }
 0x1b4   :  { %v1770_v27 = vpop.f32.mrf.mxu2  ;;  %v1801_v51 = vpop.f32.mrf.mxu3 }
 0x1b5   :  { %v1771_v24 = vadd.f32 %v1770_v27, %v1726_v49  ;;  %v2030_v49 = vand.u32 4294901760, %v8387_v38 }
 0x1b7   :  { %v1802_v45 = vadd.f32 %v1801_v51, %v1771_v24 }
 0x1b9   :  { %v8262_v15 = vadd.f32 %v1802_v45, %v1238_v19 }
 0x1ba   :  { %v1731_v34 = vpop.f32.mrf.mxu1 }
 0x1bb   :  { %v1732_v59 = vadd.f32 %v1731_v34, %v1697_v36  ;;  %1936 = vrot.lane.b32.xlu1 %v8262_v15, %s7215_s30  ;;  %v1992_v34 = vsub.f32 %v8377_v4, %v8402_v11 }
 0x1bc   :  { %v1774_v8 = vpop.f32.mrf.mxu2  ;;  %v1805_v7 = vpop.f32.mrf.mxu3 }
 0x1bd   :  { %v1775_v44 = vadd.f32 %v1774_v8, %v1732_v59  ;;  %v8473_v39 = vand.u32 4294901760, %v1992_v34 }
 0x1bf   :  { %v1806_v43 = vadd.f32 %v1805_v7, %v1775_v44 }
 0x1c1   :  { %v8268_v46 = vadd.f32 %v1806_v43, %v1242_v37  ;;  %v2031_v43 = vsub.f32 %v8387_v38, %v2030_v49 }
 0x1c3   :  { %1942 = vrot.lane.b32.xlu2 %v8268_v46, %s7215_s30  ;;  %1908 = vrot.lane.b32.xlu0 %v8268_v46, %s7214_s29  ;;  %v8410_v27 = vand.u32 4294901760, %v8268_v46 }
 0x1c4   :  { %1900 = vrot.lane.b32.xlu1 %v8238_v13, %s7214_s29 }
 0x1cb   :  { %6981 = vrot.lane.b32.xlu2 %v11313_v0, %s7214_s29  ;;  %1860 = vrot.lane.b32.xlu0 %v8249_v5, %s7216_s2 }
 0x1cc   :  { %1902 = vrot.lane.b32.xlu1 %v8262_v15, %s7214_s29 }
 0x1d3   :  { %6986 = vrot.lane.b32.xlu2 %v11313_v0, %s7215_s30  ;;  %1884 = vrot.lane.b32.xlu0 %v8249_v5, %s7211_s25 }
 0x1d4   :  { %1854 = vrot.lane.b32.xlu1 %v8238_v13, %s7216_s2 }
 0x1db   :  { %6991 = vrot.lane.b32.xlu2 %v11313_v0, %s7216_s2  ;;  %1836 = vrot.lane.b32.xlu0 %v8249_v5, %s7217_s4 }
 0x1dc   :  { %1878 = vrot.lane.b32.xlu1 %v8238_v13, %s7211_s25 }
 0x1e3   :  { %6996 = vrot.lane.b32.xlu2 %v11313_v0, %s7211_s25  ;;  %1856 = vrot.lane.b32.xlu0 %v8262_v15, %s7216_s2 }
 0x1e4   :  { %1830 = vrot.lane.b32.xlu1 %v8238_v13, %s7217_s4 }
 0x1eb   :  { %7001 = vrot.lane.b32.xlu2 %v11313_v0, %s7217_s4  ;;  %1838 = vrot.lane.b32.xlu0 %v8268_v46, %s7217_s4 }
 0x1ec   :  { %1886 = vrot.lane.b32.xlu1 %v8268_v46, %s7211_s25 }
 0x1f3   :  { %1862 = vrot.lane.b32.xlu2 %v8268_v46, %s7216_s2  ;;  %2995 = vrot.lane.b32.xlu0 %v8249_v5, %s7219_s6 }
 0x1f4   :  { %1832 = vrot.lane.b32.xlu1 %v8262_v15, %s7217_s4 }
 0x1fb   :  { %1880 = vrot.lane.b32.xlu2 %v8262_v15, %s7211_s25  ;;  %2973 = vrot.lane.b32.xlu0 %v8268_v46, %s7218_s5 }
 0x1fc   :  { %2965 = vrot.lane.b32.xlu1 %v8238_v13, %s7218_s5 }
 0x203   :  { %2971 = vrot.lane.b32.xlu2 %v8249_v5, %s7218_s5  ;;  %2991 = vrot.lane.b32.xlu0 %v8262_v15, %s7219_s6 }
 0x204   :  { %2947 = vrot.lane.b32.xlu1 %v8249_v5, %s7220_s7  ;;  %v8399_v5 = vsub.f32 %v8238_v13, %v8374_v52 }
 0x206   :  { %v2036_v56 = vand.u32 4294901760, %v8399_v5 }
 0x20b   :  { %2967 = vrot.lane.b32.xlu2 %v8262_v15, %s7218_s5  ;;  %2941 = vrot.lane.b32.xlu0 %v8238_v13, %s7220_s7 }
 0x20c   :  { %2997 = vrot.lane.b32.xlu1 %v8268_v46, %s7219_s6 }
 0x213   :  { %2989 = vrot.lane.b32.xlu2 %v8238_v13, %s7219_s6  ;;  %7011 = vrot.lane.b32.xlu0 %v11313_v0, %s7219_s6  ;;  %v8413_v13 = vand.u32 4294901760, %v8262_v15 }
 0x214   :  { %2943 = vrot.lane.b32.xlu1 %v8262_v15, %s7220_s7 }
 0x219   :  { %v1935_v33 = vpop.permute.xlu0 %1934 }
 0x21b   :  { %2949 = vrot.lane.b32.xlu2 %v8268_v46, %s7220_s7  ;;  %3645 = vrot.lane.b32.xlu0 %v8336_v48, %s7215_s30 }
 0x21c   :  { %7016 = vrot.lane.b32.xlu1 %v11313_v0, %s7220_s7 }
 0x21d   :  { %v1943_v58 = vpop.permute.xlu2 %1942 }
 0x221   :  { %v1941_v25 = vpop.permute.xlu1 %1940  ;;  %v1907_v18 = vpop.permute.xlu0 %1906 }
 0x222   :  { %v1948_v28 = vsel %vm247_vm3, %v1941_v25, %v1943_v58 }
 0x223   :  { %v1956_v30 = vsel %vm7367_vm4, %v1948_v28, 0.0  ;;  %7006 = vrot.lane.b32.xlu2 %v11313_v0, %s7218_s5  ;;  %7021 = vrot.lane.b32.xlu0 %v11313_v0, %s7214_s29 }
 0x224   :  { %v8354_v47 = vand.u32 4294901760, %v1956_v30  ;;  %3637 = vrot.lane.b32.xlu1 %v8344_v54, %s7215_s30 }
 0x225   :  { %v8358_v32 = vpop.permute.xlu2 %6981 }
 0x226   :  { %v8363_v60 = vsub.f32 %v1956_v30, %v8354_v47  ;;  %v6983_v12 = vunpack.i.l.bf16 %v8358_v32  ;;  %1978 = vmatpush.msrb.mxu0 %v8354_v47  ;;  %2111 = vmatpush.msrb.mxu3 %v8354_v47  ;;  %v6984_v44 = vunpack.i.h.bf16 %v8358_v32 }
 0x228   :  { %v2018_v17 = vand.u32 4294901760, %v8363_v60  ;;  %2073 = vmatpush.msrb.mxu2 %v8363_v60  ;;  %v1912_v6 = vsel %vm210_vm1, %v6983_v12, %v1907_v18 }
 0x229   :  { %v1920_v29 = vsel %vm7351_vm2, %v1912_v6, 0.0 }
 0x22a   :  { %v2019_v42 = vsub.f32 %v8363_v60, %v2018_v17  ;;  %v8419_v20 = vand.u32 4294901760, %v1920_v29 }
 0x22b   :  { %7026 = vrot.lane.b32.xlu0 %v11313_v0, %s7215_s30  ;;  %3643 = vrot.lane.b32.xlu2 %v8379_v10, %s7215_s30 }
 0x22c   :  { %v2020_v26 = vand.u32 4294901760, %v2019_v42  ;;  %3609 = vrot.lane.b32.xlu1 %v8379_v10, %s7214_s29  ;;  %v8451_v7 = vsub.f32 %v1920_v29, %v8419_v20 }
 0x22d   :  { %v6987_v40 = vpop.permute.xlu2 %6986  ;;  %v1937_v1 = vpop.permute.xlu1 %1936 }
 0x22e   :  { %v6989_v61 = vunpack.i.h.bf16 %v6987_v40  ;;  %v6988_v53 = vunpack.i.l.bf16 %v6987_v40  ;;  %v1946_v22 = vsel %vm247_vm3, %v1935_v33, %v1937_v1  ;;  %2021 = vmatpush.msrb.mxu1 %v2020_v26  ;;  %v8465_v33 = vsub.f32 %v1965_v57, %v8425_v62 }
 0x22f   :  { %v1954_v31 = vsel %vm7367_vm4, %v1946_v22, 0.0  ;;  %v2042_v26 = vand.u32 4294901760, %v8451_v7  ;;  %v2032_v22 = vand.u32 4294901760, %v2031_v43  ;;  %v2037_v57 = vsub.f32 %v8399_v5, %v2036_v56 }
 0x230   :  { %v1949_v51 = vsel %vm247_vm3, %v1943_v58, %v6988_v53  ;;  %v1947_v16 = vsel %vm247_vm3, %v1937_v1, %v6989_v61  ;;  %v8417_v24 = vand.u32 4294901760, %v1954_v31  ;;  %v8462_v58 = vsub.f32 %v8268_v46, %v8410_v27 }
 0x231   :  { %v1957_v19 = vsel %vm7430_vm6, %v1949_v51, 0.0  ;;  %v1955_v41 = vsel %vm7430_vm6, %v1947_v16, 0.0  ;;  %v8477_v46 = vsub.f32 %v8262_v15, %v8413_v13  ;;  %v8500_v61 = vand.u32 4294901760, %v8465_v33 }
 0x232   :  { %v8427_v63 = vand.u32 4294901760, %v1957_v19  ;;  %v8430_v45 = vsub.f32 %v1954_v31, %v8417_v24  ;;  %v8432_v36 = vand.u32 4294901760, %v1955_v41  ;;  %1980 = vmatpush.msrb.mxu0 %v8417_v24  ;;  %2113 = vmatpush.msrb.mxu3 %v8417_v24  ;;  %v2272_v1 = vand.u32 4294901760, %v8462_v58 }
 0x233   :  { %7031 = vrot.lane.b32.xlu0 %v11313_v0, %s7216_s2  ;;  %v2000_v43 = vsub.f32 %v8465_v33, %v8500_v61 }
 0x234   :  { %v8442_v9 = vsub.f32 %v1957_v19, %v8427_v63  ;;  %v8445_v59 = vsub.f32 %v1955_v41, %v8432_v36  ;;  %1982 = vmatpush.msrb.mxu0 %v8369_v2  ;;  %2076 = vmatpush.msrb.mxu2 %v8430_v45  ;;  %v2024_v8 = vand.u32 4294901760, %v8430_v45  ;;  %v2278_v19 = vand.u32 4294901760, %v8477_v46 }
 0x235   :  { %2115 = vmatpush.msrb.mxu3 %v8369_v2  ;;  %v8455_v55 = vpop.permute.xlu2 %6991  ;;  %v1909_v37 = vpop.permute.xlu0 %1908  ;;  %3611 = vrot.lane.b32.xlu1 %v8336_v48, %s7214_s29  ;;  %v2043_v41 = vsub.f32 %v8451_v7, %v2042_v26 }
 0x236   :  { %v1913_v50 = vsel %vm210_vm1, %v1907_v18, %v1909_v37  ;;  %v1901_v25 = vpop.permute.xlu1 %1900  ;;  %1984 = vmatpush.msrb.mxu0 %v8374_v52  ;;  %2079 = vmatpush.msrb.mxu2 %v8387_v38  ;;  %v2025_v28 = vsub.f32 %v8430_v45, %v2024_v8  ;;  %v2260_v18 = vand.u32 4294901760, %v8442_v9  ;;  %v2266_v6 = vand.u32 4294901760, %v8445_v59 }
 0x237   :  { %v1921_v32 = vsel %vm7414_vm5, %v1913_v50, 0.0  ;;  %v1910_v12 = vsel %vm210_vm1, %v6984_v44, %v1901_v25  ;;  %2117 = vmatpush.msrb.mxu3 %v8374_v52  ;;  %v2273_v44 = vsub.f32 %v8462_v58, %v2272_v1 }
 0x238   :  { %v8485_v42 = vand.u32 4294901760, %v1921_v32  ;;  %v1918_v21 = vsel %vm7351_vm2, %v1910_v12, 0.0  ;;  %1986 = vmatpush.msrb.mxu0 %v8419_v20  ;;  %2082 = vmatpush.msrb.mxu2 %v8399_v5  ;;  %v2026_v15 = vand.u32 4294901760, %v2025_v28  ;;  %v2261_v40 = vsub.f32 %v8442_v9, %v2260_v18 }
 0x239   :  { %v8492_v29 = vand.u32 4294901760, %v1918_v21  ;;  %2119 = vmatpush.msrb.mxu3 %v8419_v20  ;;  %v2267_v16 = vsub.f32 %v8445_v59, %v2266_v6  ;;  %v2038_v28 = vand.u32 4294901760, %v2037_v57  ;;  %v8545_v57 = vand.u32 4294901760, %v2000_v43 }
 0x23a   :  { %v8503_v53 = vsub.f32 %v1921_v32, %v8485_v42  ;;  %2027 = vmatpush.msrb.mxu1 %v2026_v15  ;;  %2085 = vmatpush.msrb.mxu2 %v8451_v7  ;;  %v2262_v51 = vand.u32 4294901760, %v2261_v40  ;;  %v2044_v40 = vand.u32 4294901760, %v2043_v41 }
 0x23b   :  { %v2047_v31 = vsub.f32 %v1918_v21, %v8492_v29  ;;  %1988 = vmatpush.msrb.mxu0 %v8492_v29  ;;  %2121 = vmatpush.msrb.mxu3 %v8492_v29  ;;  %v2268_v32 = vand.u32 4294901760, %v2267_v16  ;;  %v2279_v21 = vsub.f32 %v8477_v46, %v2278_v19 }
 0x23c   :  { %1994 = vmatmul.f32.vlgmr.msrb.gmra.mxu0 %v8473_v39  ;;  %2125 = vmatmul.f32.vlgmr.msrb.gmra.mxu3 %v8402_v11  ;;  %v2284_v60 = vand.u32 4294901760, %v8503_v53 }
 0x23d   :  { %2148 = vmatpush.msra.mxu0 %v2018_v17  ;;  %2033 = vmatpush.msrb.mxu1 %v2032_v22  ;;  %v8523_v45 = vpop.permute.xlu2 %6996  ;;  %v8525_v34 = vpop.permute.xlu0 %1860  ;;  %v2048_v37 = vand.u32 4294901760, %v2047_v31  ;;  %v2280_v38 = vand.u32 4294901760, %v2279_v21 }
 0x23e   :  { %2088 = vmatpush.msrb.mxu2 %v2047_v31  ;;  %2263 = vmatpush.msra.mxu3 %v2262_v51  ;;  %v1903_v50 = vpop.permute.xlu1 %1902 }
 0x23f   :  { %v1911_v17 = vsel %vm210_vm1, %v1901_v25, %v1903_v50  ;;  %2091 = vmatmul.f32.vlgmr.msrb.gmra.mxu2 %v8377_v4  ;;  %2152 = vmatpush.msra.mxu0 %v2024_v8  ;;  %v2049_v12 = vsub.f32 %v2047_v31, %v2048_v37  ;;  %v2274_v8 = vand.u32 4294901760, %v2273_v44  ;;  %v2285_v31 = vsub.f32 %v8503_v53, %v2284_v60 }
 0x240   :  { %v1919_v15 = vsel %vm7414_vm5, %v1911_v17, 0.0  ;;  %2220 = vmatpush.msra.mxu2 %v8427_v63  ;;  %2039 = vmatpush.msrb.mxu1 %v2038_v28 }
 0x241   :  { %v8541_v22 = vand.u32 4294901760, %v1919_v15  ;;  %2269 = vmatpush.msra.mxu3 %v2268_v32  ;;  %2156 = vmatpush.msra.mxu0 %v2030_v49  ;;  %v2050_v25 = vand.u32 4294901760, %v2049_v12  ;;  %v2286_v44 = vand.u32 4294901760, %v2285_v31 }
 0x242   :  { %2222 = vmatpush.msra.mxu2 %v8432_v36  ;;  %2045 = vmatpush.msrb.mxu1 %v2044_v40 }
 0x243   :  { %v8552_v51 = vsub.f32 %v1919_v15, %v8541_v22  ;;  %2275 = vmatpush.msra.mxu3 %v2274_v8  ;;  %2160 = vmatpush.msra.mxu0 %v2036_v56  ;;  %v6993_v56 = vunpack.i.l.bf16 %v8455_v55 }
 0x244   :  { %2224 = vmatpush.msra.mxu2 %v8410_v27  ;;  %2051 = vmatpush.msrb.mxu1 %v2050_v25 }
 0x245   :  { %2281 = vmatpush.msra.mxu3 %v2280_v38  ;;  %2002 = vmatmul.f32.gmra.mxu0 %v8545_v57  ;;  %v8558_v49 = vpop.permute.xlu2 %7001  ;;  %v8560_v16 = vpop.permute.xlu0 %1884  ;;  %v2290_v41 = vand.u32 4294901760, %v8552_v51  ;;  %v1866_v7 = vsel %vm162_vm7, %v6993_v56, %v8525_v34 }
 0x246   :  { %2053 = vmatmul.f32.vlgmr.msrb.gmra.mxu1 %v8360_v3  ;;  %2131 = vmatmul.f32.gmra.mxu3 %v8500_v61  ;;  %v8565_v5 = vpop.permute.xlu1 %1854 }
 0x247   :  { %2164 = vmatpush.msra.mxu0 %v2042_v26  ;;  %2189 = vmatpush.msra.mxu1 %v8354_v47  ;;  %v2291_v43 = vsub.f32 %v8552_v51, %v2290_v41  ;;  %v6994_v47 = vunpack.i.h.bf16 %v8455_v55 }
 0x248   :  { %2226 = vmatpush.msra.mxu2 %v8413_v13  ;;  %2287 = vmatpush.msra.mxu3 %v2286_v44 }
 0x249   :  { %2096 = vmatmul.f32.gmra.mxu2 %v8465_v33  ;;  %2168 = vmatpush.msra.mxu0 %v2048_v37  ;;  %v2292_v50 = vand.u32 4294901760, %v2291_v43  ;;  %v1874_v37 = vsel %vm7367_vm4, %v1866_v7, 0.0 }
 0x24a   :  { %2191 = vmatpush.msra.mxu1 %v8417_v24  ;;  %2228 = vmatpush.msra.mxu2 %v8485_v42 }
 0x24b   :  { %2315 = vmatpush.msrb.mxu0 %v8442_v9  ;;  %2293 = vmatpush.msra.mxu3 %v2292_v50  ;;  %v8602_v9 = vand.u32 4294901760, %v1874_v37 }
 0x24c   :  { %2193 = vmatpush.msra.mxu1 %v8369_v2  ;;  %2230 = vmatpush.msra.mxu2 %v8541_v22  ;;  %v1864_v2 = vsel %vm162_vm7, %v6994_v47, %v8565_v5  ;;  %v1896_v47 = vld [vmem:[#allocation8] sm:$0xff] }
 0x24d   :  { %2318 = vmatpush.msrb.mxu0 %v8445_v59  ;;  %v1863_v24 = vpop.permute.xlu2 %1862  ;;  %v8587_v26 = vpop.permute.xlu0 %1836  ;;  %2431 = vmatpush.msrb.mxu3 %v8427_v63  ;;  %v1872_v59 = vsel %vm7367_vm4, %v1864_v2, 0.0 }
 0x24e   :  { %2390 = vmatpush.msrb.mxu2 %v2260_v18  ;;  %2195 = vmatpush.msra.mxu1 %v8374_v52  ;;  %v8593_v55 = vpop.permute.xlu1 %1878  ;;  %v6998_v52 = vunpack.i.l.bf16 %v8523_v45  ;;  %v6999_v18 = vunpack.i.h.bf16 %v8523_v45 }
 0x24f   :  { %2170 = vmatmul.f32.vlgmr.msra.gmra.mxu0 %v8360_v3  ;;  %2057 = vmatmul.f32.gmra.mxu1 %v8425_v62 }
 0x250   :  { %2321 = vmatpush.msrb.mxu0 %v8462_v58  ;;  %2394 = vmatpush.msrb.mxu2 %v2266_v6  ;;  %v8619_v58 = vsub.f32 %v1874_v37, %v8602_v9  ;;  %v1890_v28 = vsel %vm187_vm8, %v6998_v52, %v8560_v16 }
 0x251   :  { %2295 = vmatmul.f32.vlgmr.msra.gmra.mxu3 %v8360_v3  ;;  %2197 = vmatpush.msra.mxu1 %v8419_v20  ;;  %v7003_v20 = vunpack.i.l.bf16 %v8558_v49 }
 0x252   :  { %2324 = vmatpush.msrb.mxu0 %v8477_v46  ;;  %2398 = vmatpush.msrb.mxu2 %v2272_v1  ;;  %v8627_v1 = vand.u32 4294901760, %v1872_v59  ;;  %v2508_v17 = vand.u32 4294901760, %v8619_v58 }
 0x253   :  { %2199 = vmatpush.msra.mxu1 %v8492_v29  ;;  %2236 = vmatmul.f32.vlgmr.msra.gmra.mxu2 %v8473_v39  ;;  %v7004_v39 = vunpack.i.h.bf16 %v8558_v49  ;;  %v1842_v46 = vsel %vm133_vm9, %v7003_v20, %v8587_v26 }
 0x254   :  { %2433 = vmatpush.msrb.mxu3 %v8432_v36  ;;  %2327 = vmatpush.msrb.mxu0 %v8503_v53  ;;  %v8652_v53 = vand.u32 4294901760, %v1890_v28  ;;  %v2509_v40 = vsub.f32 %v8619_v58, %v2508_v17 }
 0x255   :  { %2353 = vmatpush.msrb.mxu1 %v8427_v63  ;;  %2402 = vmatpush.msrb.mxu2 %v2278_v19  ;;  %v8624_v6 = vpop.permute.xlu2 %1880  ;;  %v1857_v29 = vpop.permute.xlu0 %1856  ;;  %v8638_v63 = vld [vmem:[#allocation3 + $0x28] sm:$0xff]  ;;  %v1888_v19 = vsel %vm187_vm8, %v6999_v18, %v8593_v55 }
 0x256   :  { %2435 = vmatpush.msrb.mxu3 %v8410_v27  ;;  %2330 = vmatpush.msrb.mxu0 %v8552_v51  ;;  %v8631_v45 = vpop.permute.xlu1 %1830  ;;  %v1865_v12 = vsel %vm162_vm7, %v8565_v5, %v1857_v29  ;;  %v8685_v25 = vsub.f32 %v1890_v28, %v8652_v53 }
 0x257   :  { %2355 = vmatpush.msrb.mxu1 %v8432_v36  ;;  %2406 = vmatpush.msrb.mxu2 %v2284_v60  ;;  %v1867_v36 = vsel %vm162_vm7, %v8525_v34, %v1863_v24  ;;  %v8655_v60 = vsub.f32 %v1872_v59, %v8627_v1  ;;  %v1840_v32 = vsel %vm133_vm9, %v7004_v39, %v8631_v45  ;;  %v1850_v34 = vsel %vm7351_vm2, %v1842_v46, 0.0 }
 0x258   :  { %2437 = vmatpush.msrb.mxu3 %v8413_v13  ;;  %2468 = vmatpush.msra.mxu0 %v8602_v9  ;;  %v1875_v21 = vsel %vm7430_vm6, %v1867_v36, 0.0  ;;  %v1848_v15 = vsel %vm7351_vm2, %v1840_v32, 0.0  ;;  %v8687_v31 = vand.u32 4294901760, %v1850_v34  ;;  %v1873_v51 = vsel %vm7430_vm6, %v1865_v12, 0.0 }
 0x259   :  { %2357 = vmatpush.msrb.mxu1 %v8410_v27  ;;  %2410 = vmatpush.msrb.mxu2 %v2290_v41  ;;  %v8664_v27 = vand.u32 4294901760, %v1888_v19  ;;  %v2514_v38 = vand.u32 4294901760, %v8655_v60  ;;  %v8695_v41 = vand.u32 4294901760, %v1875_v21  ;;  %v8706_v56 = vand.u32 4294901760, %v1873_v51 }
 0x25a   :  { %3639 = vrot.lane.b32.xlu2 %v8638_v63, %s7215_s30  ;;  %2174 = vmatmul.f32.gmra.mxu0 %v8425_v62  ;;  %v8711_v43 = vsub.f32 %v1850_v34, %v8687_v31  ;;  %v2520_v7 = vand.u32 4294901760, %v8685_v25 }
 0x25b   :  { %2201 = vmatmul.f32.vlgmr.msra.gmra.mxu1 %v8360_v3  ;;  %2299 = vmatmul.f32.gmra.mxu3 %v8425_v62  ;;  %v8698_v44 = vsub.f32 %v1888_v19, %v8664_v27  ;;  %v2515_v50 = vsub.f32 %v8655_v60, %v2514_v38  ;;  %v8720_v24 = vsub.f32 %v1875_v21, %v8695_v41 }
 0x25c   :  { %2439 = vmatpush.msrb.mxu3 %v8485_v42  ;;  %2470 = vmatpush.msra.mxu0 %v8627_v1  ;;  %v8732_v52 = vsub.f32 %v1873_v51, %v8706_v56  ;;  %v2521_v18 = vsub.f32 %v8685_v25, %v2520_v7  ;;  %v2532_v20 = vand.u32 4294901760, %v8711_v43  ;;  %v1889_v19 = vsel %vm187_vm8, %v8593_v55, %v8624_v6 }
 0x25d   :  { %2563 = vmatpush.msra.mxu2 %v8619_v58  ;;  %7036 = vrot.lane.b32.xlu0 %v11313_v0, %s7211_s25  ;;  %v8682_v8 = vpop.permute.xlu2 %2971  ;;  %v1839_v5 = vpop.permute.xlu0 %1838  ;;  %v2526_v37 = vand.u32 4294901760, %v8698_v44  ;;  %v2750_v39 = vand.u32 4294901760, %v8720_v24 }
 0x25e   :  { %2359 = vmatpush.msrb.mxu1 %v8413_v13  ;;  %3563 = vrot.lane.b32.xlu1 %v8379_v10, %s7216_s2  ;;  %v1887_v49 = vpop.permute.xlu1 %1886  ;;  %v8702_v13 = vand.u32 4294901760, %v1848_v15  ;;  %v2756_v34 = vand.u32 4294901760, %v8732_v52  ;;  %v2522_v21 = vand.u32 4294901760, %v2521_v18 }
 0x25f   :  { %2244 = vmatmul.f32.gmra.mxu2 %v8545_v57  ;;  %2441 = vmatpush.msrb.mxu3 %v8541_v22  ;;  %v2510_v57 = vand.u32 4294901760, %v2509_v40  ;;  %v2527_v28 = vsub.f32 %v8698_v44, %v2526_v37  ;;  %v8780_v40 = vand.u32 4294901760, %v1889_v19  ;;  %v2751_v58 = vsub.f32 %v8720_v24, %v2750_v39 }
 0x260   :  { %2472 = vmatpush.msra.mxu0 %v8652_v53  ;;  %2566 = vmatpush.msra.mxu2 %v8655_v60  ;;  %v8728_v2 = vsub.f32 %v1848_v15, %v8702_v13  ;;  %v1897_v15 = vld [vmem:[#allocation8 + $0x8] sm:$0xff] }
 0x261   :  { %2361 = vmatpush.msrb.mxu1 %v8485_v42  ;;  %2601 = vmatpush.msra.mxu3 %v8602_v9  ;;  %v1891_v42 = vsel %vm187_vm8, %v8560_v16, %v1887_v49  ;;  %v2516_v16 = vand.u32 4294901760, %v2515_v50  ;;  %v2752_v60 = vand.u32 4294901760, %v2751_v58 }
 0x262   :  { %2474 = vmatpush.msra.mxu0 %v8664_v27  ;;  %2569 = vmatpush.msra.mxu2 %v8685_v25  ;;  %v8740_v59 = vand.u32 4294901760, %v1891_v42  ;;  %v2538_v36 = vand.u32 4294901760, %v8728_v2 }
 0x263   :  { %2363 = vmatpush.msrb.mxu1 %v8541_v22  ;;  %2603 = vmatpush.msra.mxu3 %v8627_v1  ;;  %v2452_v22 = vsel %vm263_vm0, %v1896_v47, 0 }
 0x264   :  { %2476 = vmatpush.msra.mxu0 %v8687_v31  ;;  %2572 = vmatpush.msra.mxu2 %v8698_v44  ;;  %v8759_v32 = vand.u32 4294901760, %v2452_v22  ;;  %v8775_v6 = vsub.f32 %v1891_v42, %v8740_v59  ;;  %v2539_v51 = vsub.f32 %v8728_v2, %v2538_v36 }
 0x265   :  { %2511 = vmatpush.msra.mxu1 %v2510_v57  ;;  %2605 = vmatpush.msra.mxu3 %v8652_v53  ;;  %v8752_v46 = vpop.permute.xlu2 %2967  ;;  %v8767_v12 = vpop.permute.xlu0 %2995  ;;  %v2455_v57 = vsel %vm263_vm0, %v1897_v15, 0 }
 0x266   :  { %3603 = vrot.lane.b32.xlu2 %v8344_v54, %s7214_s29  ;;  %2205 = vmatmul.f32.gmra.mxu1 %v8425_v62  ;;  %v1833_v29 = vpop.permute.xlu1 %1832  ;;  %v2762_v47 = vand.u32 4294901760, %v8775_v6  ;;  %v2540_v18 = vand.u32 4294901760, %v2539_v51 }
 0x267   :  { %2333 = vmatmul.f32.vlgmr.msrb.gmra.mxu0 %v8377_v4  ;;  %2443 = vmatmul.f32.vlgmr.msrb.gmra.mxu3 %v8360_v3  ;;  %v1843_v4 = vsel %vm133_vm9, %v8587_v26, %v1839_v5  ;;  %v1841_v55 = vsel %vm133_vm9, %v8631_v45, %v1833_v29  ;;  %v2533_v26 = vsub.f32 %v8711_v43, %v2532_v20  ;;  %v2528_v45 = vand.u32 4294901760, %v2527_v28 }
 0x268   :  { %2478 = vmatpush.msra.mxu0 %v8702_v13  ;;  %2517 = vmatpush.msra.mxu1 %v2516_v16  ;;  %v1849_v49 = vsel %vm7414_vm5, %v1841_v55, 0.0  ;;  %v2757_v5 = vsub.f32 %v8732_v52, %v2756_v34  ;;  %v8818_v16 = vsub.f32 %v1889_v19, %v8780_v40  ;;  %v8824_v28 = vand.u32 4294901760, %v2455_v57 }
 0x269   :  { %2575 = vmatpush.msra.mxu2 %v8711_v43  ;;  %7041 = vrot.lane.b32.xlu0 %v11313_v0, %s7217_s4  ;;  %v2534_v50 = vand.u32 4294901760, %v2533_v26  ;;  %v2763_v19 = vsub.f32 %v8775_v6, %v2762_v47 }
 0x26a   :  { %2607 = vmatpush.msra.mxu3 %v8664_v27  ;;  %2638 = vmatpush.msrb.mxu0 %v2508_v17  ;;  %v1851_v17 = vsel %vm7414_vm5, %v1843_v4, 0.0  ;;  %v2758_v25 = vand.u32 4294901760, %v2757_v5  ;;  %v8851_v26 = vsub.f32 %v2455_v57, %v8824_v28 }
 0x26b   :  { %3587 = vrot.lane.b32.xlu1 %v8379_v10, %s7211_s25  ;;  %2412 = vmatmul.f32.vlgmr.msrb.gmra.mxu2 %v8360_v3  ;;  %v8797_v3 = vsub.f32 %v2452_v22, %v8759_v32  ;;  %v8810_v22 = vand.u32 4294901760, %v1851_v17 }
 0x26c   :  { %2523 = vmatpush.msra.mxu1 %v2522_v21  ;;  %2578 = vmatpush.msra.mxu2 %v8728_v2  ;;  %v2768_v21 = vand.u32 4294901760, %v8818_v16 }
 0x26d   :  { %2609 = vmatpush.msra.mxu3 %v8687_v31  ;;  %2642 = vmatpush.msrb.mxu0 %v2514_v38  ;;  %v8815_v38 = vand.u32 4294901760, %v1849_v49  ;;  %v8822_v29 = vand.u32 4294901760, %v8797_v3  ;;  %v8837_v4 = vsub.f32 %v1851_v17, %v8810_v22 }
 0x26e   :  { %2710 = vmatpush.msrb.mxu2 %v8695_v41  ;;  %2529 = vmatpush.msra.mxu1 %v2528_v45  ;;  %v8808_v42 = vpop.permute.xlu1 %2965  ;;  %v2769_v43 = vsub.f32 %v8818_v16, %v2768_v21 }
 0x26f   :  { %2611 = vmatpush.msra.mxu3 %v8702_v13  ;;  %2646 = vmatpush.msrb.mxu0 %v2520_v7  ;;  %v8828_v7 = vpop.permute.xlu2 %2989  ;;  %v8842_v44 = vsub.f32 %v1849_v49, %v8815_v38  ;;  %v2482_v55 = vsub.f32 %v8797_v3, %v8822_v29 }
 0x270   :  { %2712 = vmatpush.msrb.mxu2 %v8706_v56  ;;  %2535 = vmatpush.msra.mxu1 %v2534_v50 }
 0x271   :  { %2753 = vmatpush.msrb.mxu3 %v2752_v60  ;;  %2650 = vmatpush.msrb.mxu0 %v2526_v37  ;;  %v8844_v37 = vpop.permute.xlu0 %2973  ;;  %v2780_v15 = vand.u32 4294901760, %v8842_v44  ;;  %v8866_v45 = vand.u32 4294901760, %v2482_v55 }
 0x272   :  { %2714 = vmatpush.msrb.mxu2 %v8740_v59  ;;  %3605 = vrot.lane.b32.xlu2 %v8638_v63, %s7214_s29 }
 0x273   :  { %2338 = vmatmul.f32.gmra.mxu0 %v8465_v33  ;;  %2367 = vmatmul.f32.vlgmr.msrb.gmra.mxu1 %v8402_v11  ;;  %v2764_v11 = vand.u32 4294901760, %v2763_v19  ;;  %v2774_v33 = vand.u32 4294901760, %v8837_v4  ;;  %v2781_v2 = vsub.f32 %v8842_v44, %v2780_v15 }
 0x274   :  { %2447 = vmatmul.f32.gmra.mxu3 %v8425_v62  ;;  %2541 = vmatpush.msra.mxu1 %v2540_v18 }
 0x275   :  { %2759 = vmatpush.msrb.mxu3 %v2758_v25  ;;  %3565 = vrot.lane.b32.xlu0 %v8336_v48, %s7216_s2  ;;  %v2782_v17 = vand.u32 4294901760, %v2781_v2 }
 0x276   :  { %2654 = vmatpush.msrb.mxu0 %v2532_v20  ;;  %2679 = vmatpush.msrb.mxu1 %v8602_v9  ;;  %v8870_v9 = vand.u32 4294901760, %v8851_v26  ;;  %v8872_v20 = vpop.permute.xlu1 %2947 }
 0x277   :  { %2716 = vmatpush.msrb.mxu2 %v8780_v40  ;;  %3539 = vrot.lane.b32.xlu1 %v8379_v10, %s7217_s4 }
 0x278   :  { %2416 = vmatmul.f32.gmra.mxu2 %v8425_v62  ;;  %2658 = vmatpush.msrb.mxu0 %v2538_v36  ;;  %v2775_v62 = vsub.f32 %v8837_v4, %v2774_v33  ;;  %v8886_v36 = vpop.permute.xlu2 %2949 }
 0x279   :  { %2681 = vmatpush.msrb.mxu1 %v8627_v1  ;;  %2718 = vmatpush.msrb.mxu2 %v8810_v22  ;;  %v2770_v1 = vand.u32 4294901760, %v2769_v43  ;;  %v8894_v58 = vpop.permute.xlu0 %2991 }
 0x27a   :  { %2765 = vmatpush.msrb.mxu3 %v2764_v11  ;;  %3557 = vrot.lane.b32.xlu2 %v8344_v54, %s7216_s2 }
 0x27b   :  { %2683 = vmatpush.msrb.mxu1 %v8652_v53  ;;  %2720 = vmatpush.msrb.mxu2 %v8815_v38  ;;  %v2490_v53 = vsub.f32 %v8851_v26, %v8870_v9 }
 0x27c   :  { %2373 = vmatmul.f32.gmra.mxu1 %v8500_v61  ;;  %2484 = vmatmul.f32.vlgmr.msra.gmra.mxu0 %v8866_v45  ;;  %v2776_v61 = vand.u32 4294901760, %v2775_v62 }
 0x27d   :  { %2685 = vmatpush.msrb.mxu1 %v8664_v27  ;;  %2615 = vmatmul.f32.vlgmr.msra.gmra.mxu3 %v8822_v29  ;;  %v8903_v27 = vand.u32 4294901760, %v2490_v53 }
 0x27e   :  { %2771 = vmatpush.msrb.mxu3 %v2770_v1  ;;  %2805 = vmatpush.msra.mxu0 %v8720_v24  ;;  %v8909_v51 = vpop.permute.xlu1 %2997 }
 0x27f   :  { %3583 = vrot.lane.b32.xlu0 %v8638_v63, %s7211_s25  ;;  %2687 = vmatpush.msrb.mxu1 %v8687_v31  ;;  %v2979_v31 = vsel %vm1281_vm10, %v8682_v8, %v8844_v37  ;;  %v2977_v8 = vsel %vm1281_vm10, %v8808_v42, %v8752_v46  ;;  %v2955_v42 = vsel %vm1256_vm12, %v8872_v20, %v8886_v36 }
 0x280   :  { %3559 = vrot.lane.b32.xlu1 %v8638_v63, %s7216_s2  ;;  %2581 = vmatmul.f32.vlgmr.msra.gmra.mxu2 %v8797_v3  ;;  %v7007_v24 = vpop.permute.xlu2 %7006  ;;  %v2985_v49 = vsel %vm7367_vm4, %v2977_v8, 0.0 }
 0x281   :  { %2777 = vmatpush.msrb.mxu3 %v2776_v61  ;;  %2808 = vmatpush.msra.mxu0 %v8732_v52  ;;  %v2942_v52 = vpop.permute.xlu0 %2941  ;;  %v7009_v5 = vunpack.i.h.bf16 %v7007_v24 }
 0x282   :  { %2880 = vmatpush.msra.mxu2 %v2750_v39  ;;  %2689 = vmatpush.msrb.mxu1 %v8702_v13  ;;  %v2987_v13 = vsel %vm7367_vm4, %v2979_v31, 0.0  ;;  %v7008_v39 = vunpack.i.l.bf16 %v7007_v24 }
 0x283   :  { %2811 = vmatpush.msra.mxu0 %v8775_v6  ;;  %2783 = vmatpush.msrb.mxu3 %v2782_v17  ;;  %v3003_v6 = vsel %vm1306_vm11, %v8767_v12, %v8909_v51  ;;  %v2978_v18 = vsel %vm1281_vm10, %v8752_v46, %v7009_v5 }
 0x284   :  { %2884 = vmatpush.msra.mxu2 %v2756_v34  ;;  %2492 = vmatmul.f32.gmra.mxu0 %v8903_v27  ;;  %v8931_v34 = vand.u32 4294901760, %v2987_v13  ;;  %v2980_v12 = vsel %vm1281_vm10, %v8844_v37, %v7008_v39  ;;  %v8954_v57 = vand.u32 4294901760, %v3003_v6  ;;  %v2986_v37 = vsel %vm7430_vm6, %v2978_v18, 0.0 }
 0x285   :  { %2814 = vmatpush.msra.mxu0 %v8818_v16  ;;  %2543 = vmatmul.f32.vlgmr.msra.gmra.mxu1 %v8759_v32  ;;  %v2988_v60 = vsel %vm7430_vm6, %v2980_v12, 0.0 }
 0x286   :  { %2888 = vmatpush.msra.mxu2 %v2762_v47  ;;  %2621 = vmatmul.f32.gmra.mxu3 %v8870_v9  ;;  %v8956_v50 = vpop.permute.xlu1 %2943  ;;  %v8959_v47 = vsub.f32 %v2987_v13, %v8931_v34  ;;  %v8986_v25 = vsub.f32 %v3003_v6, %v8954_v57  ;;  %v8998_v46 = vand.u32 4294901760, %v2988_v60 }
 0x287   :  { %2817 = vmatpush.msra.mxu0 %v8837_v4  ;;  %2843 = vmatpush.msra.mxu1 %v8695_v41 }
 0x288   :  { %2892 = vmatpush.msra.mxu2 %v2768_v21  ;;  %2921 = vmatpush.msra.mxu3 %v8695_v41  ;;  %v8947_v41 = vand.u32 4294901760, %v2985_v49  ;;  %v3081_v21 = vand.u32 4294901760, %v8986_v25 }
 0x289   :  { %4673 = vrot.lane.b32.xlu0 %v8379_v10, %s7218_s5  ;;  %3541 = vrot.lane.b32.xlu1 %v8336_v48, %s7217_s4  ;;  %v7012_v19 = vpop.permute.xlu0 %7011 }
 0x28a   :  { %2586 = vmatmul.f32.gmra.mxu2 %v8851_v26  ;;  %2820 = vmatpush.msra.mxu0 %v8842_v44  ;;  %v8979_v16 = vsub.f32 %v2985_v49, %v8947_v41  ;;  %v3082_v2 = vsub.f32 %v8986_v25, %v3081_v21  ;;  %v7014_v24 = vunpack.i.h.bf16 %v7012_v19 }
 0x28b   :  { %2845 = vmatpush.msra.mxu1 %v8706_v56  ;;  %2896 = vmatpush.msra.mxu2 %v2774_v33 }
 0x28c   :  { %2923 = vmatpush.msra.mxu3 %v8706_v56  ;;  %3581 = vrot.lane.b32.xlu2 %v8344_v54, %s7211_s25  ;;  %v3001_v56 = vsel %vm1306_vm11, %v8828_v7, %v8894_v58  ;;  %v3069_v7 = vand.u32 4294901760, %v8959_v47  ;;  %v3075_v55 = vand.u32 4294901760, %v8979_v16  ;;  %v3083_v49 = vand.u32 4294901760, %v3082_v2 }
 0x28d   :  { %2847 = vmatpush.msra.mxu1 %v8740_v59  ;;  %2900 = vmatpush.msra.mxu2 %v2780_v15  ;;  %v8991_v4 = vand.u32 4294901760, %v3001_v56 }
 0x28e   :  { %2925 = vmatpush.msra.mxu3 %v8740_v59  ;;  %2547 = vmatmul.f32.gmra.mxu1 %v8824_v28  ;;  %v2953_v59 = vsel %vm1256_vm12, %v2942_v52, %v8956_v50  ;;  %v9031_v43 = vpop.permute.xlu1 %7016  ;;  %v3076_v62 = vsub.f32 %v8979_v16, %v3075_v55 }
 0x28f   :  { %2849 = vmatpush.msra.mxu1 %v8780_v40  ;;  %2660 = vmatmul.f32.vlgmr.msrb.gmra.mxu0 %v8759_v32  ;;  %v2961_v44 = vsel %vm7351_vm2, %v2953_v59, 0.0  ;;  %v9021_v15 = vsub.f32 %v3001_v56, %v8991_v4  ;;  %v7018_v17 = vunpack.i.l.bf16 %v9031_v43 }
 0x290   :  { %2927 = vmatpush.msra.mxu3 %v8780_v40  ;;  %3029 = vmatpush.msrb.mxu0 %v8931_v34  ;;  %v2963_v40 = vsel %vm7351_vm2, %v2955_v42, 0.0  ;;  %v9018_v33 = vand.u32 4294901760, %v2961_v44  ;;  %v3077_v39 = vand.u32 4294901760, %v3076_v62 }
 0x291   :  { %2785 = vmatmul.f32.vlgmr.msrb.gmra.mxu3 %v8759_v32  ;;  %2851 = vmatpush.msra.mxu1 %v8810_v22  ;;  %v9011_v11 = vand.u32 4294901760, %v2963_v40  ;;  %v3087_v13 = vand.u32 4294901760, %v9021_v15  ;;  %v2956_v5 = vsel %vm1256_vm12, %v8886_v36, %v7018_v17  ;;  %v3011_v17 = vld [vmem:[#allocation8 + $0x28] sm:$0xff] }
 0x292   :  { %2929 = vmatpush.msra.mxu3 %v8810_v22  ;;  %4669 = vrot.lane.b32.xlu0 %v8638_v63, %s7218_s5  ;;  %v7013_v22 = vunpack.i.l.bf16 %v7012_v19  ;;  %v9051_v61 = vsub.f32 %v2961_v44, %v9018_v33  ;;  %v2964_v59 = vsel %vm7414_vm5, %v2956_v5, 0.0  ;;  %v9106_v44 = vld [vmem:[#allocation3 + $0x38] sm:$0xff] }
 0x293   :  { %4675 = vrot.lane.b32.xlu1 %v8336_v48, %s7218_s5  ;;  %2726 = vmatmul.f32.vlgmr.msrb.gmra.mxu2 %v8866_v45  ;;  %v3070_v48 = vsub.f32 %v8959_v47, %v3069_v7  ;;  %v9026_v45 = vsub.f32 %v2988_v60, %v8998_v46  ;;  %v9046_v1 = vsub.f32 %v2963_v40, %v9011_v11  ;;  %v9119_v62 = vand.u32 4294901760, %v2964_v59 }
 0x294   :  { %2853 = vmatpush.msra.mxu1 %v8815_v38  ;;  %2931 = vmatpush.msra.mxu3 %v8815_v38  ;;  %v9023_v38 = vand.u32 4294901760, %v2986_v37  ;;  %v3004_v20 = vsel %vm1306_vm11, %v8909_v51, %v7013_v22  ;;  %v3010_v51 = vld [vmem:[#allocation8 + $0x20] sm:$0xff]  ;;  %v3099_v56 = vand.u32 4294901760, %v9051_v61  ;;  %v3088_v42 = vsub.f32 %v9021_v15, %v3087_v13 }
 0x295   :  { %3031 = vmatpush.msrb.mxu0 %v8947_v41  ;;  %3124 = vmatpush.msrb.mxu2 %v8959_v47  ;;  %v3071_v53 = vand.u32 4294901760, %v3070_v48  ;;  %v3311_v8 = vand.u32 4294901760, %v9026_v45  ;;  %v9062_v52 = vand.u32 4294901760, %v3004_v20  ;;  %v3013_v6 = vsel %vm263_vm0, %v3010_v51, 0 }
 0x296   :  { %3162 = vmatpush.msrb.mxu3 %v8931_v34  ;;  %3533 = vrot.lane.b32.xlu2 %v8344_v54, %s7217_s4  ;;  %v9055_v31 = vsub.f32 %v2986_v37, %v9023_v38  ;;  %v3093_v12 = vand.u32 4294901760, %v9046_v1  ;;  %v9091_v60 = vand.u32 4294901760, %v3013_v6  ;;  %v3100_v40 = vsub.f32 %v9051_v61, %v3099_v56 }
 0x297   :  { %3127 = vmatpush.msrb.mxu2 %v8979_v16  ;;  %3033 = vmatpush.msrb.mxu0 %v8954_v57  ;;  %v3089_v37 = vand.u32 4294901760, %v3088_v42 }
 0x298   :  { %3164 = vmatpush.msrb.mxu3 %v8947_v41  ;;  %2664 = vmatmul.f32.gmra.mxu0 %v8824_v28  ;;  %v3317_v36 = vand.u32 4294901760, %v9055_v31  ;;  %v3094_v19 = vsub.f32 %v9046_v1, %v3093_v12  ;;  %v9122_v2 = vsub.f32 %v3013_v6, %v9091_v60 }
 0x299   :  { %2691 = vmatmul.f32.vlgmr.msrb.gmra.mxu1 %v8759_v32  ;;  %2789 = vmatmul.f32.gmra.mxu3 %v8824_v28 }
 0x29a   :  { %3166 = vmatpush.msrb.mxu3 %v8954_v57  ;;  %3035 = vmatpush.msrb.mxu0 %v8991_v4  ;;  %v3318_v48 = vsub.f32 %v9055_v31, %v3317_v36 }
 0x29b   :  { %3072 = vmatpush.msrb.mxu1 %v3071_v53  ;;  %3130 = vmatpush.msrb.mxu2 %v8986_v25  ;;  %v3644_v25 = vpop.permute.xlu2 %3643 }
 0x29c   :  { %4691 = vrot.lane.b32.xlu0 %v8344_v54, %s7219_s6  ;;  %3168 = vmatpush.msrb.mxu3 %v8991_v4  ;;  %v3002_v54 = vsel %vm1306_vm11, %v8894_v58, %v7014_v24  ;;  %v7019_v58 = vunpack.i.h.bf16 %v9031_v43  ;;  %v3319_v47 = vand.u32 4294901760, %v3318_v48  ;;  %v9141_v24 = vand.u32 4294901760, %v9122_v2 }
 0x29d   :  { %4697 = vrot.lane.b32.xlu1 %v8379_v10, %s7219_s6  ;;  %2734 = vmatmul.f32.gmra.mxu2 %v8903_v27  ;;  %v3312_v10 = vsub.f32 %v9026_v45, %v3311_v8  ;;  %v9086_v27 = vsub.f32 %v3004_v20, %v9062_v52  ;;  %v9096_v18 = vand.u32 4294901760, %v3002_v54 }
 0x29e   :  { %3037 = vmatpush.msrb.mxu0 %v9011_v11  ;;  %3078 = vmatpush.msrb.mxu1 %v3077_v39  ;;  %v2954_v43 = vsel %vm1256_vm12, %v8956_v50, %v7019_v58  ;;  %v3101_v50 = vand.u32 4294901760, %v3100_v40  ;;  %v9144_v39 = vsub.f32 %v2964_v59, %v9119_v62 }
 0x29f   :  { %3133 = vmatpush.msrb.mxu2 %v9021_v15  ;;  %3170 = vmatpush.msrb.mxu3 %v9011_v11  ;;  %v3313_v22 = vand.u32 4294901760, %v3312_v10  ;;  %v3323_v20 = vand.u32 4294901760, %v9086_v27  ;;  %v9127_v53 = vsub.f32 %v3002_v54, %v9096_v18  ;;  %v2962_v51 = vsel %vm7414_vm5, %v2954_v43, 0.0 }
 0x2a0   :  { %3084 = vmatpush.msrb.mxu1 %v3083_v49  ;;  %3039 = vmatpush.msrb.mxu0 %v9018_v33  ;;  %v9146_v49 = vpop.permute.xlu0 %3645  ;;  %v9153_v5 = vand.u32 4294901760, %v2962_v51  ;;  %v3335_v54 = vand.u32 4294901760, %v9144_v39 }
 0x2a1   :  { %3136 = vmatpush.msrb.mxu2 %v9046_v1  ;;  %3172 = vmatpush.msrb.mxu3 %v9018_v33  ;;  %v3329_v6 = vand.u32 4294901760, %v9127_v53 }
 0x2a2   :  { %3589 = vrot.lane.b32.xlu2 %v9106_v44, %s7211_s25  ;;  %2695 = vmatmul.f32.gmra.mxu1 %v8824_v28 }
 0x2a3   :  { %2823 = vmatmul.f32.vlgmr.msra.gmra.mxu0 %v8797_v3  ;;  %2933 = vmatmul.f32.vlgmr.msra.gmra.mxu3 %v8759_v32  ;;  %v3095_v3 = vand.u32 4294901760, %v3094_v19 }
 0x2a4   :  { %3090 = vmatpush.msrb.mxu1 %v3089_v37  ;;  %3199 = vmatpush.msra.mxu0 %v3069_v7  ;;  %v3324_v7 = vsub.f32 %v9086_v27, %v3323_v20 }
 0x2a5   :  { %4651 = vrot.lane.b32.xlu0 %v9106_v44, %s7220_s7  ;;  %3139 = vmatpush.msrb.mxu2 %v9051_v61  ;;  %v3651_v61 = vsel %vm247_vm3, %v3644_v25, %v9146_v49 }
 0x2a6   :  { %3314 = vmatpush.msra.mxu3 %v3313_v22  ;;  %4693 = vrot.lane.b32.xlu1 %v8638_v63, %s7219_s6  ;;  %v3325_v16 = vand.u32 4294901760, %v3324_v7 }
 0x2a7   :  { %2902 = vmatmul.f32.vlgmr.msra.gmra.mxu2 %v8759_v32  ;;  %3096 = vmatpush.msrb.mxu1 %v3095_v3  ;;  %v3016_v32 = vsel %vm263_vm0, %v3011_v17, 0  ;;  %v7102_v3 = vld [vmem:[#allocation3 + $0x30] sm:$0xff] }
 0x2a8   :  { %3203 = vmatpush.msra.mxu0 %v3075_v55  ;;  %3271 = vmatpush.msra.mxu2 %v8998_v46  ;;  %v3043_v55 = vsub.f32 %v9122_v2, %v9141_v24  ;;  %v9164_v42 = vand.u32 4294901760, %v3016_v32 }
 0x2a9   :  { %3320 = vmatpush.msra.mxu3 %v3319_v47  ;;  %3102 = vmatpush.msrb.mxu1 %v3101_v50  ;;  %v9274_v50 = vand.u32 4294901760, %v7102_v3 }
 0x2aa   :  { %3207 = vmatpush.msra.mxu0 %v3081_v21  ;;  %3273 = vmatpush.msra.mxu2 %v9023_v38  ;;  %v9181_v21 = vand.u32 4294901760, %v3043_v55  ;;  %v9187_v15 = vsub.f32 %v3016_v32, %v9164_v42 }
 0x2ab   :  { %3535 = vrot.lane.b32.xlu2 %v8638_v63, %s7217_s4  ;;  %2828 = vmatmul.f32.gmra.mxu0 %v8851_v26  ;;  %v3330_v63 = vsub.f32 %v9127_v53, %v3329_v6  ;;  %v9175_v26 = vsub.f32 %v2962_v51, %v9153_v5 }
 0x2ac   :  { %3211 = vmatpush.msra.mxu0 %v3087_v13  ;;  %3275 = vmatpush.msra.mxu2 %v9062_v52  ;;  %v9191_v13 = vld [vmem:[#allocation3 + $0x20] sm:$0xff]  ;;  %v9205_v58 = vand.u32 4294901760, %v9187_v15 }
 0x2ad   :  { %2857 = vmatmul.f32.vlgmr.msra.gmra.mxu1 %v8822_v29  ;;  %2937 = vmatmul.f32.gmra.mxu3 %v8824_v28  ;;  %v3336_v29 = vsub.f32 %v9144_v39, %v3335_v54  ;;  %v3341_v1 = vand.u32 4294901760, %v9175_v26 }
 0x2ae   :  { %3215 = vmatpush.msra.mxu0 %v3093_v12  ;;  %3240 = vmatpush.msra.mxu1 %v8931_v34  ;;  %v3331_v34 = vand.u32 4294901760, %v3330_v63  ;;  %v9199_v12 = vpop.permute.xlu0 %7021 }
 0x2af   :  { %3277 = vmatpush.msra.mxu2 %v9096_v18  ;;  %3326 = vmatpush.msra.mxu3 %v3325_v16  ;;  %v3337_v10 = vand.u32 4294901760, %v3336_v29 }
 0x2b0   :  { %7046 = vrot.lane.b32.xlu0 %v11313_v0, %s7218_s5  ;;  %4643 = vrot.lane.b32.xlu1 %v9191_v13, %s7220_s7 }
 0x2b1   :  { %2906 = vmatmul.f32.gmra.mxu2 %v8824_v28  ;;  %3219 = vmatpush.msra.mxu0 %v3099_v56  ;;  %v3638_v28 = vpop.permute.xlu1 %3637 }
 0x2b2   :  { %3242 = vmatpush.msra.mxu1 %v8947_v41  ;;  %3279 = vmatpush.msra.mxu2 %v9119_v62  ;;  %v3342_v41 = vsub.f32 %v9175_v26, %v3341_v1 }
 0x2b3   :  { %3332 = vmatpush.msra.mxu3 %v3331_v34  ;;  %3045 = vmatmul.f32.vlgmr.msrb.gmra.mxu0 %v9181_v21 }
 0x2b4   :  { %3244 = vmatpush.msra.mxu1 %v8954_v57  ;;  %3281 = vmatpush.msra.mxu2 %v9153_v5  ;;  %v3640_v56 = vpop.permute.xlu2 %3639  ;;  %v3343_v57 = vand.u32 4294901760, %v3342_v41 }
 0x2b5   :  { %2863 = vmatmul.f32.gmra.mxu1 %v8870_v9  ;;  %3176 = vmatmul.f32.vlgmr.msrb.gmra.mxu3 %v9141_v24  ;;  %v3051_v9 = vsub.f32 %v9187_v15, %v9205_v58  ;;  %v3649_v59 = vsel %vm247_vm3, %v3638_v28, %v3640_v56 }
 0x2b6   :  { %3246 = vmatpush.msra.mxu1 %v8991_v4  ;;  %3366 = vmatpush.msrb.mxu0 %v9026_v45  ;;  %v3659_v4 = vsel %vm7367_vm4, %v3651_v61, 0.0  ;;  %v7027_v19 = vpop.permute.xlu0 %7026  ;;  %v3657_v37 = vsel %vm7367_vm4, %v3649_v59, 0.0 }
 0x2b7   :  { %3338 = vmatpush.msra.mxu3 %v3337_v10  ;;  %4667 = vrot.lane.b32.xlu2 %v9191_v13, %s7218_s5  ;;  %v9239_v40 = vand.u32 4294901760, %v3659_v4  ;;  %v7028_v45 = vunpack.i.l.bf16 %v7027_v19  ;;  %v9256_v22 = vand.u32 4294901760, %v3657_v37  ;;  %v7029_v43 = vunpack.i.h.bf16 %v7027_v19 }
 0x2b8   :  { %3248 = vmatpush.msra.mxu1 %v9011_v11  ;;  %7051 = vrot.lane.b32.xlu1 %v11313_v0, %s7219_s6  ;;  %v9234_v11 = vand.u32 4294901760, %v3051_v9 }
 0x2b9   :  { %3142 = vmatmul.f32.vlgmr.msrb.gmra.mxu2 %v9122_v2  ;;  %3369 = vmatpush.msrb.mxu0 %v9055_v31  ;;  %v9249_v31 = vpop.permute.xlu1 %3609  ;;  %v3650_v7 = vsel %vm247_vm3, %v3640_v56, %v7029_v43 }
 0x2ba   :  { %3250 = vmatpush.msra.mxu1 %v9018_v33  ;;  %3441 = vmatpush.msrb.mxu2 %v3311_v8  ;;  %v7023_v33 = vunpack.i.l.bf16 %v9199_v12  ;;  %v9251_v8 = vpop.f32.mrf.mxu0  ;;  %v3658_v55 = vsel %vm7430_vm6, %v3650_v7, 0.0 }
 0x2bb   :  { %3344 = vmatpush.msra.mxu3 %v3343_v57  ;;  %3372 = vmatpush.msrb.mxu0 %v9086_v27  ;;  %v9261_v27 = vsub.f32 %v3659_v4, %v9239_v40  ;;  %v9349_v28 = vand.u32 4294901760, %v3658_v55  ;;  %v9370_v4 = vand.u32 4294901760, %v9106_v44 }
 0x2bc   :  { %3445 = vmatpush.msrb.mxu2 %v3317_v36  ;;  %3053 = vmatmul.f32.gmra.mxu0 %v9234_v11  ;;  %v7024_v36 = vunpack.i.h.bf16 %v9199_v12 }
 0x2bd   :  { %3482 = vmatpush.msrb.mxu3 %v8998_v46  ;;  %3375 = vmatpush.msrb.mxu0 %v9127_v53  ;;  %v9280_v53 = vsub.f32 %v3657_v37, %v9256_v22  ;;  %v3720_v51 = vand.u32 4294901760, %v9261_v27 }
 0x2be   :  { %3104 = vmatmul.f32.vlgmr.msrb.gmra.mxu1 %v9091_v60  ;;  %3449 = vmatpush.msrb.mxu2 %v3323_v20  ;;  %v3615_v20 = vsel %vm210_vm1, %v7023_v33, %v9249_v31  ;;  %v9334_v34 = vpop.permute.xlu0 %7031  ;;  %v9378_v33 = vsub.f32 %v3658_v55, %v9349_v28 }
 0x2bf   :  { %3484 = vmatpush.msrb.mxu3 %v9023_v38  ;;  %3378 = vmatpush.msrb.mxu0 %v9144_v39  ;;  %v3623_v47 = vsel %vm7351_vm2, %v3615_v20, 0.0  ;;  %v3726_v16 = vand.u32 4294901760, %v9280_v53 }
 0x2c0   :  { %3182 = vmatmul.f32.gmra.mxu3 %v9205_v58  ;;  %3404 = vmatpush.msrb.mxu1 %v8998_v46  ;;  %v9263_v48 = vpop.permute.xlu2 %3603  ;;  %v3652_v46 = vsel %vm247_vm3, %v9146_v49, %v7028_v45  ;;  %v9299_v49 = vpop.f32.mrf.mxu3 }
 0x2c1   :  { %3453 = vmatpush.msrb.mxu2 %v3329_v6  ;;  %3486 = vmatpush.msrb.mxu3 %v9062_v52  ;;  %v3613_v17 = vsel %vm210_vm1, %v7024_v36, %v9263_v48  ;;  %v3660_v39 = vsel %vm7430_vm6, %v3652_v46, 0.0  ;;  %v9306_v6 = vsub.f32 %v7102_v3, %v9274_v50  ;;  %v7103_v46 = vld [vmem:[#allocation3 + $0x28] sm:$0xff] }
 0x2c2   :  { %3147 = vmatmul.f32.gmra.mxu2 %v9187_v15  ;;  %3381 = vmatpush.msrb.mxu0 %v9175_v26  ;;  %v3621_v32 = vsel %vm7351_vm2, %v3613_v17, 0.0  ;;  %v9324_v25 = vand.u32 4294901760, %v3660_v39  ;;  %v9326_v63 = vpop.f32.mrf.mxu0  ;;  %v9328_v26 = vpop.f32.mrf.mxu2 }
 0x2c3   :  { %3406 = vmatpush.msrb.mxu1 %v9023_v38  ;;  %3457 = vmatpush.msrb.mxu2 %v3335_v54  ;;  %v9291_v38 = vand.u32 4294901760, %v9191_v13  ;;  %v3721_v54 = vsub.f32 %v9261_v27, %v3720_v51  ;;  %v9332_v29 = vand.u32 4294901760, %v3621_v32  ;;  %v3732_v12 = vand.u32 4294901760, %v9306_v6 }
 0x2c4   :  { %3488 = vmatpush.msrb.mxu3 %v9096_v18  ;;  %4699 = vrot.lane.b32.xlu2 %v9106_v44, %s7219_s6 }
 0x2c5   :  { %3408 = vmatpush.msrb.mxu1 %v9062_v52  ;;  %3461 = vmatpush.msrb.mxu2 %v3341_v1  ;;  %v9310_v52 = vand.u32 4294901760, %v3623_v47  ;;  %v9336_v1 = vpop.f32.mrf.mxu1  ;;  %v9359_v56 = vsub.f32 %v3621_v32, %v9332_v29  ;;  %v3733_v57 = vsub.f32 %v9306_v6, %v3732_v12 }
 0x2c6   :  { %3490 = vmatpush.msrb.mxu3 %v9119_v62  ;;  %3108 = vmatmul.f32.gmra.mxu1 %v9164_v42 }
 0x2c7   :  { %3410 = vmatpush.msrb.mxu1 %v9096_v18  ;;  %3221 = vmatmul.f32.vlgmr.msra.gmra.mxu0 %v9091_v60  ;;  %v9322_v18 = vsub.f32 %v9191_v13, %v9291_v38  ;;  %v3612_v13 = vpop.permute.xlu1 %3611  ;;  %v9344_v10 = vsub.f32 %v3623_v47, %v9310_v52  ;;  %v11279_v20 = vand.u32 4294901760, %v9359_v56  ;;  %v9400_v47 = vsub.f32 %v9106_v44, %v9370_v4 }
 0x2c8   :  { %3492 = vmatpush.msrb.mxu3 %v9153_v5  ;;  %3680 = vmatpush.msra.mxu0 %v9239_v40  ;;  %v3616_v9 = vsel %vm210_vm1, %v9249_v31, %v3612_v13  ;;  %v3661_v31 = vld [vmem:[#allocation6 + $0x10] sm:$0xff]  ;;  %v11282_v13 = vand.u32 4294901760, %v9378_v33 }
 0x2c9   :  { %3346 = vmatmul.f32.vlgmr.msra.gmra.mxu3 %v9091_v60  ;;  %3412 = vmatpush.msrb.mxu1 %v9119_v62  ;;  %v3727_v62 = vsub.f32 %v9280_v53, %v3726_v16  ;;  %v11281_v61 = vand.u32 4294901760, %v9322_v18  ;;  %v11280_v37 = vand.u32 4294901760, %v9344_v10  ;;  %v9380_v45 = vpop.f32.mrf.mxu3  ;;  %v3624_v36 = vsel %vm7414_vm5, %v3616_v9, 0.0 }
 0x2ca   :  { %3287 = vmatmul.f32.vlgmr.msra.gmra.mxu2 %v9181_v21  ;;  %3682 = vmatpush.msra.mxu0 %v9256_v22  ;;  %v3722_v21 = vand.u32 4294901760, %v3721_v54  ;;  %v3664_v32 = vsel %vm263_vm0, %v3661_v31, 0  ;;  %v9408_v55 = vand.u32 4294901760, %v3624_v36 }
 0x2cb   :  { %3414 = vmatpush.msrb.mxu1 %v9153_v5  ;;  %3775 = vmatpush.msra.mxu2 %v9261_v27  ;;  %v9355_v5 = vsub.f32 %v3660_v39, %v9324_v25  ;;  %v3728_v59 = vand.u32 4294901760, %v3727_v62  ;;  %v3739_v43 = vsub.f32 %v9322_v18, %v11281_v61  ;;  %v3745_v54 = vsub.f32 %v9344_v10, %v11280_v37  ;;  %v3662_v61 = vld [vmem:[#allocation6 + $0x18] sm:$0xff] }
 0x2cc   :  { %4649 = vrot.lane.b32.xlu2 %v7102_v3, %s7220_s7  ;;  %3684 = vmatpush.msra.mxu0 %v9274_v50  ;;  %v3606_v41 = vpop.permute.xlu2 %3605  ;;  %v9392_v3 = vand.u32 4294901760, %v7103_v46  ;;  %v9402_v7 = vpop.f32.mrf.mxu2  ;;  %v9435_v31 = vand.u32 4294901760, %v3664_v32 }
 0x2cd   :  { %3778 = vmatpush.msra.mxu2 %v9280_v53  ;;  %3813 = vmatpush.msra.mxu3 %v9239_v40  ;;  %v3614_v19 = vsel %vm210_vm1, %v9263_v48, %v3606_v41  ;;  %v11278_v48 = vand.u32 4294901760, %v9355_v5  ;;  %v9404_v39 = vpop.f32.mrf.mxu0  ;;  %v9416_v62 = vpop.f32.mrf.mxu1 }
 0x2ce   :  { %3252 = vmatmul.f32.vlgmr.msra.gmra.mxu1 %v9091_v60  ;;  %3686 = vmatpush.msra.mxu0 %v9291_v38  ;;  %v3622_v17 = vsel %vm7414_vm5, %v3614_v19, 0.0 }
 0x2cf   :  { %3225 = vmatmul.f32.gmra.mxu0 %v9164_v42  ;;  %3781 = vmatpush.msra.mxu2 %v9306_v6  ;;  %v9414_v44 = vpop.permute.xlu0 %7036  ;;  %v3963_v41 = vsub.f32 %v9355_v5, %v11278_v48  ;;  %v9425_v9 = vand.u32 4294901760, %v3622_v17  ;;  %v9441_v48 = vsub.f32 %v3624_v36, %v9408_v55  ;;  %v11321_v6 = vand.u32 4294901760, %v9322_v18 }
 0x2d0   :  { %3815 = vmatpush.msra.mxu3 %v9256_v22  ;;  %3723 = vmatpush.msra.mxu1 %v3722_v21  ;;  %v3740_v21 = vand.u32 4294901760, %v3739_v43  ;;  %v9433_v19 = vpop.permute.xlu1 %3563  ;;  %v3974_v43 = vand.u32 4294901760, %v9400_v47 }
 0x2d1   :  { %3350 = vmatmul.f32.gmra.mxu3 %v9164_v42  ;;  %3784 = vmatpush.msra.mxu2 %v9322_v18  ;;  %v3964_v37 = vand.u32 4294901760, %v3963_v41  ;;  %v9452_v36 = vsub.f32 %v3622_v17, %v9425_v9  ;;  %v11285_v17 = vand.u32 4294901760, %v9441_v48 }
 0x2d2   :  { %3295 = vmatmul.f32.gmra.mxu2 %v9234_v11  ;;  %3688 = vmatpush.msra.mxu0 %v9310_v52  ;;  %v3734_v11 = vand.u32 4294901760, %v3733_v57  ;;  %v3751_v57 = vsub.f32 %v9359_v56, %v11279_v20  ;;  %v3746_v20 = vand.u32 4294901760, %v3745_v54  ;;  %v9456_v54 = vsub.f32 %v3664_v32, %v9435_v31 }
 0x2d3   :  { %3817 = vmatpush.msra.mxu3 %v9274_v50  ;;  %3729 = vmatpush.msra.mxu1 %v3728_v59  ;;  %v9431_v59 = vsub.f32 %v7103_v46, %v9392_v3  ;;  %v3975_v27 = vsub.f32 %v9400_v47, %v3974_v43  ;;  %v11284_v41 = vand.u32 4294901760, %v9452_v36 }
 0x2d4   :  { %4645 = vrot.lane.b32.xlu2 %v7103_v46, %s7220_s7  ;;  %3787 = vmatpush.msra.mxu2 %v9344_v10  ;;  %v3969_v46 = vsub.f32 %v9378_v33, %v11282_v13  ;;  %v9458_v13 = vpop.f32.mrf.mxu3 }
 0x2d5   :  { %3690 = vmatpush.msra.mxu0 %v9332_v29  ;;  %3819 = vmatpush.msra.mxu3 %v9291_v38  ;;  %11318 = vst [vmem:[#allocation17_spill] sm:$0xff] %v9458_v13  ;;  %v3976_v53 = vand.u32 4294901760, %v3975_v27  ;;  %v3600_v13 = vld [vmem:[#allocation6 + $0x8] sm:$0xff] }
 0x2d6   :  { %3256 = vmatmul.f32.gmra.mxu1 %v9164_v42  ;;  %3790 = vmatpush.msra.mxu2 %v9359_v56  ;;  %v9474_v32 = vpop.f32.mrf.mxu2 }
 0x2d7   :  { %3384 = vmatmul.f32.vlgmr.msrb.gmra.mxu0 %v9122_v2  ;;  %3735 = vmatpush.msra.mxu1 %v3734_v11  ;;  %v3752_v2 = vand.u32 4294901760, %v3751_v57  ;;  %v11283_v11 = vand.u32 4294901760, %v9431_v59  ;;  %11320 = vst [vmem:[#allocation19_spill] sm:$0xff] %v9474_v32 }
 0x2d8   :  { %3850 = vmatpush.msrb.mxu0 %v3720_v51  ;;  %3821 = vmatpush.msra.mxu3 %v9310_v52  ;;  %v3970_v51 = vand.u32 4294901760, %v3969_v46  ;;  %v9485_v46 = vpop.f32.mrf.mxu1 }
 0x2d9   :  { %3494 = vmatmul.f32.vlgmr.msrb.gmra.mxu3 %v9091_v60  ;;  %3741 = vmatpush.msra.mxu1 %v3740_v21  ;;  %v3667_v21 = vsel %vm263_vm0, %v3662_v61, 0  ;;  %v9481_v61 = vand.u32 4294901760, %v9456_v54 }
 0x2da   :  { %3463 = vmatmul.f32.vlgmr.msrb.gmra.mxu2 %v9091_v60  ;;  %3823 = vmatpush.msra.mxu3 %v9332_v29  ;;  %v9472_v60 = vpop.f32.mrf.mxu0 }
 0x2db   :  { %3922 = vmatpush.msrb.mxu2 %v9324_v25  ;;  %3747 = vmatpush.msra.mxu1 %v3746_v20  ;;  %11319 = vst [vmem:[#allocation18_spill] sm:$0xff] %v9472_v60  ;;  %v3981_v20 = vsub.f32 %v9431_v59, %v11283_v11  ;;  %v9483_v57 = vpop.permute.xlu0 %7041  ;;  %v3694_v27 = vsub.f32 %v9456_v54, %v9481_v61 }
 0x2dc   :  { %7056 = vrot.lane.b32.xlu2 %v11313_v0, %s7220_s7  ;;  %3854 = vmatpush.msrb.mxu0 %v3726_v16  ;;  %v9490_v16 = vpop.permute.xlu2 %3557 }
 0x2dd   :  { %3965 = vmatpush.msrb.mxu3 %v3964_v37  ;;  %3753 = vmatpush.msra.mxu1 %v3752_v2  ;;  %v9492_v37 = vand.u32 4294901760, %v3667_v21  ;;  %v3987_v2 = vsub.f32 %v9441_v48, %v11285_v17  ;;  %v9498_v11 = vpop.permute.xlu1 %3587  ;;  %v7044_v17 = vunpack.i.h.bf16 %v9483_v57 }
 0x2de   :  { %3858 = vmatpush.msrb.mxu0 %v3732_v12  ;;  %3924 = vmatpush.msrb.mxu2 %v9349_v28  ;;  %v3982_v12 = vand.u32 4294901760, %v3981_v20 }
 0x2df   :  { %3971 = vmatpush.msrb.mxu3 %v3970_v51  ;;  %3389 = vmatmul.f32.gmra.mxu0 %v9187_v15  ;;  %v3993_v15 = vsub.f32 %v9452_v36, %v11284_v41  ;;  %v3988_v18 = vand.u32 4294901760, %v3987_v2  ;;  %v11323_v51 = vand.u32 4294901760, %v9344_v10 }
 0x2e0   :  { %3418 = vmatmul.f32.vlgmr.msrb.gmra.mxu1 %v9141_v24  ;;  %3862 = vmatpush.msrb.mxu0 %v11321_v6  ;;  %v9512_v24 = vsub.f32 %v3667_v21, %v9492_v37  ;;  %v7033_v21 = vunpack.i.l.bf16 %v9334_v34 }
 0x2e1   :  { %3498 = vmatmul.f32.gmra.mxu3 %v9164_v42  ;;  %3891 = vmatpush.msrb.mxu1 %v9239_v40  ;;  %v9516_v40 = vpop.f32.mrf.mxu3  ;;  %v3994_v20 = vand.u32 4294901760, %v3993_v15 }
 0x2e2   :  { %3926 = vmatpush.msrb.mxu2 %v9370_v4  ;;  %3977 = vmatpush.msrb.mxu3 %v3976_v53  ;;  %11322 = vst [vmem:[#allocation20_spill] sm:$0xff] %v9516_v40  ;;  %v9522_v53 = vand.u32 4294901760, %v3694_v27  ;;  %v9531_v10 = vpop.f32.mrf.mxu2  ;;  %v3569_v27 = vsel %vm162_vm7, %v7033_v21, %v9433_v19 }
 0x2e3   :  { %3467 = vmatmul.f32.gmra.mxu2 %v9164_v42  ;;  %3893 = vmatpush.msrb.mxu1 %v9256_v22  ;;  %v11324_v42 = vand.u32 4294901760, %v9359_v56  ;;  %v9529_v22 = vand.u32 4294901760, %v9512_v24  ;;  %11325 = vst [vmem:[#allocation21_spill] sm:$0xff] %v9531_v10  ;;  %v9536_v6 = vpop.f32.mrf.mxu1 }
 0x2e4   :  { %3866 = vmatpush.msrb.mxu0 %v11323_v51  ;;  %3928 = vmatpush.msrb.mxu2 %v9392_v3  ;;  %v9533_v2 = vpop.f32.mrf.mxu0  ;;  %11327 = vst [vmem:[#allocation23_spill] sm:$0xff] %v9536_v6  ;;  %v7038_v51 = vunpack.i.l.bf16 %v9414_v44 }
 0x2e5   :  { %3983 = vmatpush.msrb.mxu3 %v3982_v12  ;;  %3895 = vmatpush.msrb.mxu1 %v9274_v50  ;;  %11326 = vst [vmem:[#allocation22_spill] sm:$0xff] %v9533_v2  ;;  %v7034_v12 = vunpack.i.h.bf16 %v9334_v34 }
 0x2e6   :  { %3870 = vmatpush.msrb.mxu0 %v11324_v42  ;;  %3930 = vmatpush.msrb.mxu2 %v9408_v55  ;;  %v9540_v56 = vpop.permute.xlu2 %3581 }
 0x2e7   :  { %3989 = vmatpush.msrb.mxu3 %v3988_v18  ;;  %3897 = vmatpush.msrb.mxu1 %v9291_v38  ;;  %v3566_v50 = vpop.permute.xlu0 %3565  ;;  %v3702_v38 = vsub.f32 %v9512_v24, %v9529_v22  ;;  %v3567_v34 = vsel %vm162_vm7, %v7034_v12, %v9490_v16 }
 0x2e8   :  { %3932 = vmatpush.msrb.mxu2 %v9425_v9  ;;  %3424 = vmatmul.f32.gmra.mxu1 %v9205_v58  ;;  %v3577_v58 = vsel %vm7367_vm4, %v3569_v27, 0.0  ;;  %v3575_v42 = vsel %vm7367_vm4, %v3567_v34, 0.0  ;;  %v3570_v34 = vsel %vm162_vm7, %v9433_v19, %v3566_v50  ;;  %v11334_v19 = vand.u32 4294901760, %v9431_v59 }
 0x2e9   :  { %3995 = vmatpush.msrb.mxu3 %v3994_v20  ;;  %3696 = vmatmul.f32.vlgmr.msra.gmra.mxu0 %v9522_v53  ;;  %v9544_v15 = vpop.permute.xlu1 %3539  ;;  %v9567_v20 = vand.u32 4294901760, %v3702_v38  ;;  %v9572_v21 = vand.u32 4294901760, %v3577_v58  ;;  %v3593_v38 = vsel %vm187_vm8, %v7038_v51, %v9498_v11  ;;  %v9597_v41 = vand.u32 4294901760, %v3575_v42 }
 0x2ea   :  { %3827 = vmatmul.f32.vlgmr.msra.gmra.mxu3 %v9481_v61  ;;  %3899 = vmatpush.msrb.mxu1 %v9310_v52  ;;  %v11328_v52 = vand.u32 4294901760, %v9355_v5  ;;  %v9563_v18 = vpop.f32.mrf.mxu3  ;;  %v9612_v0 = vand.u32 4294901760, %v3593_v38 }
 0x2eb   :  { %4017 = vmatpush.msra.mxu0 %v9355_v5  ;;  %4133 = vmatpush.msra.mxu3 %v9324_v25  ;;  %11329 = vst [vmem:[#allocation24_spill] sm:$0xff] %v9563_v18  ;;  %v9604_v51 = vsub.f32 %v3577_v58, %v9572_v21 }
 0x2ec   :  { %3793 = vmatmul.f32.vlgmr.msra.gmra.mxu2 %v9456_v54  ;;  %3901 = vmatpush.msrb.mxu1 %v9332_v29  ;;  %v11330_v29 = vand.u32 4294901760, %v9378_v33 }
 0x2ed   :  { %4020 = vmatpush.msra.mxu0 %v9378_v33  ;;  %4092 = vmatpush.msra.mxu2 %v11328_v52 }
 0x2ee   :  { %4135 = vmatpush.msra.mxu3 %v9349_v28  ;;  %v9580_v12 = vpop.f32.mrf.mxu2 }
 0x2ef   :  { %4023 = vmatpush.msra.mxu0 %v9400_v47  ;;  %4096 = vmatpush.msra.mxu2 %v11330_v29  ;;  %11332 = vst [vmem:[#allocation26_spill] sm:$0xff] %v9580_v12  ;;  %v7043_v47 = vunpack.i.l.bf16 %v9483_v57 }
 0x2f0   :  { %4137 = vmatpush.msra.mxu3 %v9370_v4  ;;  %3755 = vmatmul.f32.vlgmr.msra.gmra.mxu1 %v9435_v31  ;;  %v9578_v5 = vpop.f32.mrf.mxu0  ;;  %v9587_v27 = vpop.f32.mrf.mxu1 }
 0x2f1   :  { %11331 = vst [vmem:[#allocation25_spill] sm:$0xff] %v9578_v5  ;;  %4026 = vmatpush.msra.mxu0 %v9431_v59  ;;  %4100 = vmatpush.msra.mxu2 %v3974_v43  ;;  %v9585_v33 = vpop.permute.xlu0 %3583  ;;  %v9595_v52 = vpop.permute.xlu2 %3533  ;;  %v7039_v43 = vunpack.i.h.bf16 %v9414_v44  ;;  %v3578_v44 = vsel %vm7430_vm6, %v3570_v34, 0.0  ;;  %v11335_v59 = vand.u32 4294901760, %v9441_v48  ;;  %v3545_v57 = vsel %vm133_vm9, %v7043_v47, %v9544_v15 }
 0x2f2   :  { %11333 = vst [vmem:[#allocation27_spill] sm:$0xff] %v9587_v27  ;;  %4139 = vmatpush.msra.mxu3 %v9392_v3  ;;  %3704 = vmatmul.f32.gmra.mxu0 %v9567_v20  ;;  %v3560_v29 = vpop.permute.xlu1 %3559  ;;  %v3543_v47 = vsel %vm133_vm9, %v7044_v17, %v9595_v52 }
 0x2f3   :  { %3833 = vmatmul.f32.gmra.mxu3 %v9529_v22  ;;  %4029 = vmatpush.msra.mxu0 %v9441_v48  ;;  %v3568_v50 = vsel %vm162_vm7, %v9490_v16, %v3560_v29  ;;  %v9639_v48 = vsub.f32 %v3593_v38, %v9612_v0  ;;  %v11337_v29 = vand.u32 4294901760, %v9452_v36 }
 0x2f4   :  { %4055 = vmatpush.msra.mxu1 %v9324_v25  ;;  %4104 = vmatpush.msra.mxu2 %v11334_v19  ;;  %v9621_v25 = vsub.f32 %v3575_v42, %v9597_v41  ;;  %v3576_v16 = vsel %vm7430_vm6, %v3568_v50, 0.0  ;;  %v9635_v42 = vand.u32 4294901760, %v3578_v44 }
 0x2f5   :  { %4141 = vmatpush.msra.mxu3 %v9408_v55  ;;  %3798 = vmatmul.f32.gmra.mxu2 %v9512_v24 }
 0x2f6   :  { %4032 = vmatpush.msra.mxu0 %v9452_v36  ;;  %4057 = vmatpush.msra.mxu1 %v9349_v28  ;;  %v3591_v28 = vsel %vm187_vm8, %v7039_v43, %v9540_v56  ;;  %v3553_v43 = vsel %vm7351_vm2, %v3545_v57, 0.0 }
 0x2f7   :  { %4108 = vmatpush.msra.mxu2 %v11335_v59  ;;  %4143 = vmatpush.msra.mxu3 %v9425_v9  ;;  %v9630_v58 = vpop.f32.mrf.mxu3  ;;  %v9656_v36 = vand.u32 4294901760, %v3591_v28  ;;  %v9675_v18 = vand.u32 4294901760, %v3553_v43 }
 0x2f8   :  { %11336 = vst [vmem:[#allocation28_spill] sm:$0xff] %v9630_v58  ;;  %4059 = vmatpush.msra.mxu1 %v9370_v4  ;;  %v9654_v4 = vand.u32 4294901760, %v3576_v16  ;;  %v11340_v58 = vand.u32 4294901760, %v9604_v51 }
 0x2f9   :  { %4112 = vmatpush.msra.mxu2 %v11337_v29  ;;  %3759 = vmatmul.f32.gmra.mxu1 %v9492_v37  ;;  %v9646_v19 = vpop.f32.mrf.mxu1  ;;  %v9648_v50 = vpop.f32.mrf.mxu0  ;;  %v9664_v29 = vsub.f32 %v3578_v44, %v9635_v42  ;;  %v9712_v44 = vsub.f32 %v3553_v43, %v9675_v18 }
 0x2fa   :  { %11338 = vst [vmem:[#allocation29_spill] sm:$0xff] %v9646_v19  ;;  %4061 = vmatpush.msra.mxu1 %v9392_v3  ;;  %3872 = vmatmul.f32.vlgmr.msrb.gmra.mxu0 %v9435_v31  ;;  %v3551_v3 = vsel %vm7351_vm2, %v3543_v47, 0.0  ;;  %v4211_v19 = vsub.f32 %v9604_v51, %v11340_v58  ;;  %v3592_v47 = vsel %vm187_vm8, %v9540_v56, %v9585_v33 }
 0x2fb   :  { %3997 = vmatmul.f32.vlgmr.msrb.gmra.mxu3 %v9435_v31  ;;  %4170 = vmatpush.msrb.mxu0 %v9572_v21  ;;  %v9660_v17 = vpop.permute.xlu0 %4673  ;;  %v3542_v38 = vpop.permute.xlu1 %3541  ;;  %v9687_v59 = vsub.f32 %v3576_v16, %v9654_v4  ;;  %v11346_v43 = vand.u32 4294901760, %v9664_v29 }
 0x2fc   :  { %4063 = vmatpush.msra.mxu1 %v9408_v55  ;;  %4303 = vmatpush.msrb.mxu3 %v9572_v21  ;;  %v3590_v57 = vpop.permute.xlu2 %3589  ;;  %v9670_v34 = vpop.f32.mrf.mxu2 }
 0x2fd   :  { %11339 = vst [vmem:[#allocation30_spill] sm:$0xff] %v9670_v34  ;;  %3938 = vmatmul.f32.vlgmr.msrb.gmra.mxu2 %v9522_v53  ;;  %4172 = vmatpush.msrb.mxu0 %v9597_v41  ;;  %v3594_v55 = vsel %vm187_vm8, %v9498_v11, %v3590_v57  ;;  %v3546_v53 = vsel %vm133_vm9, %v9544_v15, %v3542_v38  ;;  %v9697_v57 = vand.u32 4294901760, %v3551_v3  ;;  %v4212_v15 = vand.u32 4294901760, %v4211_v19  ;;  %v3599_v38 = vld [vmem:[#allocation6] sm:$0xff] }
 0x2fe   :  { %4065 = vmatpush.msra.mxu1 %v9425_v9  ;;  %4265 = vmatpush.msrb.mxu2 %v9604_v51  ;;  %v9690_v58 = vand.u32 4294901760, %v3594_v55  ;;  %v9695_v11 = vsub.f32 %v3591_v28, %v9656_v36  ;;  %v11341_v9 = vand.u32 4294901760, %v9621_v25  ;;  %v9714_v34 = vand.u32 4294901760, %v3592_v47 }
 0x2ff   :  { %4305 = vmatpush.msrb.mxu3 %v9597_v41  ;;  %4174 = vmatpush.msrb.mxu0 %v9612_v0  ;;  %v11343_v19 = vand.u32 4294901760, %v9639_v48  ;;  %v9731_v12 = vsub.f32 %v3551_v3, %v9697_v57  ;;  %v4154_v10 = vsel %vm263_vm0, %v3599_v38, 0 }
 0x300   :  { %v4217_v56 = vsub.f32 %v9621_v25, %v11341_v9  ;;  %4268 = vmatpush.msrb.mxu2 %v9621_v25  ;;  %v9707_v16 = vsub.f32 %v3594_v55, %v9690_v58  ;;  %v9709_v28 = vpop.f32.mrf.mxu3  ;;  %v3554_v9 = vsel %vm7414_vm5, %v3546_v53, 0.0 }
 0x301   :  { %11342 = vst [vmem:[#allocation31_spill] sm:$0xff] %v9709_v28  ;;  %3903 = vmatmul.f32.vlgmr.msrb.gmra.mxu1 %v9435_v31  ;;  %4307 = vmatpush.msrb.mxu3 %v9612_v0  ;;  %v4223_v55 = vsub.f32 %v9639_v48, %v11343_v19  ;;  %v9726_v33 = vpop.f32.mrf.mxu0  ;;  %v9738_v19 = vand.u32 4294901760, %v3554_v9  ;;  %v4453_v28 = vsub.f32 %v9664_v29, %v11346_v43 }
 0x302   :  { %3876 = vmatmul.f32.gmra.mxu0 %v9492_v37  ;;  %4271 = vmatpush.msrb.mxu2 %v9639_v48  ;;  %11344 = vst [vmem:[#allocation32_spill] sm:$0xff] %v9726_v33  ;;  %v9728_v5 = vpop.f32.mrf.mxu1  ;;  %v4218_v53 = vand.u32 4294901760, %v4217_v56  ;;  %v9749_v56 = vsub.f32 %v3592_v47, %v9714_v34  ;;  %v11348_v47 = vand.u32 4294901760, %v9687_v59 }
 0x303   :  { %11345 = vst [vmem:[#allocation33_spill] sm:$0xff] %v9728_v5  ;;  %4001 = vmatmul.f32.gmra.mxu3 %v9492_v37  ;;  %4176 = vmatpush.msrb.mxu0 %v9656_v36  ;;  %v4224_v43 = vand.u32 4294901760, %v4223_v55  ;;  %v11353_v5 = vand.u32 4294901760, %v9604_v51 }
 0x304   :  { %4309 = vmatpush.msrb.mxu3 %v9656_v36  ;;  %4213 = vmatpush.msrb.mxu1 %v4212_v15  ;;  %v9743_v3 = vpop.permute.xlu0 %4669  ;;  %v9745_v27 = vpop.f32.mrf.mxu2  ;;  %v4459_v2 = vsub.f32 %v9687_v59, %v11348_v47  ;;  %v11356_v51 = vand.u32 4294901760, %v9749_v56 }
 0x305   :  { %11347 = vst [vmem:[#allocation34_spill] sm:$0xff] %v9745_v27  ;;  %3946 = vmatmul.f32.gmra.mxu2 %v9567_v20  ;;  %4178 = vmatpush.msrb.mxu0 %v9675_v18  ;;  %v3536_v38 = vpop.permute.xlu2 %3535  ;;  %v9753_v40 = vpop.permute.xlu1 %4675  ;;  %v9763_v20 = vand.u32 4294901760, %v4154_v10  ;;  %v11349_v27 = vand.u32 4294901760, %v9695_v11 }
 0x306   :  { %4274 = vmatpush.msrb.mxu2 %v9695_v11  ;;  %4311 = vmatpush.msrb.mxu3 %v9675_v18  ;;  %v3544_v33 = vsel %vm133_vm9, %v9595_v52, %v3536_v38  ;;  %v9773_v52 = vsub.f32 %v3554_v9, %v9738_v19  ;;  %v4454_v38 = vand.u32 4294901760, %v4453_v28  ;;  %v4460_v32 = vand.u32 4294901760, %v4459_v2 }
 0x307   :  { %4180 = vmatpush.msrb.mxu0 %v9697_v57  ;;  %4219 = vmatpush.msrb.mxu1 %v4218_v53  ;;  %v3552_v15 = vsel %vm7414_vm5, %v3544_v33, 0.0  ;;  %v4229_v6 = vsub.f32 %v9695_v11, %v11349_v27  ;;  %v11350_v53 = vand.u32 4294901760, %v9707_v16  ;;  %v11351_v27 = vand.u32 4294901760, %v9712_v44 }
 0x308   :  { %4277 = vmatpush.msrb.mxu2 %v9712_v44  ;;  %4313 = vmatpush.msrb.mxu3 %v9697_v57  ;;  %v9777_v47 = vand.u32 4294901760, %v3552_v15  ;;  %v11354_v9 = vand.u32 4294901760, %v9731_v12 }
 0x309   :  { %v4465_v33 = vsub.f32 %v9707_v16, %v11350_v53  ;;  %3907 = vmatmul.f32.gmra.mxu1 %v9492_v37  ;;  %v4235_v55 = vsub.f32 %v9712_v44, %v11351_v27  ;;  %v9791_v60 = vpop.f32.mrf.mxu3  ;;  %v9794_v53 = vsub.f32 %v4154_v10, %v9763_v20  ;;  %v4230_v27 = vand.u32 4294901760, %v4229_v6 }
 0x30a   :  { %4035 = vmatmul.f32.vlgmr.msra.gmra.mxu0 %v9456_v54  ;;  %4225 = vmatpush.msrb.mxu1 %v4224_v43  ;;  %v9789_v28 = vsub.f32 %v3552_v15, %v9777_v47  ;;  %11352 = vst [vmem:[#allocation35_spill] sm:$0xff] %v9791_v60  ;;  %v4241_v54 = vsub.f32 %v9731_v12, %v11354_v9  ;;  %v4157_v60 = vsel %vm263_vm0, %v3600_v13, 0  ;;  %v11355_v6 = vand.u32 4294901760, %v9621_v25 }
 0x30b   :  { %4145 = vmatmul.f32.vlgmr.msra.gmra.mxu3 %v9435_v31  ;;  %4340 = vmatpush.msra.mxu0 %v11353_v5  ;;  %v4466_v15 = vand.u32 4294901760, %v4465_v33  ;;  %v9803_v2 = vpop.f32.mrf.mxu1  ;;  %v4236_v5 = vand.u32 4294901760, %v4235_v55  ;;  %v9822_v13 = vand.u32 4294901760, %v9794_v53  ;;  %v11359_v10 = vand.u32 4294901760, %v9695_v11 }
 0x30c   :  { %4455 = vmatpush.msra.mxu3 %v4454_v38  ;;  %4280 = vmatpush.msrb.mxu2 %v9731_v12  ;;  %v9805_v43 = vpop.f32.mrf.mxu0  ;;  %v4471_v38 = vsub.f32 %v9749_v56, %v11356_v51  ;;  %v4242_v25 = vand.u32 4294901760, %v4241_v54 }
 0x30d   :  { %4114 = vmatmul.f32.vlgmr.msra.gmra.mxu2 %v9435_v31  ;;  %4344 = vmatpush.msra.mxu0 %v11355_v6  ;;  %v9815_v9 = vpop.f32.mrf.mxu2  ;;  %v11357_v31 = vand.u32 4294901760, %v9639_v48  ;;  %v9828_v6 = vand.u32 4294901760, %v4157_v60  ;;  %v11360_v48 = vand.u32 4294901760, %v9789_v28 }
 0x30e   :  { %4412 = vmatpush.msra.mxu2 %v9635_v42  ;;  %4461 = vmatpush.msra.mxu3 %v4460_v32  ;;  %v9818_v33 = vpop.permute.xlu0 %4691  ;;  %v11358_v32 = vand.u32 4294901760, %v9773_v52 }
 0x30f   :  { %4231 = vmatpush.msrb.mxu1 %v4230_v27  ;;  %4348 = vmatpush.msra.mxu0 %v11357_v31  ;;  %v9826_v55 = vpop.permute.xlu1 %4697  ;;  %v4472_v27 = vand.u32 4294901760, %v4471_v38  ;;  %v4483_v54 = vsub.f32 %v9789_v28, %v11360_v48  ;;  %v11361_v38 = vand.u32 4294901760, %v9712_v44 }
 0x310   :  { %4414 = vmatpush.msra.mxu2 %v9654_v4  ;;  %4467 = vmatpush.msra.mxu3 %v4466_v15  ;;  %v4477_v51 = vsub.f32 %v9773_v52, %v11358_v32  ;;  %v4184_v15 = vsub.f32 %v9794_v53, %v9822_v13 }
 0x311   :  { %4237 = vmatpush.msrb.mxu1 %v4236_v5  ;;  %4352 = vmatpush.msra.mxu0 %v11359_v10  ;;  %v9845_v5 = vsub.f32 %v4157_v60, %v9828_v6  ;;  %v4668_v10 = vpop.permute.xlu2 %4667  ;;  %v4484_v31 = vand.u32 4294901760, %v4483_v54 }
 0x312   :  { %4416 = vmatpush.msra.mxu2 %v9690_v58  ;;  %4040 = vmatmul.f32.gmra.mxu0 %v9512_v24  ;;  %v4478_v11 = vand.u32 4294901760, %v4477_v51 }
 0x313   :  { %4243 = vmatpush.msrb.mxu1 %v4242_v25  ;;  %4149 = vmatmul.f32.gmra.mxu3 %v9492_v37  ;;  %v9855_v25 = vand.u32 4294901760, %v4184_v15 }
 0x314   :  { %4069 = vmatmul.f32.vlgmr.msra.gmra.mxu1 %v9481_v61  ;;  %4418 = vmatpush.msra.mxu2 %v9714_v34  ;;  %v9849_v24 = vpop.f32.mrf.mxu3 }
 0x315   :  { %4381 = vmatpush.msra.mxu1 %v9572_v21  ;;  %4473 = vmatpush.msra.mxu3 %v4472_v27  ;;  %v9857_v60 = vpop.f32.mrf.mxu0  ;;  %v9866_v21 = vand.u32 4294901760, %v9845_v5  ;;  %v4679_v27 = vsel %vm1281_vm10, %v4668_v10, %v9743_v3 }
 0x316   :  { %4118 = vmatmul.f32.gmra.mxu2 %v9492_v37  ;;  %4356 = vmatpush.msra.mxu0 %v11361_v38  ;;  %v9859_v61 = vpop.f32.mrf.mxu1  ;;  %v9863_v32 = vpop.f32.mrf.mxu2  ;;  %v11362_v37 = vand.u32 4294901760, %v9731_v12  ;;  %v4681_v12 = vsel %vm1281_vm10, %v9660_v17, %v9753_v40  ;;  %v11364_v17 = vand.u32 4294901760, %v9664_v29 }
 0x317   :  { %4383 = vmatpush.msra.mxu1 %v9597_v41  ;;  %4420 = vmatpush.msra.mxu2 %v9738_v19  ;;  %v9870_v44 = vpop.permute.xlu0 %4651  ;;  %v4192_v41 = vsub.f32 %v9845_v5, %v9866_v21 }
 0x318   :  { %4360 = vmatpush.msra.mxu0 %v11362_v37  ;;  %4479 = vmatpush.msra.mxu3 %v4478_v11  ;;  %v9872_v51 = vpop.permute.xlu1 %4693  ;;  %v11365_v11 = vand.u32 4294901760, %v9687_v59 }
 0x319   :  { %4385 = vmatpush.msra.mxu1 %v9612_v0  ;;  %4422 = vmatpush.msra.mxu2 %v9777_v47  ;;  %v9901_v48 = vand.u32 4294901760, %v4192_v41  ;;  %v11367_v41 = vand.u32 4294901760, %v9707_v16 }
 0x31a   :  { %4485 = vmatpush.msra.mxu3 %v4484_v31  ;;  %4186 = vmatmul.f32.vlgmr.msrb.gmra.mxu0 %v9855_v25 }
 0x31b   :  { %4387 = vmatpush.msra.mxu1 %v9656_v36  ;;  %4317 = vmatmul.f32.vlgmr.msrb.gmra.mxu3 %v9822_v13 }
 0x31c   :  { %4075 = vmatmul.f32.gmra.mxu1 %v9529_v22  ;;  %4507 = vmatpush.msrb.mxu0 %v9664_v29  ;;  %v9886_v0 = vpop.f32.mrf.mxu3  ;;  %v4689_v22 = vsel %vm7367_vm4, %v4681_v12, 0.0 }
 0x31d   :  { %11363 = vst [vmem:[#allocation36_spill] sm:$0xff] %v9886_v0  ;;  %4389 = vmatpush.msra.mxu1 %v9675_v18  ;;  %4623 = vmatpush.msrb.mxu3 %v9635_v42  ;;  %v4687_v18 = vsel %vm7367_vm4, %v4679_v27, 0.0  ;;  %v9915_v29 = vand.u32 4294901760, %v4689_v22 }
 0x31e   :  { %4283 = vmatmul.f32.vlgmr.msrb.gmra.mxu2 %v9794_v53  ;;  %4510 = vmatpush.msrb.mxu0 %v9687_v59  ;;  %v9894_v36 = vpop.permute.xlu2 %4699  ;;  %v9919_v31 = vand.u32 4294901760, %v4687_v18 }
 0x31f   :  { %4391 = vmatpush.msra.mxu1 %v9697_v57  ;;  %4582 = vmatpush.msrb.mxu2 %v11364_v17  ;;  %v9907_v54 = vpop.f32.mrf.mxu1  ;;  %v4705_v37 = vsel %vm1306_vm11, %v9826_v55, %v9894_v36  ;;  %v9932_v27 = vsub.f32 %v4689_v22, %v9915_v29  ;;  %v4703_v22 = vsel %vm1306_vm11, %v9818_v33, %v9872_v51 }
 0x320   :  { %4625 = vmatpush.msrb.mxu3 %v9654_v4  ;;  %4513 = vmatpush.msrb.mxu0 %v9707_v16  ;;  %v9909_v15 = vpop.f32.mrf.mxu0  ;;  %v9913_v57 = vpop.f32.mrf.mxu2  ;;  %v9934_v17 = vand.u32 4294901760, %v4705_v37  ;;  %v11368_v16 = vand.u32 4294901760, %v9749_v56 }
 0x321   :  { %4586 = vmatpush.msrb.mxu2 %v11365_v11  ;;  %11366 = vst [vmem:[#allocation37_spill] sm:$0xff] %v9913_v57 }
 0x322   :  { %4627 = vmatpush.msrb.mxu3 %v9690_v58  ;;  %4516 = vmatpush.msrb.mxu0 %v9749_v56  ;;  %v7047_v10 = vpop.permute.xlu0 %7046  ;;  %v4644_v38 = vpop.permute.xlu1 %4643 }
 0x323   :  { %4590 = vmatpush.msrb.mxu2 %v11367_v41  ;;  %4194 = vmatmul.f32.gmra.mxu0 %v9901_v48  ;;  %v7048_v59 = vunpack.i.l.bf16 %v7047_v10  ;;  %v7049_v12 = vunpack.i.h.bf16 %v7047_v10  ;;  %v9944_v10 = vsub.f32 %v4687_v18, %v9919_v31  ;;  %v11371_v18 = vand.u32 4294901760, %v9773_v52 }
 0x324   :  { %4629 = vmatpush.msrb.mxu3 %v9714_v34  ;;  %4245 = vmatmul.f32.vlgmr.msrb.gmra.mxu1 %v9763_v20 }
 0x325   :  { %4323 = vmatmul.f32.gmra.mxu3 %v9866_v21  ;;  %4519 = vmatpush.msrb.mxu0 %v9773_v52  ;;  %v4682_v55 = vsel %vm1281_vm10, %v9753_v40, %v7048_v59  ;;  %v4680_v40 = vsel %vm1281_vm10, %v9743_v3, %v7049_v12  ;;  %v2055_v59 = vadd.f32 %v9336_v1, %v9251_v8  ;;  %v11373_v8 = vand.u32 4294901760, %v9789_v28 }
 0x326   :  { %4545 = vmatpush.msrb.mxu1 %v9635_v42  ;;  %4594 = vmatpush.msrb.mxu2 %v11368_v16  ;;  %v4650_v11 = vpop.permute.xlu2 %4649  ;;  %v9941_v41 = vpop.f32.mrf.mxu3  ;;  %v4690_v33 = vsel %vm7430_vm6, %v4682_v55, 0.0  ;;  %v9966_v16 = vand.u32 4294901760, %v4703_v22  ;;  %v4688_v55 = vsel %vm7430_vm6, %v4680_v40, 0.0 }
 0x327   :  { %11369 = vst [vmem:[#allocation38_spill] sm:$0xff] %v9941_v41  ;;  %4631 = vmatpush.msrb.mxu3 %v9738_v19  ;;  %4288 = vmatmul.f32.gmra.mxu2 %v9845_v5  ;;  %v4657_v42 = vsel %vm1256_vm12, %v4650_v11, %v9870_v44  ;;  %v2093_v40 = vadd.f32 %v9328_v26, %v2055_v59  ;;  %v11375_v26 = vand.u32 4294901760, %v9932_v27  ;;  %v11376_v59 = vand.u32 4294901760, %v9944_v10 }
 0x328   :  { %4522 = vmatpush.msrb.mxu0 %v9789_v28  ;;  %4547 = vmatpush.msrb.mxu1 %v9654_v4  ;;  %v9957_v56 = vpop.f32.mrf.mxu0  ;;  %v9969_v4 = vsub.f32 %v4705_v37, %v9934_v17  ;;  %v4665_v3 = vsel %vm7351_vm2, %v4657_v42, 0.0 }
 0x329   :  { %11370 = vst [vmem:[#allocation39_spill] sm:$0xff] %v9957_v56  ;;  %4598 = vmatpush.msrb.mxu2 %v11371_v18  ;;  %4633 = vmatpush.msrb.mxu3 %v9777_v47  ;;  %v9985_v18 = vand.u32 4294901760, %v4690_v33  ;;  %v9989_v11 = vand.u32 4294901760, %v4665_v3 }
 0x32a   :  { %4549 = vmatpush.msrb.mxu1 %v9690_v58  ;;  %v7052_v52 = vpop.permute.xlu1 %7051  ;;  %v9974_v12 = vpop.f32.mrf.mxu1  ;;  %v9999_v58 = vand.u32 4294901760, %v4688_v55 }
 0x32b   :  { %11372 = vst [vmem:[#allocation40_spill] sm:$0xff] %v9974_v12  ;;  %4602 = vmatpush.msrb.mxu2 %v11373_v8  ;;  %4362 = vmatmul.f32.vlgmr.msra.gmra.mxu0 %v9763_v20  ;;  %v7053_v1 = vunpack.i.l.bf16 %v7052_v52  ;;  %v9982_v37 = vpop.f32.mrf.mxu2  ;;  %v7054_v42 = vunpack.i.h.bf16 %v7052_v52  ;;  %v9997_v8 = vsub.f32 %v4703_v22, %v9966_v16  ;;  %v4771_v22 = vsub.f32 %v9932_v27, %v11375_v26 }
 0x32c   :  { %11374 = vst [vmem:[#allocation41_spill] sm:$0xff] %v9982_v37  ;;  %4551 = vmatpush.msrb.mxu1 %v9714_v34  ;;  %4730 = vmatpush.msra.mxu0 %v9915_v29  ;;  %v10030_v14 = vsub.f32 %v4665_v3, %v9989_v11  ;;  %v11379_v3 = vand.u32 4294901760, %v9969_v4 }
 0x32d   :  { %4249 = vmatmul.f32.gmra.mxu1 %v9828_v6  ;;  %4487 = vmatmul.f32.vlgmr.msra.gmra.mxu3 %v9763_v20  ;;  %v4706_v28 = vsel %vm1306_vm11, %v9894_v36, %v7053_v1  ;;  %v10017_v1 = vsub.f32 %v4690_v33, %v9985_v18 }
 0x32e   :  { %4553 = vmatpush.msrb.mxu1 %v9738_v19  ;;  %4863 = vmatpush.msra.mxu3 %v9915_v29  ;;  %v10003_v34 = vpop.permute.xlu2 %4645  ;;  %v4777_v19 = vsub.f32 %v9944_v10, %v11376_v59 }
 0x32f   :  { %4428 = vmatmul.f32.vlgmr.msra.gmra.mxu2 %v9855_v25  ;;  %v4655_v36 = vsel %vm1256_vm12, %v4644_v38, %v10003_v34  ;;  %4732 = vmatpush.msra.mxu0 %v9919_v31  ;;  %v4704_v25 = vsel %vm1306_vm11, %v9872_v51, %v7054_v42  ;;  %v10023_v38 = vand.u32 4294901760, %v4706_v28  ;;  %v10039_v51 = vsub.f32 %v4688_v55, %v9999_v58 }
 0x330   :  { %4555 = vmatpush.msrb.mxu1 %v9777_v47  ;;  %4825 = vmatpush.msra.mxu2 %v9932_v27  ;;  %v4663_v52 = vsel %vm7351_vm2, %v4655_v36, 0.0  ;;  %v10027_v26 = vpop.f32.mrf.mxu3  ;;  %v2059_v47 = vadd.f32 %v9416_v62, %v9326_v63  ;;  %v10044_v42 = vpop.f32.mrf.mxu0  ;;  %v4783_v36 = vsub.f32 %v9969_v4, %v11379_v3  ;;  %v10051_v41 = vand.u32 4294901760, %v4704_v25 }
 0x331   :  { %11377 = vst [vmem:[#allocation42_spill] sm:$0xff] %v10027_v26  ;;  %v10032_v59 = vand.u32 4294901760, %v4663_v52  ;;  %4865 = vmatpush.msra.mxu3 %v9919_v31  ;;  %4734 = vmatpush.msra.mxu0 %v9934_v17  ;;  %v2127_v26 = vadd.f32 %v9299_v49, %v2093_v40  ;;  %v10059_v62 = vsub.f32 %v4706_v28, %v10023_v38  ;;  %v4772_v55 = vand.u32 4294901760, %v4771_v22 }
 0x332   :  { %4828 = vmatpush.msra.mxu2 %v9944_v10  ;;  %v10042_v33 = vpop.f32.mrf.mxu1  ;;  %v4778_v3 = vand.u32 4294901760, %v4777_v19  ;;  %v4714_v28 = vsel %vm263_vm0, %v4711_v23, 0  ;;  %v2098_v22 = vadd.f32 %v9402_v7, %v2059_v47  ;;  %v11381_v49 = vand.u32 4294901760, %v9997_v8 }
 0x333   :  { %11378 = vst [vmem:[#allocation43_spill] sm:$0xff] %v10042_v33  ;;  %v10054_v63 = vsub.f32 %v4663_v52, %v10032_v59  ;;  %4366 = vmatmul.f32.gmra.mxu0 %v9828_v6  ;;  %4867 = vmatpush.msra.mxu3 %v9934_v17  ;;  %v2172_v40 = vadd.f32 %v9404_v39, %v2127_v26  ;;  %v11290_v52 = vand.u32 4294901760, %v10030_v14  ;;  %v4784_v33 = vand.u32 4294901760, %v4783_v36 }
 0x334   :  { %4736 = vmatpush.msra.mxu0 %v9966_v16  ;;  %4831 = vmatpush.msra.mxu2 %v9969_v4  ;;  %v10063_v35 = vpop.f32.mrf.mxu2  ;;  %v4789_v39 = vsub.f32 %v9997_v8, %v11381_v49  ;;  %v10078_v26 = vsub.f32 %v4704_v25, %v10051_v41  ;;  %v11382_v36 = vand.u32 4294901760, %v10017_v1  ;;  %v4712_v25 = vld [vmem:[#allocation6 + $0x28] sm:$0xff] }
 0x335   :  { %11380 = vst [vmem:[#allocation44_spill] sm:$0xff] %v10063_v35  ;;  %4393 = vmatmul.f32.vlgmr.msra.gmra.mxu1 %v9763_v20  ;;  %4491 = vmatmul.f32.gmra.mxu3 %v9828_v6  ;;  %v11292_v47 = vand.u32 4294901760, %v10054_v63 }
 0x336   :  { %4773 = vmatpush.msra.mxu1 %v4772_v55  ;;  %4869 = vmatpush.msra.mxu3 %v9966_v16  ;;  %v7057_v19 = vpop.permute.xlu2 %7056  ;;  %v2203_v55 = vadd.f32 %v9485_v46, %v2172_v40  ;;  %v5013_v49 = vsub.f32 %v10017_v1, %v11382_v36 }
 0x337   :  { %4436 = vmatmul.f32.gmra.mxu2 %v9901_v48  ;;  %4738 = vmatpush.msra.mxu0 %v9989_v11  ;;  %v7059_v23 = vunpack.i.h.bf16 %v7057_v19  ;;  %v7058_v7 = vunpack.i.l.bf16 %v7057_v19  ;;  %v10091_v48 = vand.u32 4294901760, %v4714_v28 }
 0x338   :  { %4779 = vmatpush.msra.mxu1 %v4778_v3  ;;  %4834 = vmatpush.msra.mxu2 %v9997_v8  ;;  %v10089_v35 = vpop.f32.mrf.mxu3  ;;  %v4795_v3 = vsub.f32 %v10030_v14, %v11290_v52  ;;  %v2486_v30 = vadd.f32 %v9648_v50, %v2203_v55 }
 0x339   :  { %4871 = vmatpush.msra.mxu3 %v9989_v11  ;;  %v4656_v19 = vsel %vm1256_vm12, %v10003_v34, %v7059_v23  ;;  %v4658_v46 = vsel %vm1256_vm12, %v9870_v44, %v7058_v7  ;;  %4740 = vmatpush.msra.mxu0 %v10032_v59  ;;  %v11383_v34 = vand.u32 4294901760, %v10039_v51  ;;  %v4790_v44 = vand.u32 4294901760, %v4789_v39  ;;  %v10127_v37 = vpop.f32.mrf.mxu0 }
 0x33a   :  { %v4664_v40 = vsel %vm7414_vm5, %v4656_v19, 0.0  ;;  %v4666_v36 = vsel %vm7414_vm5, %v4658_v46, 0.0  ;;  %4837 = vmatpush.msra.mxu2 %v10030_v14  ;;  %4785 = vmatpush.msra.mxu1 %v4784_v33  ;;  %v4801_v19 = vsub.f32 %v10054_v63, %v11292_v47  ;;  %v11384_v39 = vand.u32 4294901760, %v9932_v27 }
 0x33b   :  { %v5019_v23 = vsub.f32 %v10039_v51, %v11383_v34  ;;  %v3105_v7 = vpop.f32.mrf.mxu1  ;;  %4873 = vmatpush.msra.mxu3 %v10032_v59  ;;  %4525 = vmatmul.f32.vlgmr.msrb.gmra.mxu0 %v9794_v53  ;;  %v10116_v52 = vand.u32 4294901760, %v4666_v36  ;;  %v10118_v33 = vand.u32 4294901760, %v4664_v40  ;;  %v5014_v34 = vand.u32 4294901760, %v5013_v49 }
 0x33c   :  { %4900 = vmatpush.msrb.mxu0 %v11384_v39  ;;  %4840 = vmatpush.msra.mxu2 %v10054_v63  ;;  %v11385_v53 = vand.u32 4294901760, %v10059_v62  ;;  %v3143_v47 = vpop.f32.mrf.mxu2  ;;  %v10130_v46 = vsub.f32 %v4714_v28, %v10091_v48  ;;  %v4796_v50 = vand.u32 4294901760, %v4795_v3  ;;  %v4717_v49 = vsel %vm263_vm0, %v4712_v25, 0 }
 0x33d   :  { %4397 = vmatmul.f32.gmra.mxu1 %v9828_v6  ;;  %4635 = vmatmul.f32.vlgmr.msrb.gmra.mxu3 %v9763_v20  ;;  %v10135_v27 = vsub.f32 %v4666_v36, %v10116_v52  ;;  %v10138_v55 = vsub.f32 %v4664_v40, %v10118_v33  ;;  %v2133_v39 = vadd.f32 %v9380_v45, %v2098_v22  ;;  %v11387_v28 = vand.u32 4294901760, %v9944_v10  ;;  %v11389_v22 = vld [vmem:[#allocation18_spill] sm:$0xff] }
 0x33e   :  { %v5025_v56 = vsub.f32 %v10059_v62, %v11385_v53  ;;  %v11386_v53 = vld [vmem:[#allocation33_spill] sm:$0xff]  ;;  %5015 = vmatpush.msrb.mxu3 %v5014_v34  ;;  %v5020_v12 = vand.u32 4294901760, %v5019_v23  ;;  %4791 = vmatpush.msra.mxu1 %v4790_v44  ;;  %v4802_v3 = vand.u32 4294901760, %v4801_v19  ;;  %v11388_v36 = vand.u32 4294901760, %v10078_v26  ;;  %v11391_v34 = vld [vmem:[#allocation19_spill] sm:$0xff] }
 0x33f   :  { %v2545_v0 = vadd.f32 %v11386_v53, %v2486_v30  ;;  %4904 = vmatpush.msrb.mxu0 %v11387_v28  ;;  %4604 = vmatmul.f32.vlgmr.msrb.gmra.mxu2 %v9763_v20  ;;  %v5036_v57 = vand.u32 4294901760, %v10135_v27  ;;  %v5042_v25 = vand.u32 4294901760, %v10138_v55  ;;  %v3106_v45 = vadd.f32 %v3105_v7, %v10044_v42  ;;  %v11393_v7 = vld [vmem:[#allocation23_spill] sm:$0xff]  ;;  %v11394_v28 = vld [vmem:[#allocation34_spill] sm:$0xff] }
 0x340   :  { %v5031_v40 = vsub.f32 %v10078_v26, %v11388_v36  ;;  %4972 = vmatpush.msrb.mxu2 %v9985_v18  ;;  %5021 = vmatpush.msrb.mxu3 %v5020_v12  ;;  %v5026_v30 = vand.u32 4294901760, %v5025_v56  ;;  %v10154_v10 = vand.u32 4294901760, %v10130_v46  ;;  %v10156_v20 = vand.u32 4294901760, %v4717_v49  ;;  %v11392_v12 = vld [vmem:[#allocation17_spill] sm:$0xff] }
 0x341   :  { %v2176_v23 = vadd.f32 %v11389_v22, %v2133_v39  ;;  %v11390_v44 = vand.u32 4294901760, %v9969_v4  ;;  %4797 = vmatpush.msra.mxu1 %v4796_v50  ;;  %v5037_v19 = vsub.f32 %v10135_v27, %v5036_v57  ;;  %v2297_v56 = vadd.f32 %v11392_v12, %v11391_v34 }
 0x342   :  { %4974 = vmatpush.msrb.mxu2 %v9999_v58  ;;  %5027 = vmatpush.msrb.mxu3 %v5026_v30  ;;  %v2583_v39 = vadd.f32 %v11394_v28, %v2545_v0  ;;  %v11395_v4 = vand.u32 4294901760, %v9997_v8  ;;  %v5032_v50 = vand.u32 4294901760, %v5031_v40  ;;  %v5043_v22 = vsub.f32 %v10138_v55, %v5042_v25  ;;  %v11396_v8 = vld [vmem:[#allocation22_spill] sm:$0xff]  ;;  %v11397_v40 = vld [vmem:[#allocation32_spill] sm:$0xff] }
 0x343   :  { %4908 = vmatpush.msrb.mxu0 %v11390_v44  ;;  %v10167_v42 = vpop.f32.mrf.mxu3  ;;  %v2207_v53 = vadd.f32 %v11393_v7, %v2176_v23  ;;  %4803 = vmatpush.msra.mxu1 %v4802_v3  ;;  %v3109_v36 = vpop.f32.mrf.mxu1  ;;  %v3144_v44 = vadd.f32 %v3143_v47, %v3106_v45  ;;  %v4744_v23 = vsub.f32 %v10130_v46, %v10154_v10  ;;  %v5038_v45 = vand.u32 4294901760, %v5037_v19  ;;  %v11399_v7 = vld [vmem:[#allocation31_spill] sm:$0xff] }
 0x344   :  { %4976 = vmatpush.msrb.mxu2 %v10023_v38  ;;  %4530 = vmatmul.f32.gmra.mxu0 %v9845_v5  ;;  %v3222_v30 = vpop.f32.mrf.mxu0  ;;  %v10181_v0 = vsub.f32 %v4717_v49, %v10156_v20  ;;  %v2335_v3 = vadd.f32 %v11396_v8, %v2297_v56  ;;  %v11398_v5 = vld [vmem:[#allocation27_spill] sm:$0xff]  ;;  %v2617_v28 = vadd.f32 %v11399_v7, %v2583_v39  ;;  %v11400_v56 = vand.u32 4294901760, %v10030_v14  ;;  %v11401_v14 = vld [vmem:[#allocation21_spill] sm:$0xff]  ;;  %v11402_v39 = vld [vmem:[#allocation20_spill] sm:$0xff] }
 0x345   :  { %4912 = vmatpush.msrb.mxu0 %v11395_v4  ;;  %v2494_v34 = vadd.f32 %v11397_v40, %v2207_v53  ;;  %4559 = vmatmul.f32.vlgmr.msrb.gmra.mxu1 %v9822_v13  ;;  %v3148_v47 = vpop.f32.mrf.mxu2  ;;  %v5044_v53 = vand.u32 4294901760, %v5043_v22  ;;  %v3178_v13 = vadd.f32 %v10089_v35, %v3144_v44  ;;  %v10198_v19 = vand.u32 4294901760, %v4744_v23  ;;  %v11405_v8 = vld [vmem:[#allocation25_spill] sm:$0xff] }
 0x346   :  { %4639 = vmatmul.f32.gmra.mxu3 %v9828_v6  ;;  %4941 = vmatpush.msrb.mxu1 %v9915_v29  ;;  %v2369_v12 = vadd.f32 %v11398_v5, %v2335_v3  ;;  %v3110_v29 = vadd.f32 %v3109_v36, %v10127_v37  ;;  %v10201_v4 = vand.u32 4294901760, %v10181_v0 }
 0x347   :  { %4978 = vmatpush.msrb.mxu2 %v10051_v41  ;;  %v2549_v49 = vadd.f32 %v9803_v2, %v2494_v34  ;;  %4916 = vmatpush.msrb.mxu0 %v11400_v56  ;;  %v2662_v2 = vadd.f32 %v9805_v43, %v2617_v28  ;;  %v3223_v35 = vadd.f32 %v3222_v30, %v3178_v13  ;;  %v11407_v34 = vld [vmem:[#allocation29_spill] sm:$0xff]  ;;  %v11411_v56 = vld [vmem:[#allocation30_spill] sm:$0xff] }
 0x348   :  { %5033 = vmatpush.msrb.mxu3 %v5032_v50  ;;  %4608 = vmatmul.f32.gmra.mxu2 %v9828_v6  ;;  %v2301_v50 = vadd.f32 %v11402_v39, %v11401_v14  ;;  %v11403_v6 = vand.u32 4294901760, %v10054_v63  ;;  %v3149_v44 = vadd.f32 %v3148_v47, %v3110_v29  ;;  %v4752_v63 = vsub.f32 %v10181_v0, %v10201_v4  ;;  %v11413_v14 = vld [vmem:[#allocation28_spill] sm:$0xff] }
 0x349   :  { %4943 = vmatpush.msrb.mxu1 %v9919_v31  ;;  %4980 = vmatpush.msrb.mxu2 %v10116_v52  ;;  %v11404_v31 = vld [vmem:[#allocation26_spill] sm:$0xff]  ;;  %v2588_v36 = vadd.f32 %v9815_v9, %v2549_v49  ;;  %v2693_v22 = vadd.f32 %v9859_v61, %v2662_v2  ;;  %v11412_v29 = vand.u32 4294901760, %v10059_v62 }
 0x34a   :  { %5039 = vmatpush.msrb.mxu3 %v5038_v45  ;;  %4920 = vmatpush.msrb.mxu0 %v11403_v6  ;;  %v2414_v37 = vadd.f32 %v11404_v31, %v2369_v12  ;;  %v2340_v3 = vadd.f32 %v11405_v8, %v2301_v50  ;;  %v11408_v45 = vld [vmem:[#allocation35_spill] sm:$0xff]  ;;  %v3184_v12 = vadd.f32 %v10167_v42, %v3149_v44  ;;  %v11410_v42 = vand.u32 4294901760, %v10039_v51  ;;  %v11416_v6 = vld [vmem:[#allocation40_spill] sm:$0xff] }
 0x34b   :  { %4945 = vmatpush.msrb.mxu1 %v9934_v17  ;;  %4982 = vmatpush.msrb.mxu2 %v10118_v33  ;;  %v3253_v43 = vpop.f32.mrf.mxu1  ;;  %v2623_v5 = vadd.f32 %v11408_v45, %v2588_v36 }
 0x34c   :  { %5045 = vmatpush.msrb.mxu3 %v5044_v53  ;;  %4746 = vmatmul.f32.vlgmr.msra.gmra.mxu0 %v10198_v19  ;;  %v3226_v17 = vpop.f32.mrf.mxu0  ;;  %v3254_v30 = vadd.f32 %v3253_v43, %v3223_v35  ;;  %v3347_v23 = vpop.f32.mrf.mxu3  ;;  %v2375_v47 = vadd.f32 %v11407_v34, %v2340_v3  ;;  %v11414_v35 = vand.u32 4294901760, %v10078_v26 }
 0x34d   :  { %4947 = vmatpush.msrb.mxu1 %v9966_v16  ;;  %v3288_v9 = vpop.f32.mrf.mxu2  ;;  %5067 = vmatpush.msra.mxu0 %v10017_v1  ;;  %v11406_v16 = vld [vmem:[#allocation24_spill] sm:$0xff]  ;;  %v2666_v7 = vadd.f32 %v9857_v60, %v2623_v5  ;;  %v3227_v49 = vadd.f32 %v3226_v17, %v3184_v12  ;;  %v11423_v5 = vld [vmem:[#allocation42_spill] sm:$0xff] }
 0x34e   :  { %4565 = vmatmul.f32.gmra.mxu1 %v9866_v21  ;;  %4877 = vmatmul.f32.vlgmr.msra.gmra.mxu3 %v10154_v10  ;;  %v3502_v61 = vadd.f32 %v3254_v30, %v2693_v22  ;;  %v2445_v40 = vadd.f32 %v11406_v16, %v2414_v37  ;;  %v10230_v21 = vand.u32 4294901760, %v4752_v63  ;;  %v2418_v53 = vadd.f32 %v11411_v56, %v2375_v47  ;;  %v11418_v22 = vld [vmem:[#allocation41_spill] sm:$0xff] }
 0x34f   :  { %4949 = vmatpush.msrb.mxu1 %v9989_v11  ;;  %5183 = vmatpush.msra.mxu3 %v9985_v18  ;;  %v11409_v11 = vand.u32 4294901760, %v10017_v1  ;;  %v2697_v13 = vadd.f32 %v9907_v54, %v2666_v7  ;;  %v3348_v37 = vadd.f32 %v3347_v23, %v3288_v9  ;;  %v11421_v23 = vld [vmem:[#allocation43_spill] sm:$0xff] }
 0x350   :  { %4843 = vmatmul.f32.vlgmr.msra.gmra.mxu2 %v10130_v46  ;;  %3506 = vst [vmem:[#allocation9] sm:$0xff] %v3502_v61  ;;  %5070 = vmatpush.msra.mxu0 %v10039_v51  ;;  %v2728_v28 = vadd.f32 %v9863_v32, %v2445_v40  ;;  %v2449_v39 = vadd.f32 %v11413_v14, %v2418_v53 }
 0x351   :  { %4951 = vmatpush.msrb.mxu1 %v10032_v59  ;;  %5142 = vmatpush.msra.mxu2 %v11409_v11 }
 0x352   :  { %5185 = vmatpush.msra.mxu3 %v9999_v58  ;;  %5073 = vmatpush.msra.mxu0 %v10059_v62  ;;  %v2787_v51 = vadd.f32 %v9849_v24, %v2728_v28  ;;  %v11415_v24 = vld [vmem:[#allocation37_spill] sm:$0xff] }
 0x353   :  { %5146 = vmatpush.msra.mxu2 %v11410_v42  ;;  %v3257_v59 = vpop.f32.mrf.mxu1  ;;  %v2736_v62 = vadd.f32 %v11415_v24, %v2449_v39 }
 0x354   :  { %5187 = vmatpush.msra.mxu3 %v10023_v38  ;;  %4754 = vmatmul.f32.gmra.mxu0 %v10230_v21  ;;  %v3258_v60 = vadd.f32 %v3257_v59, %v3227_v49  ;;  %v3385_v1 = vpop.f32.mrf.mxu0  ;;  %v3351_v32 = vpop.f32.mrf.mxu3  ;;  %v2825_v50 = vadd.f32 %v9909_v15, %v2787_v51 }
 0x355   :  { %5076 = vmatpush.msra.mxu0 %v10078_v26  ;;  %5150 = vmatpush.msra.mxu2 %v11412_v29  ;;  %v3296_v2 = vpop.f32.mrf.mxu2  ;;  %v3386_v15 = vadd.f32 %v3385_v1, %v3348_v37 }
 0x356   :  { %5189 = vmatpush.msra.mxu3 %v10051_v41  ;;  %4805 = vmatmul.f32.vlgmr.msra.gmra.mxu1 %v10091_v48  ;;  %v3504_v54 = vadd.f32 %v3258_v60, %v2697_v13  ;;  %v2859_v31 = vadd.f32 %v11416_v6, %v2825_v50  ;;  %v3352_v8 = vadd.f32 %v3351_v32, %v3296_v2 }
 0x357   :  { %5079 = vmatpush.msra.mxu0 %v10135_v27  ;;  %5105 = vmatpush.msra.mxu1 %v9985_v18  ;;  %v11417_v27 = vld [vmem:[#allocation36_spill] sm:$0xff] }
 0x358   :  { %5154 = vmatpush.msra.mxu2 %v11414_v35  ;;  %5191 = vmatpush.msra.mxu3 %v10116_v52  ;;  %3508 = vst [vmem:[#allocation9 + $0x10] sm:$0xff] %v3504_v54  ;;  %v2904_v43 = vadd.f32 %v11418_v22, %v2859_v31 }
 0x359   :  { %5082 = vmatpush.msra.mxu0 %v10138_v55  ;;  %5107 = vmatpush.msra.mxu1 %v9999_v58 }
 0x35a   :  { %5158 = vmatpush.msra.mxu2 %v5036_v57  ;;  %5193 = vmatpush.msra.mxu3 %v10118_v33  ;;  %v2791_v57 = vadd.f32 %v11417_v27, %v2736_v62 }
 0x35b   :  { %4848 = vmatmul.f32.gmra.mxu2 %v10181_v0  ;;  %4883 = vmatmul.f32.gmra.mxu3 %v10201_v4 }
 0x35c   :  { %5109 = vmatpush.msra.mxu1 %v10023_v38  ;;  %5162 = vmatpush.msra.mxu2 %v5042_v25  ;;  %v3390_v58 = vpop.f32.mrf.mxu0  ;;  %v3495_v18 = vpop.f32.mrf.mxu3  ;;  %v11419_v38 = vld [vmem:[#allocation39_spill] sm:$0xff]  ;;  %v11420_v25 = vld [vmem:[#allocation38_spill] sm:$0xff] }
 0x35d   :  { %4922 = vmatmul.f32.vlgmr.msrb.gmra.mxu0 %v10091_v48  ;;  %v3419_v26 = vpop.f32.mrf.mxu1  ;;  %v3464_v36 = vpop.f32.mrf.mxu2  ;;  %v2830_v17 = vadd.f32 %v11419_v38, %v2791_v57  ;;  %v2935_v30 = vadd.f32 %v11420_v25, %v2904_v43 }
 0x35e   :  { %5111 = vmatpush.msra.mxu1 %v10051_v41  ;;  %v3420_v44 = vadd.f32 %v3419_v26, %v3386_v15  ;;  %v3391_v41 = vadd.f32 %v3390_v58, %v3352_v8 }
 0x35f   :  { %4809 = vmatmul.f32.gmra.mxu1 %v10156_v20  ;;  %v2865_v63 = vadd.f32 %v11421_v23, %v2830_v17 }
 0x360   :  { %5113 = vmatpush.msra.mxu1 %v10116_v52  ;;  %v3465_v55 = vadd.f32 %v3464_v36, %v3420_v44  ;;  %v11422_v52 = vld [vmem:[#allocation44_spill] sm:$0xff] }
 0x361   :  { %v2908_v40 = vadd.f32 %v11422_v52, %v2865_v63 }
 0x362   :  { %5115 = vmatpush.msra.mxu1 %v10118_v33  ;;  %v3496_v3 = vadd.f32 %v3495_v18, %v3465_v55 }
 0x363   :  { %4988 = vmatmul.f32.vlgmr.msrb.gmra.mxu2 %v10198_v19  ;;  %5047 = vmatmul.f32.vlgmr.msrb.gmra.mxu3 %v10091_v48  ;;  %v2939_v12 = vadd.f32 %v11423_v5, %v2908_v40 }
 0x364   :  { %v3503_v9 = vadd.f32 %v3496_v3, %v2935_v30  ;;  %v3499_v61 = vpop.f32.mrf.mxu3 }
 0x365   :  { %4926 = vmatmul.f32.gmra.mxu0 %v10156_v20  ;;  %v3425_v16 = vpop.f32.mrf.mxu1 }
 0x366   :  { %3507 = vst [vmem:[#allocation9 + $0x8] sm:$0xff] %v3503_v9  ;;  %v3426_v34 = vadd.f32 %v3425_v16, %v3391_v41  ;;  %v3468_v47 = vpop.f32.mrf.mxu2  ;;  %v3697_v45 = vpop.f32.mrf.mxu0 }
 0x367   :  { %4953 = vmatmul.f32.vlgmr.msrb.gmra.mxu1 %v10091_v48 }
 0x368   :  { %v3469_v33 = vadd.f32 %v3468_v47, %v3426_v34 }
 0x36a   :  { %v3500_v19 = vadd.f32 %v3499_v61, %v3469_v33 }
 0x36b   :  { %4996 = vmatmul.f32.gmra.mxu2 %v10230_v21  ;;  %5051 = vmatmul.f32.gmra.mxu3 %v10156_v20 }
 0x36c   :  { %v3505_v11 = vadd.f32 %v3500_v19, %v2939_v12 }
 0x36d   :  { %5085 = vmatmul.f32.vlgmr.msra.gmra.mxu0 %v10130_v46  ;;  %v3756_v7 = vpop.f32.mrf.mxu1  ;;  %v3828_v28 = vpop.f32.mrf.mxu3 }
 0x36e   :  { %3509 = vst [vmem:[#allocation9 + $0x18] sm:$0xff] %v3505_v11  ;;  %v3757_v25 = vadd.f32 %v3756_v7, %v3697_v45 }
 0x36f   :  { %4957 = vmatmul.f32.gmra.mxu1 %v10156_v20  ;;  %v3705_v49 = vpop.f32.mrf.mxu0  ;;  %v3794_v42 = vpop.f32.mrf.mxu2 }
 0x370   :  { %v3795_v3 = vadd.f32 %v3794_v42, %v3757_v25 }
 0x372   :  { %v3829_v41 = vadd.f32 %v3828_v28, %v3795_v3 }
 0x373   :  { %5164 = vmatmul.f32.vlgmr.msra.gmra.mxu2 %v10091_v48  ;;  %5195 = vmatmul.f32.vlgmr.msra.gmra.mxu3 %v10091_v48 }
 0x375   :  { %5090 = vmatmul.f32.gmra.mxu0 %v10181_v0 }
 0x376   :  { %v3760_v59 = vpop.f32.mrf.mxu1  ;;  %v3834_v21 = vpop.f32.mrf.mxu3 }
 0x377   :  { %5119 = vmatmul.f32.vlgmr.msra.gmra.mxu1 %v10154_v10  ;;  %v3873_v56 = vpop.f32.mrf.mxu0  ;;  %v3761_v9 = vadd.f32 %v3760_v59, %v3705_v49 }
 0x378   :  { %v3799_v53 = vpop.f32.mrf.mxu2  ;;  %v3874_v16 = vadd.f32 %v3873_v56, %v3829_v41 }
 0x379   :  { %v3800_v47 = vadd.f32 %v3799_v53, %v3761_v9 }
 0x37b   :  { %5168 = vmatmul.f32.gmra.mxu2 %v10156_v20  ;;  %5199 = vmatmul.f32.gmra.mxu3 %v10156_v20  ;;  %v3835_v12 = vadd.f32 %v3834_v21, %v3800_v47 }
 0x37e   :  { %v3904_v46 = vpop.f32.mrf.mxu1  ;;  %v3998_v13 = vpop.f32.mrf.mxu3 }
 0x37f   :  { %5125 = vmatmul.f32.gmra.mxu1 %v10201_v4  ;;  %v3877_v60 = vpop.f32.mrf.mxu0  ;;  %v3905_v33 = vadd.f32 %v3904_v46, %v3874_v16 }
 0x380   :  { %v3939_v1 = vpop.f32.mrf.mxu2  ;;  %v3878_v7 = vadd.f32 %v3877_v60, %v3835_v12 }
 0x386   :  { %v10297_v32 = vpop.f32.mrf.mxu3  ;;  %v3908_v48 = vpop.f32.mrf.mxu1 }
 0x387   :  { %v4036_v0 = vpop.f32.mrf.mxu0 }
 0x388   :  { %v10299_v29 = vpop.f32.mrf.mxu2 }
 0x389   :  { %v4003_v21 = vadd.f32 %v10297_v32, %v10299_v29 }
 0x38e   :  { %v10301_v2 = vpop.f32.mrf.mxu3 }
 0x38f   :  { %v10303_v10 = vpop.f32.mrf.mxu0 }
 0x390   :  { %v4115_v51 = vpop.f32.mrf.mxu2 }
 0x391   :  { %v4070_v54 = vpop.f32.mrf.mxu1 }
 0x396   :  { %v10305_v14 = vpop.f32.mrf.mxu3 }
 0x397   :  { %v4187_v20 = vpop.f32.mrf.mxu0 }
 0x398   :  { %v4188_v5 = vadd.f32 %v4187_v20, %v3905_v33 }
 0x399   :  { %v10307_v39 = vpop.f32.mrf.mxu1  ;;  %v10309_v4 = vpop.f32.mrf.mxu2 }
 0x39e   :  { %v4318_v50 = vpop.f32.mrf.mxu3 }
 0x3a0   :  { %v4195_v35 = vpop.f32.mrf.mxu0 }
 0x3a1   :  { %v4246_v24 = vpop.f32.mrf.mxu1  ;;  %v4284_v62 = vpop.f32.mrf.mxu2 }
 0x3a2   :  { %v4247_v45 = vadd.f32 %v4246_v24, %v4188_v5 }
 0x3a4   :  { %v4285_v42 = vadd.f32 %v4284_v62, %v4247_v45 }
 0x3a6   :  { %v4319_v3 = vadd.f32 %v4318_v50, %v4285_v42 }
 0x3a8   :  { %v4363_v6 = vpop.f32.mrf.mxu0  ;;  %v10311_v31 = vpop.f32.mrf.mxu3 }
 0x3a9   :  { %v4364_v24 = vadd.f32 %v4363_v6, %v4319_v3 }
 0x3aa   :  { %v4250_v37 = vpop.f32.mrf.mxu1  ;;  %v4289_v15 = vpop.f32.mrf.mxu2 }
 0x3b0   :  { %v10313_v58 = vpop.f32.mrf.mxu0  ;;  %v10315_v18 = vpop.f32.mrf.mxu3 }
 0x3b2   :  { %v4394_v26 = vpop.f32.mrf.mxu1  ;;  %v4429_v36 = vpop.f32.mrf.mxu2 }
 0x3b3   :  { %v4395_v62 = vadd.f32 %v4394_v26, %v4364_v24 }
 0x3b8   :  { %v10317_v27 = vpop.f32.mrf.mxu0  ;;  %v10319_v57 = vpop.f32.mrf.mxu3 }
 0x3ba   :  { %v10321_v22 = vpop.f32.mrf.mxu1  ;;  %v10323_v43 = vpop.f32.mrf.mxu2 }
 0x3c0   :  { %v10325_v44 = vpop.f32.mrf.mxu3 }
 0x3c1   :  { %11424 = vst [vmem:[#allocation33_spill] sm:$0xff] %v10325_v44  ;;  %v10327_v38 = vpop.f32.mrf.mxu0  ;;  %v3909_v44 = vadd.f32 %v3908_v48, %v3878_v7 }
 0x3c2   :  { %v10329_v17 = vpop.f32.mrf.mxu1  ;;  %v10331_v55 = vpop.f32.mrf.mxu2 }
 0x3c3   :  { %v4196_v25 = vadd.f32 %v4195_v35, %v3909_v44 }
 0x3c5   :  { %v4251_v41 = vadd.f32 %v4250_v37, %v4196_v25 }
 0x3c8   :  { %v11428_v5 = vld [vmem:[#allocation33_spill] sm:$0xff] }
 0x3c9   :  { %v4747_v30 = vpop.f32.mrf.mxu0  ;;  %v10335_v63 = vpop.f32.mrf.mxu3 }
 0x3ca   :  { %11426 = vst [vmem:[#allocation19_spill] sm:$0xff] %v10335_v63 }
 0x3cb   :  { %v10333_v23 = vpop.f32.mrf.mxu1  ;;  %v10337_v8 = vpop.f32.mrf.mxu2 }
 0x3cc   :  { %11425 = vst [vmem:[#allocation18_spill] sm:$0xff] %v10333_v23  ;;  %v3999_v23 = vadd.f32 %v3998_v13, %v3939_v1  ;;  %v4042_v1 = vadd.f32 %v10303_v10, %v4003_v21  ;;  %v11432_v21 = vmov 0.0  }
 0x3cd   :  { %11427 = vst [vmem:[#allocation17_spill] sm:$0xff] %v10337_v8 }
 0x3ce   :  { %v4037_v8 = vadd.f32 %v4036_v0, %v3999_v23  ;;  %v4290_v0 = vadd.f32 %v4289_v15, %v4251_v41  ;;  %v4077_v37 = vadd.f32 %v10307_v39, %v4042_v1 }
 0x3d0   :  { %v4071_v56 = vadd.f32 %v4070_v54, %v4037_v8  ;;  %v4325_v32 = vadd.f32 %v10311_v31, %v4290_v0  ;;  %v4120_v10 = vadd.f32 %v10309_v4, %v4077_v37 }
 0x3d1   :  { %v4755_v61 = vpop.f32.mrf.mxu0  ;;  %v4878_v34 = vpop.f32.mrf.mxu3  ;;  %v11431_v3 = vld [vmem:[#allocation19_spill] sm:$0xff] }
 0x3d2   :  { %v4116_v20 = vadd.f32 %v4115_v51, %v4071_v56  ;;  %v4368_v6 = vadd.f32 %v10313_v58, %v4325_v32  ;;  %v4151_v31 = vadd.f32 %v10305_v14, %v4120_v10 }
 0x3d3   :  { %v4806_v52 = vpop.f32.mrf.mxu1  ;;  %v4844_v40 = vpop.f32.mrf.mxu2  ;;  %v11429_v45 = vld [vmem:[#allocation18_spill] sm:$0xff] }
 0x3d4   :  { %v4807_v19 = vadd.f32 %v4806_v52, %v4747_v30  ;;  %v4147_v50 = vadd.f32 %v10301_v2, %v4116_v20  ;;  %v4399_v2 = vadd.f32 %v10321_v22, %v4368_v6  ;;  %v4438_v4 = vadd.f32 %v10323_v43, %v4151_v31  ;;  %v5354_v6 = vld [vmem:[#allocation8 + $0x18] sm:$0xff] }
 0x3d6   :  { %v4845_v28 = vadd.f32 %v4844_v40, %v4807_v19  ;;  %v4430_v29 = vadd.f32 %v4429_v36, %v4147_v50  ;;  %v4493_v40 = vadd.f32 %v10319_v57, %v4438_v4  ;;  %v11430_v57 = vld [vmem:[#allocation17_spill] sm:$0xff] }
 0x3d8   :  { %v4879_v53 = vadd.f32 %v4878_v34, %v4845_v28  ;;  %v4532_v43 = vadd.f32 %v10327_v38, %v4493_v40 }
 0x3da   :  { %v4923_v11 = vpop.f32.mrf.mxu0  ;;  %v4567_v19 = vadd.f32 %v11429_v45, %v4532_v43 }
 0x3db   :  { %v4924_v60 = vadd.f32 %v4923_v11, %v4879_v53 }
 0x3dc   :  { %v4810_v63 = vpop.f32.mrf.mxu1 }
 0x3dd   :  { %v4811_v46 = vadd.f32 %v4810_v63, %v4755_v61  ;;  %v4489_v63 = vadd.f32 %v10315_v18, %v4430_v29 }
 0x3de   :  { %v4849_v49 = vpop.f32.mrf.mxu2  ;;  %v4884_v59 = vpop.f32.mrf.mxu3 }
 0x3df   :  { %v4850_v30 = vadd.f32 %v4849_v49, %v4811_v46  ;;  %v4527_v36 = vadd.f32 %v10317_v27, %v4489_v63 }
 0x3e1   :  { %v4885_v51 = vadd.f32 %v4884_v59, %v4850_v30  ;;  %v4561_v58 = vadd.f32 %v10329_v17, %v4527_v36  ;;  %v4610_v59 = vadd.f32 %v11430_v57, %v4567_v19 }
 0x3e2   :  { %v4927_v13 = vpop.f32.mrf.mxu0 }
 0x3e3   :  { %v4928_v15 = vadd.f32 %v4927_v13, %v4885_v51  ;;  %v4606_v14 = vadd.f32 %v10331_v55, %v4561_v58  ;;  %v4641_v41 = vadd.f32 %v11431_v3, %v4610_v59  ;;  %v5353_v13 = vld [vmem:[#allocation8 + $0x10] sm:$0xff] }
 0x3e4   :  { %v4954_v48 = vpop.f32.mrf.mxu1  ;;  %v5356_v30 = vsel %vm263_vm0, %v5353_v13, 0 }
 0x3e5   :  { %v4955_v23 = vadd.f32 %v4954_v48, %v4924_v60  ;;  %v4637_v12 = vadd.f32 %v11428_v5, %v4606_v14 }
 0x3e6   :  { %v4989_v54 = vpop.f32.mrf.mxu2  ;;  %v5048_v35 = vpop.f32.mrf.mxu3 }
 0x3e7   :  { %v10344_v44 = vadd.f32 %v4955_v23, %v4395_v62  ;;  %v5049_v52 = vadd.f32 %v5048_v35, %v4989_v54  ;;  %v10462_v35 = vand.u32 4294901760, %v5356_v30 }
 0x3e9   :  { %5329 = vrot.lane.b32.xlu2 %v10344_v44, %s7215_s30  ;;  %v10467_v37 = vand.u32 4294901760, %v10344_v44  ;;  %v10483_v63 = vsub.f32 %v5356_v30, %v10462_v35 }
 0x3ea   :  { %v5086_v8 = vpop.f32.mrf.mxu0 }
 0x3eb   :  { %v5087_v18 = vadd.f32 %v5086_v8, %v5049_v52  ;;  %v5359_v8 = vsel %vm263_vm0, %v5354_v6, 0  ;;  %v10500_v36 = vand.u32 4294901760, %v10483_v63 }
 0x3ec   :  { %v4958_v26 = vpop.f32.mrf.mxu1 }
 0x3ed   :  { %v4959_v39 = vadd.f32 %v4958_v26, %v4928_v15 }
 0x3ee   :  { %v4997_v9 = vpop.f32.mrf.mxu2  ;;  %v5052_v61 = vpop.f32.mrf.mxu3 }
 0x3ef   :  { %v10355_v16 = vadd.f32 %v4959_v39, %v4399_v2  ;;  %v5053_v11 = vadd.f32 %v5052_v61, %v4997_v9  ;;  %v10489_v39 = vsub.f32 %v10344_v44, %v10467_v37 }
 0x3f1   :  { %5301 = vrot.lane.b32.xlu2 %v10355_v16, %s7214_s29  ;;  %5335 = vrot.lane.b32.xlu0 %v10355_v16, %s7215_s30  ;;  %v10460_v54 = vand.u32 4294901760, %v10355_v16  ;;  %v5430_v58 = vand.u32 4294901760, %v10489_v39 }
 0x3f2   :  { %v5091_v17 = vpop.f32.mrf.mxu0 }
 0x3f3   :  { %v5092_v42 = vadd.f32 %v5091_v17, %v5053_v11  ;;  %v10480_v26 = vsub.f32 %v10355_v16, %v10460_v54  ;;  %v5431_v11 = vsub.f32 %v10489_v39, %v5430_v58 }
 0x3f4   :  { %v5120_v22 = vpop.f32.mrf.mxu1 }
 0x3f5   :  { %v5121_v27 = vadd.f32 %v5120_v22, %v5087_v18  ;;  %v5424_v31 = vand.u32 4294901760, %v10480_v26  ;;  %v5432_v3 = vand.u32 4294901760, %v5431_v11 }
 0x3f6   :  { %v5165_v34 = vpop.f32.mrf.mxu2  ;;  %v5196_v47 = vpop.f32.mrf.mxu3 }
 0x3f7   :  { %v5166_v33 = vadd.f32 %v5165_v34, %v5121_v27  ;;  %v5425_v27 = vsub.f32 %v10480_v26, %v5424_v31  ;;  %v5386_v34 = vsub.f32 %v10483_v63, %v10500_v36 }
 0x3f9   :  { %v5197_v7 = vadd.f32 %v5196_v47, %v5166_v33  ;;  %v5426_v57 = vand.u32 4294901760, %v5425_v27 }
 0x3fb   :  { %v10368_v28 = vadd.f32 %v5197_v7, %v4637_v12 }
 0x3fc   :  { %v5126_v49 = vpop.f32.mrf.mxu1 }
 0x3fd   :  { %v5127_v55 = vadd.f32 %v5126_v49, %v5092_v42  ;;  %5331 = vrot.lane.b32.xlu0 %v10368_v28, %s7215_s30 }
 0x3fe   :  { %v5169_v56 = vpop.f32.mrf.mxu2  ;;  %v5200_v38 = vpop.f32.mrf.mxu3 }
 0x3ff   :  { %v5170_v25 = vadd.f32 %v5169_v56, %v5127_v55  ;;  %v10549_v55 = vand.u32 4294901760, %v5386_v34 }
 0x401   :  { %v5201_v53 = vadd.f32 %v5200_v38, %v5170_v25 }
 0x403   :  { %v10374_v46 = vadd.f32 %v5201_v53, %v4641_v41 }
 0x405   :  { %5337 = vrot.lane.b32.xlu1 %v10374_v46, %s7215_s30  ;;  %5303 = vrot.lane.b32.xlu2 %v10374_v46, %s7214_s29  ;;  %v10575_v30 = vand.u32 4294901760, %v10374_v46 }
 0x406   :  { %5295 = vrot.lane.b32.xlu0 %v10344_v44, %s7214_s29 }
 0x40d   :  { %7061 = vrot.lane.b32.xlu1 %v11432_v21, %s7214_s29  ;;  %5255 = vrot.lane.b32.xlu2 %v10355_v16, %s7216_s2 }
 0x40e   :  { %5297 = vrot.lane.b32.xlu0 %v10368_v28, %s7214_s29 }
 0x415   :  { %7066 = vrot.lane.b32.xlu1 %v11432_v21, %s7215_s30  ;;  %5279 = vrot.lane.b32.xlu2 %v10355_v16, %s7211_s25 }
 0x416   :  { %5249 = vrot.lane.b32.xlu0 %v10344_v44, %s7216_s2 }
 0x41d   :  { %7071 = vrot.lane.b32.xlu1 %v11432_v21, %s7216_s2  ;;  %5231 = vrot.lane.b32.xlu2 %v10355_v16, %s7217_s4 }
 0x41e   :  { %5273 = vrot.lane.b32.xlu0 %v10344_v44, %s7211_s25 }
 0x425   :  { %7076 = vrot.lane.b32.xlu1 %v11432_v21, %s7211_s25  ;;  %5251 = vrot.lane.b32.xlu2 %v10368_v28, %s7216_s2 }
 0x426   :  { %5225 = vrot.lane.b32.xlu0 %v10344_v44, %s7217_s4 }
 0x42d   :  { %7081 = vrot.lane.b32.xlu1 %v11432_v21, %s7217_s4  ;;  %5233 = vrot.lane.b32.xlu2 %v10374_v46, %s7217_s4 }
 0x42e   :  { %5281 = vrot.lane.b32.xlu0 %v10374_v46, %s7211_s25 }
 0x435   :  { %5257 = vrot.lane.b32.xlu1 %v10374_v46, %s7216_s2  ;;  %6389 = vrot.lane.b32.xlu2 %v10355_v16, %s7219_s6 }
 0x436   :  { %5227 = vrot.lane.b32.xlu0 %v10368_v28, %s7217_s4 }
 0x43d   :  { %5275 = vrot.lane.b32.xlu1 %v10368_v28, %s7211_s25  ;;  %6367 = vrot.lane.b32.xlu2 %v10374_v46, %s7218_s5 }
 0x43e   :  { %6359 = vrot.lane.b32.xlu0 %v10344_v44, %s7218_s5 }
 0x443   :  { %v5330_v20 = vpop.permute.xlu2 %5329 }
 0x445   :  { %6365 = vrot.lane.b32.xlu1 %v10355_v16, %s7218_s5  ;;  %6385 = vrot.lane.b32.xlu2 %v10368_v28, %s7219_s6 }
 0x446   :  { %6341 = vrot.lane.b32.xlu0 %v10355_v16, %s7220_s7 }
 0x44b   :  { %v10450_v1 = vpop.permute.xlu2 %5301 }
 0x44d   :  { %6361 = vrot.lane.b32.xlu1 %v10368_v28, %s7218_s5  ;;  %6335 = vrot.lane.b32.xlu2 %v10344_v44, %s7220_s7 }
 0x44e   :  { %6391 = vrot.lane.b32.xlu0 %v10374_v46, %s7219_s6 }
 0x455   :  { %6383 = vrot.lane.b32.xlu1 %v10344_v44, %s7219_s6  ;;  %7091 = vrot.lane.b32.xlu2 %v11432_v21, %s7219_s6  ;;  %v10505_v44 = vand.u32 4294901760, %v5359_v8 }
 0x456   :  { %6337 = vrot.lane.b32.xlu0 %v10368_v28, %s7220_s7 }
 0x457   :  { %v10530_v5 = vsub.f32 %v5359_v8, %v10505_v44 }
 0x459   :  { %v10555_v38 = vand.u32 4294901760, %v10530_v5 }
 0x45d   :  { %6343 = vrot.lane.b32.xlu1 %v10374_v46, %s7220_s7 }
 0x45e   :  { %7096 = vrot.lane.b32.xlu0 %v11432_v21, %s7220_s7 }
 0x45f   :  { %v5304_v32 = vpop.permute.xlu2 %5303 }
 0x460   :  { %v5308_v41 = vsel %vm210_vm1, %v10450_v1, %v5304_v32 }
 0x463   :  { %v5336_v24 = vpop.permute.xlu0 %5335 }
 0x465   :  { %7086 = vrot.lane.b32.xlu1 %v11432_v21, %s7218_s5 }
 0x467   :  { %v10521_v47 = vpop.permute.xlu2 %5255 }
 0x46f   :  { %v10448_v60 = vpop.permute.xlu0 %5331  ;;  %v10585_v8 = vpop.permute.xlu2 %5279 }
 0x470   :  { %v5341_v48 = vsel %vm247_vm3, %v5330_v20, %v10448_v60 }
 0x471   :  { %v5349_v62 = vsel %vm7367_vm4, %v5341_v48, 0.0 }
 0x472   :  { %v10457_v23 = vand.u32 4294901760, %v5349_v62 }
 0x474   :  { %v10470_v29 = vsub.f32 %v5349_v62, %v10457_v23  ;;  %v5394_v62 = vsub.f32 %v10530_v5, %v10555_v38 }
 0x476   :  { %v5418_v61 = vand.u32 4294901760, %v10470_v29 }
 0x477   :  { %v10464_v50 = vpop.permute.xlu1 %5337 }
 0x478   :  { %v5343_v51 = vsel %vm247_vm3, %v5336_v24, %v10464_v50  ;;  %v10474_v10 = vpop.permute.xlu0 %5295  ;;  %v5419_v14 = vsub.f32 %v10470_v29, %v5418_v61 }
 0x479   :  { %v5351_v15 = vsel %vm7367_vm4, %v5343_v51, 0.0  ;;  %v5316_v51 = vsel %vm7414_vm5, %v5308_v41, 0.0 }
 0x47a   :  { %v10485_v2 = vand.u32 4294901760, %v5351_v15  ;;  %v5420_v42 = vand.u32 4294901760, %v5419_v14  ;;  %v10610_v27 = vand.u32 4294901760, %v5316_v51 }
 0x47c   :  { %v10493_v9 = vsub.f32 %v5351_v15, %v10485_v2  ;;  %5372 = vmatpush.msrb.mxu0 %v10485_v2  ;;  %5505 = vmatpush.msrb.mxu3 %v10485_v2 }
 0x47e   :  { %v5412_v16 = vand.u32 4294901760, %v10493_v9  ;;  %5374 = vmatpush.msrb.mxu0 %v10457_v23  ;;  %5467 = vmatpush.msrb.mxu2 %v10493_v9 }
 0x47f   :  { %5507 = vmatpush.msrb.mxu3 %v10457_v23  ;;  %v7062_v4 = vpop.permute.xlu1 %7061 }
 0x480   :  { %v7064_v52 = vunpack.i.h.bf16 %v7062_v4  ;;  %v7063_v18 = vunpack.i.l.bf16 %v7062_v4  ;;  %v5298_v22 = vpop.permute.xlu0 %5297  ;;  %5376 = vmatpush.msrb.mxu0 %v10460_v54  ;;  %5470 = vmatpush.msrb.mxu2 %v10470_v29  ;;  %v5413_v40 = vsub.f32 %v10493_v9, %v5412_v16 }
 0x481   :  { %5509 = vmatpush.msrb.mxu3 %v10460_v54  ;;  %v5306_v9 = vsel %vm210_vm1, %v10474_v10, %v5298_v22 }
 0x482   :  { %v5305_v43 = vsel %vm210_vm1, %v7064_v52, %v10474_v10  ;;  %v5307_v33 = vsel %vm210_vm1, %v7063_v18, %v10450_v1  ;;  %5378 = vmatpush.msrb.mxu0 %v10467_v37  ;;  %5473 = vmatpush.msrb.mxu2 %v10480_v26  ;;  %v5414_v17 = vand.u32 4294901760, %v5413_v40  ;;  %v10599_v40 = vand.u32 4294901760, %v10368_v28 }
 0x483   :  { %v5313_v45 = vsel %vm7351_vm2, %v5305_v43, 0.0  ;;  %v5315_v19 = vsel %vm7351_vm2, %v5307_v33, 0.0  ;;  %5511 = vmatpush.msrb.mxu3 %v10467_v37  ;;  %v10602_v10 = vand.u32 4294901760, %v5394_v62  ;;  %v5314_v29 = vsel %vm7414_vm5, %v5306_v9, 0.0 }
 0x484   :  { %5415 = vmatpush.msrb.mxu1 %v5414_v17  ;;  %5476 = vmatpush.msrb.mxu2 %v10489_v39  ;;  %v10541_v7 = vand.u32 4294901760, %v5315_v19  ;;  %v10543_v49 = vand.u32 4294901760, %v5313_v45  ;;  %v10618_v43 = vsub.f32 %v10374_v46, %v10575_v30  ;;  %v10629_v26 = vsub.f32 %v10368_v28, %v10599_v40 }
 0x486   :  { %5380 = vmatpush.msrb.mxu0 %v10541_v7  ;;  %5421 = vmatpush.msrb.mxu1 %v5420_v42  ;;  %v10547_v59 = vsub.f32 %v5315_v19, %v10541_v7  ;;  %v10552_v56 = vsub.f32 %v5313_v45, %v10543_v49  ;;  %v10637_v19 = vsub.f32 %v5316_v51, %v10610_v27  ;;  %v5666_v39 = vand.u32 4294901760, %v10618_v43 }
 0x487   :  { %5513 = vmatpush.msrb.mxu3 %v10541_v7  ;;  %v7067_v25 = vpop.permute.xlu1 %7066  ;;  %v5672_v42 = vand.u32 4294901760, %v10629_v26 }
 0x488   :  { %v7069_v53 = vunpack.i.h.bf16 %v7067_v25  ;;  %v7068_v21 = vunpack.i.l.bf16 %v7067_v25  ;;  %v10560_v20 = vpop.permute.xlu0 %5249  ;;  %5382 = vmatpush.msrb.mxu0 %v10543_v49  ;;  %5427 = vmatpush.msrb.mxu1 %v5426_v57  ;;  %v5436_v24 = vand.u32 4294901760, %v10547_v59  ;;  %v5442_v13 = vand.u32 4294901760, %v10552_v56  ;;  %v10648_v57 = vpop.permute.xlu2 %5231 }
 0x489   :  { %5479 = vmatpush.msrb.mxu2 %v10547_v59  ;;  %5515 = vmatpush.msrb.mxu3 %v10543_v49  ;;  %v5667_v41 = vsub.f32 %v10618_v43, %v5666_v39 }
 0x48a   :  { %v5342_v48 = vsel %vm247_vm3, %v10448_v60, %v7069_v53  ;;  %v5344_v1 = vsel %vm247_vm3, %v10464_v50, %v7068_v21  ;;  %5388 = vmatmul.f32.vlgmr.msrb.gmra.mxu0 %v10549_v55  ;;  %5433 = vmatpush.msrb.mxu1 %v5432_v3  ;;  %v5437_v50 = vsub.f32 %v10547_v59, %v5436_v24  ;;  %v5678_v53 = vand.u32 4294901760, %v10637_v19 }
 0x48b   :  { %v5350_v15 = vsel %vm7430_vm6, %v5342_v48, 0.0  ;;  %v5352_v60 = vsel %vm7430_vm6, %v5344_v1, 0.0  ;;  %5542 = vmatpush.msra.mxu0 %v5412_v16  ;;  %5482 = vmatpush.msrb.mxu2 %v10552_v56  ;;  %v5443_v52 = vsub.f32 %v10552_v56, %v5442_v13  ;;  %v5673_v21 = vsub.f32 %v10629_v26, %v5672_v42 }
 0x48c   :  { %5485 = vmatmul.f32.vlgmr.msrb.gmra.mxu2 %v10483_v63  ;;  %v10590_v4 = vand.u32 4294901760, %v5352_v60  ;;  %v10593_v18 = vand.u32 4294901760, %v5350_v15  ;;  %5519 = vmatmul.f32.vlgmr.msrb.gmra.mxu3 %v10500_v36  ;;  %v5438_v16 = vand.u32 4294901760, %v5437_v50  ;;  %v5668_v48 = vand.u32 4294901760, %v5667_v41  ;;  %v5291_v41 = vld [vmem:[#allocation8] sm:$0xff] }
 0x48d   :  { %5546 = vmatpush.msra.mxu0 %v5418_v61  ;;  %v5444_v34 = vand.u32 4294901760, %v5443_v52  ;;  %v5679_v1 = vsub.f32 %v10637_v19, %v5678_v53  ;;  %v5674_v51 = vand.u32 4294901760, %v5673_v21 }
 0x48e   :  { %5614 = vmatpush.msra.mxu2 %v10590_v4  ;;  %v10605_v22 = vsub.f32 %v5352_v60, %v10590_v4  ;;  %v10608_v14 = vsub.f32 %v5350_v15, %v10593_v18  ;;  %5439 = vmatpush.msrb.mxu1 %v5438_v16 }
 0x48f   :  { %5550 = vmatpush.msra.mxu0 %v5424_v31  ;;  %v7072_v61 = vpop.permute.xlu1 %7071  ;;  %v10631_v31 = vand.u32 4294901760, %v5314_v29 }
 0x490   :  { %v10620_v33 = vpop.permute.xlu0 %5273  ;;  %5616 = vmatpush.msra.mxu2 %v10593_v18  ;;  %v5654_v17 = vand.u32 4294901760, %v10605_v22  ;;  %v5660_v45 = vand.u32 4294901760, %v10608_v14  ;;  %5445 = vmatpush.msrb.mxu1 %v5444_v34  ;;  %v7073_v11 = vunpack.i.l.bf16 %v7072_v61  ;;  %v7074_v59 = vunpack.i.h.bf16 %v7072_v61  ;;  %v10694_v52 = vpop.permute.xlu2 %5251 }
 0x491   :  { %5554 = vmatpush.msra.mxu0 %v5430_v58  ;;  %5447 = vmatmul.f32.vlgmr.msrb.gmra.mxu1 %v10462_v35 }
 0x492   :  { %5396 = vmatmul.f32.gmra.mxu0 %v10602_v10  ;;  %v5655_v46 = vsub.f32 %v10605_v22, %v5654_v17  ;;  %5583 = vmatpush.msra.mxu1 %v10485_v2  ;;  %v5661_v28 = vsub.f32 %v10608_v14, %v5660_v45  ;;  %v10651_v2 = vsub.f32 %v5314_v29, %v10631_v31 }
 0x493   :  { %5558 = vmatpush.msra.mxu0 %v5436_v24  ;;  %5618 = vmatpush.msra.mxu2 %v10575_v30  ;;  %v5261_v56 = vsel %vm162_vm7, %v7073_v11, %v10521_v47  ;;  %v5259_v24 = vsel %vm162_vm7, %v7074_v59, %v10560_v20 }
 0x494   :  { %v5656_v58 = vand.u32 4294901760, %v5655_v46  ;;  %5525 = vmatmul.f32.gmra.mxu3 %v10555_v38  ;;  %5490 = vmatmul.f32.gmra.mxu2 %v10530_v5  ;;  %v5662_v3 = vand.u32 4294901760, %v5661_v28 }
 0x495   :  { %5562 = vmatpush.msra.mxu0 %v5442_v13  ;;  %5585 = vmatpush.msra.mxu1 %v10457_v23  ;;  %v5269_v13 = vsel %vm7367_vm4, %v5261_v56, 0.0 }
 0x496   :  { %5620 = vmatpush.msra.mxu2 %v10599_v40  ;;  %5657 = vmatpush.msra.mxu3 %v5656_v58  ;;  %v10686_v15 = vand.u32 4294901760, %v5269_v13 }
 0x497   :  { %5709 = vmatpush.msrb.mxu0 %v10605_v22  ;;  %v7077_v25 = vpop.permute.xlu1 %7076  ;;  %5587 = vmatpush.msra.mxu1 %v10460_v54  ;;  %v5684_v54 = vand.u32 4294901760, %v10651_v2 }
 0x498   :  { %5622 = vmatpush.msra.mxu2 %v10610_v27  ;;  %v10664_v23 = vpop.permute.xlu0 %5225  ;;  %5663 = vmatpush.msra.mxu3 %v5662_v3  ;;  %v7078_v62 = vunpack.i.l.bf16 %v7077_v25  ;;  %v7079_v60 = vunpack.i.h.bf16 %v7077_v25 }
 0x499   :  { %5712 = vmatpush.msrb.mxu0 %v10608_v14  ;;  %5589 = vmatpush.msra.mxu1 %v10467_v37  ;;  %v5267_v37 = vsel %vm7367_vm4, %v5259_v24, 0.0  ;;  %v5685_v50 = vsub.f32 %v10651_v2, %v5684_v54  ;;  %v5846_v24 = vsel %vm263_vm0, %v5291_v41, 0 }
 0x49a   :  { %5624 = vmatpush.msra.mxu2 %v10631_v31  ;;  %5451 = vmatmul.f32.gmra.mxu1 %v10505_v44  ;;  %v5285_v16 = vsel %vm187_vm8, %v7078_v62, %v10585_v8  ;;  %v10703_v61 = vand.u32 4294901760, %v5267_v37  ;;  %v5283_v34 = vsel %vm187_vm8, %v7079_v60, %v10620_v33 }
 0x49b   :  { %5715 = vmatpush.msrb.mxu0 %v10618_v43  ;;  %5591 = vmatpush.msra.mxu1 %v10541_v7  ;;  %v5680_v7 = vand.u32 4294901760, %v5679_v1  ;;  %v10729_v28 = vand.u32 4294901760, %v5283_v34 }
 0x49c   :  { %5564 = vmatmul.f32.vlgmr.msra.gmra.mxu0 %v10462_v35  ;;  %5784 = vmatpush.msrb.mxu2 %v5654_v17  ;;  %v5686_v17 = vand.u32 4294901760, %v5685_v50  ;;  %v10727_v43 = vsub.f32 %v5267_v37, %v10703_v61 }
 0x49d   :  { %5669 = vmatpush.msra.mxu3 %v5668_v48  ;;  %5718 = vmatpush.msrb.mxu0 %v10629_v26  ;;  %v5260_v48 = vsel %vm162_vm7, %v10560_v20, %v10694_v52 }
 0x49e   :  { %5593 = vmatpush.msra.mxu1 %v10543_v49  ;;  %5630 = vmatmul.f32.vlgmr.msra.gmra.mxu2 %v10549_v55  ;;  %v10707_v55 = vsub.f32 %v5269_v13, %v10686_v15  ;;  %v5908_v25 = vand.u32 4294901760, %v10727_v43 }
 0x49f   :  { %5675 = vmatpush.msra.mxu3 %v5674_v51  ;;  %v7082_v9 = vpop.permute.xlu1 %7081  ;;  %5788 = vmatpush.msrb.mxu2 %v5660_v45  ;;  %v10716_v45 = vand.u32 4294901760, %v5285_v16  ;;  %v10794_v51 = vand.u32 4294901760, %v5846_v24 }
 0x4a0   :  { %5721 = vmatpush.msrb.mxu0 %v10637_v19  ;;  %v7084_v49 = vunpack.i.h.bf16 %v7082_v9  ;;  %v7083_v22 = vunpack.i.l.bf16 %v7082_v9  ;;  %v10701_v29 = vpop.permute.xlu0 %5281  ;;  %5747 = vmatpush.msrb.mxu1 %v10590_v4  ;;  %v5902_v58 = vand.u32 4294901760, %v10707_v55 }
 0x4a1   :  { %5681 = vmatpush.msra.mxu3 %v5680_v7  ;;  %5792 = vmatpush.msrb.mxu2 %v5666_v39  ;;  %v10744_v59 = vsub.f32 %v5285_v16, %v10716_v45  ;;  %v5292_v16 = vld [vmem:[#allocation8 + $0x8] sm:$0xff] }
 0x4a2   :  { %5724 = vmatpush.msrb.mxu0 %v10651_v2  ;;  %v5237_v14 = vsel %vm133_vm9, %v7083_v22, %v10648_v57  ;;  %5749 = vmatpush.msrb.mxu1 %v10593_v18  ;;  %v5235_v11 = vsel %vm133_vm9, %v7084_v49, %v10664_v23  ;;  %v5903_v19 = vsub.f32 %v10707_v55, %v5902_v58 }
 0x4a3   :  { %v5245_v46 = vsel %vm7351_vm2, %v5237_v14, 0.0  ;;  %5796 = vmatpush.msrb.mxu2 %v5672_v42  ;;  %5687 = vmatpush.msra.mxu3 %v5686_v17  ;;  %v5243_v26 = vsel %vm7351_vm2, %v5235_v11, 0.0  ;;  %v5909_v2 = vsub.f32 %v10727_v43, %v5908_v25  ;;  %v10819_v49 = vsub.f32 %v5846_v24, %v10794_v51 }
 0x4a4   :  { %5862 = vmatpush.msra.mxu0 %v10686_v15  ;;  %5751 = vmatpush.msrb.mxu1 %v10575_v30  ;;  %v10733_v39 = vand.u32 4294901760, %v5245_v46  ;;  %v10765_v21 = vand.u32 4294901760, %v5243_v26  ;;  %v5904_v13 = vand.u32 4294901760, %v5903_v19 }
 0x4a5   :  { %5568 = vmatmul.f32.gmra.mxu0 %v10505_v44  ;;  %5595 = vmatmul.f32.vlgmr.msra.gmra.mxu1 %v10462_v35  ;;  %v5910_v20 = vand.u32 4294901760, %v5909_v2 }
 0x4a6   :  { %5689 = vmatmul.f32.vlgmr.msra.gmra.mxu3 %v10462_v35  ;;  %5800 = vmatpush.msrb.mxu2 %v5678_v53  ;;  %v10758_v3 = vsub.f32 %v5245_v46, %v10733_v39  ;;  %v5234_v53 = vpop.permute.xlu2 %5233  ;;  %v10788_v1 = vsub.f32 %v5243_v26, %v10765_v21  ;;  %v10853_v26 = vand.u32 4294901760, %v10819_v49 }
 0x4a7   :  { %5825 = vmatpush.msrb.mxu3 %v10590_v4  ;;  %v5258_v42 = vpop.permute.xlu1 %5257  ;;  %5864 = vmatpush.msra.mxu0 %v10703_v61  ;;  %v10755_v4 = vsub.f32 %v5283_v34, %v10729_v28  ;;  %v5238_v22 = vsel %vm133_vm9, %v10648_v57, %v5234_v53  ;;  %v5849_v57 = vsel %vm263_vm0, %v5292_v16, 0 }
 0x4a8   :  { %5753 = vmatpush.msrb.mxu1 %v10599_v40  ;;  %v10748_v56 = vpop.permute.xlu0 %5227  ;;  %5638 = vmatmul.f32.gmra.mxu2 %v10602_v10  ;;  %v5262_v10 = vsel %vm162_vm7, %v10521_v47, %v5258_v42  ;;  %v5932_v52 = vand.u32 4294901760, %v10788_v1  ;;  %v5246_v11 = vsel %vm7414_vm5, %v5238_v22, 0.0  ;;  %v5876_v53 = vsub.f32 %v10819_v49, %v10853_v26 }
 0x4a9   :  { %5827 = vmatpush.msrb.mxu3 %v10593_v18  ;;  %5804 = vmatpush.msrb.mxu2 %v5684_v54  ;;  %v5914_v18 = vand.u32 4294901760, %v10744_v59  ;;  %v5270_v47 = vsel %vm7430_vm6, %v5262_v10, 0.0  ;;  %v5920_v54 = vand.u32 4294901760, %v10755_v4 }
 0x4aa   :  { %5866 = vmatpush.msra.mxu0 %v10716_v45  ;;  %5755 = vmatpush.msrb.mxu1 %v10610_v27  ;;  %v10796_v60 = vand.u32 4294901760, %v5270_v47 }
 0x4ab   :  { %5957 = vmatpush.msra.mxu2 %v10707_v55  ;;  %5829 = vmatpush.msrb.mxu3 %v10575_v30  ;;  %v5926_v30 = vand.u32 4294901760, %v10758_v3  ;;  %v5915_v62 = vsub.f32 %v10744_v59, %v5914_v18  ;;  %v5921_v50 = vsub.f32 %v10755_v4, %v5920_v54 }
 0x4ac   :  { %5868 = vmatpush.msra.mxu0 %v10729_v28  ;;  %5757 = vmatpush.msrb.mxu1 %v10631_v31  ;;  %v10828_v14 = vsub.f32 %v5270_v47, %v10796_v60 }
 0x4ad   :  { %5960 = vmatpush.msra.mxu2 %v10727_v43  ;;  %5831 = vmatpush.msrb.mxu3 %v10599_v40  ;;  %v5268_v40 = vsel %vm7430_vm6, %v5260_v48, 0.0  ;;  %v5927_v7 = vsub.f32 %v10758_v3, %v5926_v30 }
 0x4ae   :  { %5870 = vmatpush.msra.mxu0 %v10733_v39  ;;  %5905 = vmatpush.msra.mxu1 %v5904_v13  ;;  %v10823_v55 = vand.u32 4294901760, %v5268_v40  ;;  %v10825_v34 = vpop.permute.xlu2 %6389  ;;  %v6144_v42 = vand.u32 4294901760, %v10828_v14  ;;  %v10909_v13 = vand.u32 4294901760, %v5876_v53 }
 0x4af   :  { %5963 = vmatpush.msra.mxu2 %v10744_v59  ;;  %v5276_v37 = vpop.permute.xlu1 %5275  ;;  %5599 = vmatmul.f32.gmra.mxu1 %v10505_v44  ;;  %v5928_v17 = vand.u32 4294901760, %v5927_v7 }
 0x4b0   :  { %5693 = vmatmul.f32.gmra.mxu3 %v10505_v44  ;;  %5727 = vmatmul.f32.vlgmr.msrb.gmra.mxu0 %v10483_v63  ;;  %v10811_v9 = vpop.permute.xlu0 %6359  ;;  %v5286_v63 = vsel %vm187_vm8, %v10585_v8, %v10701_v29  ;;  %v5922_v8 = vand.u32 4294901760, %v5921_v50  ;;  %v5284_v29 = vsel %vm187_vm8, %v10620_v33, %v5276_v37  ;;  %v5236_v33 = vsel %vm133_vm9, %v10664_v23, %v10748_v56 }
 0x4b1   :  { %5833 = vmatpush.msrb.mxu3 %v10610_v27  ;;  %5872 = vmatpush.msra.mxu0 %v10765_v21  ;;  %v5916_v27 = vand.u32 4294901760, %v5915_v62  ;;  %v10836_v46 = vand.u32 4294901760, %v5286_v63  ;;  %v10856_v43 = vsub.f32 %v5268_v40, %v10823_v55  ;;  %v10864_v23 = vand.u32 4294901760, %v5849_v57 }
 0x4b2   :  { %5911 = vmatpush.msra.mxu1 %v5910_v20  ;;  %5966 = vmatpush.msra.mxu2 %v10755_v4  ;;  %v10867_v56 = vand.u32 4294901760, %v5246_v11  ;;  %v5244_v41 = vsel %vm7414_vm5, %v5236_v33, 0.0  ;;  %v6145_v4 = vsub.f32 %v10828_v14, %v6144_v42 }
 0x4b3   :  { %6032 = vmatpush.msrb.mxu0 %v5902_v58  ;;  %5806 = vmatmul.f32.vlgmr.msrb.gmra.mxu2 %v10462_v35  ;;  %v10870_v19 = vsub.f32 %v5286_v63, %v10836_v46  ;;  %v6150_v2 = vand.u32 4294901760, %v10856_v43 }
 0x4b4   :  { %5835 = vmatpush.msrb.mxu3 %v10631_v31  ;;  %5917 = vmatpush.msra.mxu1 %v5916_v27  ;;  %v5933_v31 = vsub.f32 %v10788_v1, %v5932_v52  ;;  %v6146_v48 = vand.u32 4294901760, %v6145_v4 }
 0x4b5   :  { %5969 = vmatpush.msra.mxu2 %v10758_v3  ;;  %6036 = vmatpush.msrb.mxu0 %v5908_v25  ;;  %v10862_v25 = vand.u32 4294901760, %v5284_v29  ;;  %v6156_v47 = vand.u32 4294901760, %v10870_v19  ;;  %v6151_v3 = vsub.f32 %v10856_v43, %v6150_v2 }
 0x4b6   :  { %5995 = vmatpush.msra.mxu3 %v10686_v15  ;;  %5923 = vmatpush.msra.mxu1 %v5922_v8  ;;  %v5934_v59 = vand.u32 4294901760, %v5933_v31  ;;  %v10901_v24 = vpop.permute.xlu2 %6367 }
 0x4b7   :  { %5972 = vmatpush.msra.mxu2 %v10788_v1  ;;  %v10850_v58 = vpop.permute.xlu1 %6365  ;;  %6040 = vmatpush.msrb.mxu0 %v5914_v18  ;;  %v10882_v10 = vsub.f32 %v5284_v29, %v10862_v25  ;;  %v6157_v1 = vsub.f32 %v10870_v19, %v6156_v47  ;;  %v6152_v20 = vand.u32 4294901760, %v6151_v3  ;;  %v6403_v3 = vld [vmem:[#allocation8 + $0x20] sm:$0xff] }
 0x4b8   :  { %5997 = vmatpush.msra.mxu3 %v10703_v61  ;;  %5929 = vmatpush.msra.mxu1 %v5928_v17  ;;  %v10885_v18 = vpop.permute.xlu0 %6341 }
 0x4b9   :  { %6104 = vmatpush.msrb.mxu2 %v10796_v60  ;;  %6044 = vmatpush.msrb.mxu0 %v5920_v54 }
 0x4ba   :  { %5999 = vmatpush.msra.mxu3 %v10716_v45  ;;  %5732 = vmatmul.f32.gmra.mxu0 %v10530_v5  ;;  %v10892_v5 = vsub.f32 %v5849_v57, %v10864_v23 }
 0x4bb   :  { %5761 = vmatmul.f32.vlgmr.msrb.gmra.mxu1 %v10500_v36  ;;  %5837 = vmatmul.f32.vlgmr.msrb.gmra.mxu3 %v10462_v35  ;;  %v10894_v36 = vand.u32 4294901760, %v5244_v41  ;;  %v10899_v35 = vsub.f32 %v5246_v11, %v10867_v56 }
 0x4bc   :  { %5935 = vmatpush.msra.mxu1 %v5934_v59  ;;  %6106 = vmatpush.msrb.mxu2 %v10823_v55 }
 0x4bd   :  { %6001 = vmatpush.msra.mxu3 %v10729_v28  ;;  %6048 = vmatpush.msrb.mxu0 %v5926_v30  ;;  %v10919_v30 = vand.u32 4294901760, %v10892_v5  ;;  %v10922_v62 = vsub.f32 %v5244_v41, %v10894_v36  ;;  %v6168_v37 = vand.u32 4294901760, %v10899_v35 }
 0x4be   :  { %6073 = vmatpush.msrb.mxu1 %v10686_v15  ;;  %5810 = vmatmul.f32.gmra.mxu2 %v10505_v44  ;;  %v6162_v15 = vand.u32 4294901760, %v10882_v10  ;;  %v10945_v16 = vpop.permute.xlu2 %6385 }
 0x4bf   :  { %6003 = vmatpush.msra.mxu3 %v10733_v39  ;;  %v10911_v54 = vpop.permute.xlu1 %6361  ;;  %6108 = vmatpush.msrb.mxu2 %v10836_v46  ;;  %v5884_v40 = vsub.f32 %v10892_v5, %v10919_v30  ;;  %v6174_v50 = vand.u32 4294901760, %v10922_v62 }
 0x4c0   :  { %6052 = vmatpush.msrb.mxu0 %v5932_v52  ;;  %6075 = vmatpush.msrb.mxu1 %v10703_v61  ;;  %v6163_v61 = vsub.f32 %v10882_v10, %v6162_v15  ;;  %v10940_v7 = vpop.permute.xlu0 %6391  ;;  %v6371_v27 = vsel %vm1281_vm10, %v10811_v9, %v10911_v54 }
 0x4c1   :  { %6005 = vmatpush.msra.mxu3 %v10765_v21  ;;  %6110 = vmatpush.msrb.mxu2 %v10862_v25  ;;  %v10951_v63 = vand.u32 4294901760, %v5884_v40  ;;  %v6397_v9 = vsel %vm1306_vm11, %v10825_v34, %v10940_v7 }
 0x4c2   :  { %6077 = vmatpush.msrb.mxu1 %v10716_v45  ;;  %5878 = vmatmul.f32.vlgmr.msra.gmra.mxu0 %v10909_v13  ;;  %v6158_v45 = vand.u32 4294901760, %v6157_v1 }
 0x4c3   :  { %6147 = vmatpush.msrb.mxu3 %v6146_v48  ;;  %6112 = vmatpush.msrb.mxu2 %v10867_v56 }
 0x4c4   :  { %5767 = vmatmul.f32.gmra.mxu1 %v10555_v38  ;;  %5841 = vmatmul.f32.gmra.mxu3 %v10505_v44  ;;  %v6169_v38 = vsub.f32 %v10899_v35, %v6168_v37  ;;  %v6373_v44 = vsel %vm1281_vm10, %v10850_v58, %v10901_v24  ;;  %v10993_v58 = vand.u32 4294901760, %v6397_v9 }
 0x4c5   :  { %6079 = vmatpush.msrb.mxu1 %v10729_v28  ;;  %6114 = vmatpush.msrb.mxu2 %v10894_v36  ;;  %v6164_v28 = vand.u32 4294901760, %v6163_v61  ;;  %v6381_v8 = vsel %vm7367_vm4, %v6373_v44, 0.0  ;;  %v6406_v61 = vsel %vm263_vm0, %v6403_v3, 0 }
 0x4c6   :  { %6153 = vmatpush.msrb.mxu3 %v6152_v20  ;;  %6199 = vmatpush.msra.mxu0 %v10828_v14  ;;  %v6170_v22 = vand.u32 4294901760, %v6169_v38  ;;  %v6379_v14 = vsel %vm7367_vm4, %v6371_v27, 0.0  ;;  %v10968_v29 = vand.u32 4294901760, %v6381_v8  ;;  %v6336_v11 = vpop.permute.xlu2 %6335 }
 0x4c7   :  { %6081 = vmatpush.msrb.mxu1 %v10733_v39  ;;  %v6384_v52 = vpop.permute.xlu1 %6383  ;;  %5975 = vmatmul.f32.vlgmr.msra.gmra.mxu2 %v10819_v49  ;;  %v6175_v39 = vsub.f32 %v10922_v62, %v6174_v50  ;;  %v10978_v0 = vand.u32 4294901760, %v6379_v14 }
 0x4c8   :  { %6159 = vmatpush.msrb.mxu3 %v6158_v45  ;;  %6202 = vmatpush.msra.mxu0 %v10856_v43  ;;  %v10981_v57 = vpop.permute.xlu0 %6337  ;;  %v6395_v34 = vsel %vm1306_vm11, %v6384_v52, %v10945_v16  ;;  %v10991_v33 = vsub.f32 %v6381_v8, %v10968_v29 }
 0x4c9   :  { %6274 = vmatpush.msra.mxu2 %v6144_v42  ;;  %6083 = vmatpush.msrb.mxu1 %v10765_v21  ;;  %v6176_v21 = vand.u32 4294901760, %v6175_v39  ;;  %v11003_v42 = vsub.f32 %v6379_v14, %v10978_v0 }
 0x4ca   :  { %6165 = vmatpush.msrb.mxu3 %v6164_v28  ;;  %6205 = vmatpush.msra.mxu0 %v10870_v19  ;;  %v11006_v19 = vand.u32 4294901760, %v6395_v34  ;;  %v6462_v59 = vand.u32 4294901760, %v10991_v33 }
 0x4cb   :  { %6278 = vmatpush.msra.mxu2 %v6150_v2  ;;  %5886 = vmatmul.f32.gmra.mxu0 %v10951_v63 }
 0x4cc   :  { %6171 = vmatpush.msrb.mxu3 %v6170_v22  ;;  %6208 = vmatpush.msra.mxu0 %v10882_v10  ;;  %v6463_v2 = vsub.f32 %v10991_v33, %v6462_v59  ;;  %v11083_v22 = vand.u32 4294901760, %v6406_v61 }
 0x4cd   :  { %6282 = vmatpush.msra.mxu2 %v6156_v47  ;;  %5937 = vmatmul.f32.vlgmr.msra.gmra.mxu1 %v10794_v51 }
 0x4ce   :  { %6009 = vmatmul.f32.vlgmr.msra.gmra.mxu3 %v10853_v26  ;;  %6211 = vmatpush.msra.mxu0 %v10899_v35  ;;  %v7092_v40 = vpop.permute.xlu2 %7091 }
 0x4cf   :  { %6177 = vmatpush.msrb.mxu3 %v6176_v21  ;;  %v10976_v17 = vpop.permute.xlu1 %6343  ;;  %6237 = vmatpush.msra.mxu1 %v10796_v60  ;;  %v7093_v52 = vunpack.i.l.bf16 %v7092_v40  ;;  %v7094_v8 = vunpack.i.h.bf16 %v7092_v40 }
 0x4d0   :  { %6286 = vmatpush.msra.mxu2 %v6162_v15  ;;  %v6349_v31 = vsel %vm1256_vm12, %v10885_v18, %v10976_v17  ;;  %6214 = vmatpush.msra.mxu0 %v10922_v62  ;;  %v6468_v18 = vand.u32 4294901760, %v11003_v42  ;;  %v6464_v62 = vand.u32 4294901760, %v6463_v2  ;;  %v7097_v20 = vpop.permute.xlu0 %7096 }
 0x4d1   :  { %6315 = vmatpush.msra.mxu3 %v10796_v60  ;;  %5980 = vmatmul.f32.gmra.mxu2 %v10892_v5  ;;  %v6357_v43 = vsel %vm7351_vm2, %v6349_v31, 0.0  ;;  %v6347_v60 = vsel %vm1256_vm12, %v6336_v11, %v10981_v57  ;;  %v7098_v39 = vunpack.i.l.bf16 %v7097_v20  ;;  %v7099_v6 = vunpack.i.h.bf16 %v7097_v20 }
 0x4d2   :  { %6239 = vmatpush.msra.mxu1 %v10823_v55  ;;  %6290 = vmatpush.msra.mxu2 %v6168_v37  ;;  %v11010_v41 = vand.u32 4294901760, %v6357_v43  ;;  %v6355_v53 = vsel %vm7351_vm2, %v6347_v60, 0.0 }
 0x4d3   :  { %6317 = vmatpush.msra.mxu3 %v10823_v55  ;;  %6054 = vmatmul.f32.vlgmr.msrb.gmra.mxu0 %v10794_v51  ;;  %v11014_v55 = vsub.f32 %v6397_v9, %v10993_v58  ;;  %v11028_v4 = vand.u32 4294901760, %v6355_v53  ;;  %v6350_v11 = vsel %vm1256_vm12, %v10976_v17, %v7098_v39  ;;  %v6348_v60 = vsel %vm1256_vm12, %v10981_v57, %v7099_v6 }
 0x4d4   :  { %6241 = vmatpush.msra.mxu1 %v10836_v46  ;;  %6294 = vmatpush.msra.mxu2 %v6174_v50 }
 0x4d5   :  { %6319 = vmatpush.msra.mxu3 %v10836_v46  ;;  %5941 = vmatmul.f32.gmra.mxu1 %v10864_v23  ;;  %v11023_v46 = vsub.f32 %v6395_v34, %v11006_v19  ;;  %v6474_v35 = vand.u32 4294901760, %v11014_v55  ;;  %v11051_v15 = vsub.f32 %v6355_v53, %v11028_v4 }
 0x4d6   :  { %6243 = vmatpush.msra.mxu1 %v10862_v25  ;;  %6015 = vmatmul.f32.gmra.mxu3 %v10919_v30 }
 0x4d7   :  { %6321 = vmatpush.msra.mxu3 %v10862_v25  ;;  %v7087_v10 = vpop.permute.xlu1 %7086  ;;  %6422 = vmatpush.msrb.mxu0 %v10968_v29  ;;  %v11033_v25 = vsub.f32 %v6357_v43, %v11010_v41  ;;  %v6475_v1 = vsub.f32 %v11014_v55, %v6474_v35  ;;  %v6492_v28 = vand.u32 4294901760, %v11051_v15  ;;  %v11104_v43 = vsub.f32 %v6406_v61, %v11083_v22 }
 0x4d8   :  { %6245 = vmatpush.msra.mxu1 %v10867_v56  ;;  %v7088_v12 = vunpack.i.l.bf16 %v7087_v10  ;;  %v7089_v47 = vunpack.i.h.bf16 %v7087_v10 }
 0x4d9   :  { %6323 = vmatpush.msra.mxu3 %v10867_v56  ;;  %6120 = vmatmul.f32.vlgmr.msrb.gmra.mxu2 %v10909_v13  ;;  %v6469_v56 = vsub.f32 %v11003_v42, %v6468_v18  ;;  %v6480_v13 = vand.u32 4294901760, %v11023_v46  ;;  %v6476_v27 = vand.u32 4294901760, %v6475_v1  ;;  %v6493_v34 = vsub.f32 %v11051_v15, %v6492_v28 }
 0x4da   :  { %6247 = vmatpush.msra.mxu1 %v10894_v36  ;;  %6424 = vmatpush.msrb.mxu0 %v10978_v0  ;;  %v6374_v48 = vsel %vm1281_vm10, %v10901_v24, %v7088_v12  ;;  %v6372_v37 = vsel %vm1281_vm10, %v10911_v54, %v7089_v47  ;;  %v11130_v57 = vand.u32 4294901760, %v11104_v43 }
 0x4db   :  { %6517 = vmatpush.msrb.mxu2 %v10991_v33  ;;  %6325 = vmatpush.msra.mxu3 %v10894_v36  ;;  %v6382_v24 = vsel %vm7430_vm6, %v6374_v48, 0.0  ;;  %v6486_v36 = vand.u32 4294901760, %v11033_v25  ;;  %v6470_v50 = vand.u32 4294901760, %v6469_v56  ;;  %v6481_v38 = vsub.f32 %v11023_v46, %v6480_v13 }
 0x4dc   :  { %6426 = vmatpush.msrb.mxu0 %v10993_v58  ;;  %v11069_v45 = vand.u32 4294901760, %v6382_v24  ;;  %v6380_v54 = vsel %vm7430_vm6, %v6372_v37, 0.0  ;;  %v6494_v10 = vand.u32 4294901760, %v6493_v34  ;;  %v6356_v33 = vsel %vm7414_vm5, %v6348_v60, 0.0 }
 0x4dd   :  { %6520 = vmatpush.msrb.mxu2 %v11003_v42  ;;  %6058 = vmatmul.f32.gmra.mxu0 %v10864_v23  ;;  %v6487_v44 = vsub.f32 %v11033_v25, %v6486_v36  ;;  %v11088_v14 = vand.u32 4294901760, %v6380_v54  ;;  %v6482_v9 = vand.u32 4294901760, %v6481_v38  ;;  %v11151_v48 = vand.u32 4294901760, %v6356_v33 }
 0x4de   :  { %6428 = vmatpush.msrb.mxu0 %v11006_v19  ;;  %6179 = vmatmul.f32.vlgmr.msrb.gmra.mxu3 %v10794_v51  ;;  %v11091_v21 = vsub.f32 %v6382_v24, %v11069_v45 }
 0x4df   :  { %6523 = vmatpush.msrb.mxu2 %v11014_v55  ;;  %6085 = vmatmul.f32.vlgmr.msrb.gmra.mxu1 %v10794_v51  ;;  %v6488_v31 = vand.u32 4294901760, %v6487_v44  ;;  %v11115_v17 = vsub.f32 %v6380_v54, %v11088_v14  ;;  %v6436_v55 = vsub.f32 %v11104_v43, %v11130_v57 }
 0x4e0   :  { %6465 = vmatpush.msrb.mxu1 %v6464_v62  ;;  %6555 = vmatpush.msrb.mxu3 %v10968_v29  ;;  %v6704_v53 = vand.u32 4294901760, %v11091_v21 }
 0x4e1   :  { %6526 = vmatpush.msrb.mxu2 %v11023_v46  ;;  %6430 = vmatpush.msrb.mxu0 %v11010_v41  ;;  %v6710_v32 = vand.u32 4294901760, %v11115_v17 }
 0x4e2   :  { %6128 = vmatmul.f32.gmra.mxu2 %v10951_v63  ;;  %6471 = vmatpush.msrb.mxu1 %v6470_v50  ;;  %v6398_v63 = vsel %vm1306_vm11, %v10940_v7, %v7093_v52  ;;  %v6396_v7 = vsel %vm1306_vm11, %v10945_v16, %v7094_v8  ;;  %v6358_v16 = vsel %vm7414_vm5, %v6350_v11, 0.0  ;;  %v6705_v42 = vsub.f32 %v11091_v21, %v6704_v53 }
 0x4e3   :  { %6557 = vmatpush.msrb.mxu3 %v10978_v0  ;;  %6432 = vmatpush.msrb.mxu0 %v11028_v4  ;;  %v11124_v12 = vand.u32 4294901760, %v6396_v7  ;;  %v11138_v2 = vand.u32 4294901760, %v6358_v16  ;;  %v6711_v46 = vsub.f32 %v11115_v17, %v6710_v32 }
 0x4e4   :  { %6477 = vmatpush.msrb.mxu1 %v6476_v27  ;;  %6529 = vmatpush.msrb.mxu2 %v11033_v25 }
 0x4e5   :  { %6559 = vmatpush.msrb.mxu3 %v10993_v58  ;;  %6217 = vmatmul.f32.vlgmr.msra.gmra.mxu0 %v10819_v49  ;;  %v11110_v49 = vand.u32 4294901760, %v6398_v63  ;;  %v11149_v47 = vsub.f32 %v6396_v7, %v11124_v12  ;;  %v6727_v56 = vsub.f32 %v6358_v16, %v11138_v2 }
 0x4e6   :  { %6483 = vmatpush.msrb.mxu1 %v6482_v9  ;;  %6532 = vmatpush.msrb.mxu2 %v11051_v15 }
 0x4e7   :  { %6561 = vmatpush.msrb.mxu3 %v11006_v19  ;;  %6089 = vmatmul.f32.gmra.mxu1 %v10864_v23  ;;  %v6722_v25 = vand.u32 4294901760, %v11149_v47 }
 0x4e8   :  { %6183 = vmatmul.f32.gmra.mxu3 %v10864_v23  ;;  %6592 = vmatpush.msra.mxu0 %v6462_v59  ;;  %v11136_v59 = vsub.f32 %v6398_v63, %v11110_v49 }
 0x4e9   :  { %6563 = vmatpush.msrb.mxu3 %v11010_v41  ;;  %6489 = vmatpush.msrb.mxu1 %v6488_v31  ;;  %v6723_v15 = vsub.f32 %v11149_v47, %v6722_v25 }
 0x4ea   :  { %6296 = vmatmul.f32.vlgmr.msra.gmra.mxu2 %v10794_v51  ;;  %6596 = vmatpush.msra.mxu0 %v6468_v18  ;;  %v6404_v18 = vld [vmem:[#allocation8 + $0x28] sm:$0xff] }
 0x4eb   :  { %6565 = vmatpush.msrb.mxu3 %v11028_v4  ;;  %6495 = vmatpush.msrb.mxu1 %v6494_v10  ;;  %v6724_v37 = vand.u32 4294901760, %v6723_v15 }
 0x4ec   :  { %6600 = vmatpush.msra.mxu0 %v6474_v35  ;;  %6664 = vmatpush.msra.mxu2 %v11069_v45  ;;  %v6409_v35 = vsel %vm263_vm0, %v6404_v18, 0 }
 0x4ed   :  { %6222 = vmatmul.f32.gmra.mxu0 %v10892_v5  ;;  %v6706_v5 = vand.u32 4294901760, %v6705_v42  ;;  %v11175_v3 = vand.u32 4294901760, %v6409_v35 }
 0x4ee   :  { %6604 = vmatpush.msra.mxu0 %v6480_v13  ;;  %6666 = vmatpush.msra.mxu2 %v11088_v14  ;;  %v6716_v13 = vand.u32 4294901760, %v11136_v59 }
 0x4ef   :  { %6251 = vmatmul.f32.vlgmr.msra.gmra.mxu1 %v10853_v26  ;;  %v6733_v26 = vsub.f32 %v6356_v33, %v11151_v48  ;;  %v11185_v1 = vsub.f32 %v6409_v35, %v11175_v3 }
 0x4f0   :  { %6327 = vmatmul.f32.vlgmr.msra.gmra.mxu3 %v10794_v51  ;;  %6608 = vmatpush.msra.mxu0 %v6486_v36  ;;  %v11172_v51 = vand.u32 4294901760, %v6436_v55  ;;  %v6717_v24 = vsub.f32 %v11136_v59, %v6716_v13  ;;  %v6728_v36 = vand.u32 4294901760, %v6727_v56 }
 0x4f1   :  { %6633 = vmatpush.msra.mxu1 %v10968_v29  ;;  %6668 = vmatpush.msra.mxu2 %v11110_v49  ;;  %v6712_v29 = vand.u32 4294901760, %v6711_v46  ;;  %v6734_v62 = vand.u32 4294901760, %v6733_v26  ;;  %v11195_v61 = vand.u32 4294901760, %v11185_v1 }
 0x4f2   :  { %6300 = vmatmul.f32.gmra.mxu2 %v10864_v23  ;;  %6612 = vmatpush.msra.mxu0 %v6492_v28 }
 0x4f3   :  { %6635 = vmatpush.msra.mxu1 %v10978_v0  ;;  %6670 = vmatpush.msra.mxu2 %v11124_v12  ;;  %v6718_v0 = vand.u32 4294901760, %v6717_v24  ;;  %v6735_v20 = vsub.f32 %v6733_v26, %v6734_v62 }
 0x4f4   :  { %6707 = vmatpush.msra.mxu3 %v6706_v5 }
 0x4f5   :  { %6637 = vmatpush.msra.mxu1 %v10993_v58  ;;  %6672 = vmatpush.msra.mxu2 %v11138_v2  ;;  %v6729_v58 = vsub.f32 %v6727_v56, %v6728_v36 }
 0x4f6   :  { %6713 = vmatpush.msra.mxu3 %v6712_v29  ;;  %6438 = vmatmul.f32.vlgmr.msrb.gmra.mxu0 %v11172_v51 }
 0x4f7   :  { %6639 = vmatpush.msra.mxu1 %v11006_v19  ;;  %6674 = vmatpush.msra.mxu2 %v11151_v48  ;;  %v6444_v19 = vsub.f32 %v11185_v1, %v11195_v61 }
 0x4f8   :  { %6257 = vmatmul.f32.gmra.mxu1 %v10919_v30  ;;  %6331 = vmatmul.f32.gmra.mxu3 %v10864_v23  ;;  %v6730_v23 = vand.u32 4294901760, %v6729_v58  ;;  %v6736_v30 = vand.u32 4294901760, %v6735_v20 }
 0x4f9   :  { %6641 = vmatpush.msra.mxu1 %v11010_v41  ;;  %6759 = vmatpush.msrb.mxu0 %v11091_v21  ;;  %v6445_v41 = vand.u32 4294901760, %v6444_v19 }
 0x4fa   :  { %6719 = vmatpush.msra.mxu3 %v6718_v0  ;;  %6535 = vmatmul.f32.vlgmr.msrb.gmra.mxu2 %v11104_v43 }
 0x4fb   :  { %6643 = vmatpush.msra.mxu1 %v11028_v4  ;;  %6762 = vmatpush.msrb.mxu0 %v11115_v17 }
 0x4fc   :  { %6834 = vmatpush.msrb.mxu2 %v6704_v53  ;;  %6725 = vmatpush.msra.mxu3 %v6724_v37 }
 0x4fd   :  { %6765 = vmatpush.msrb.mxu0 %v11136_v59 }
 0x4fe   :  { %6838 = vmatpush.msrb.mxu2 %v6710_v32  ;;  %6731 = vmatpush.msra.mxu3 %v6730_v23 }
 0x4ff   :  { %6768 = vmatpush.msrb.mxu0 %v11149_v47 }
 0x500   :  { %6842 = vmatpush.msrb.mxu2 %v6716_v13  ;;  %6737 = vmatpush.msra.mxu3 %v6736_v30 }
 0x501   :  { %6497 = vmatmul.f32.vlgmr.msrb.gmra.mxu1 %v11083_v22  ;;  %6569 = vmatmul.f32.vlgmr.msrb.gmra.mxu3 %v11130_v57 }
 0x502   :  { %6771 = vmatpush.msrb.mxu0 %v6727_v56  ;;  %6797 = vmatpush.msrb.mxu1 %v11069_v45 }
 0x503   :  { %6846 = vmatpush.msrb.mxu2 %v6722_v25  ;;  %6875 = vmatpush.msrb.mxu3 %v11069_v45 }
 0x504   :  { %6774 = vmatpush.msrb.mxu0 %v6733_v26  ;;  %6799 = vmatpush.msrb.mxu1 %v11088_v14 }
 0x505   :  { %6850 = vmatpush.msrb.mxu2 %v6728_v36  ;;  %6877 = vmatpush.msrb.mxu3 %v11088_v14 }
 0x506   :  { %6446 = vmatmul.f32.gmra.mxu0 %v6445_v41  ;;  %6540 = vmatmul.f32.gmra.mxu2 %v11185_v1 }
 0x507   :  { %6801 = vmatpush.msrb.mxu1 %v11110_v49  ;;  %6854 = vmatpush.msrb.mxu2 %v6734_v62  ;;  %v5389_v4 = vpop.f32.mrf.mxu0 }
 0x508   :  { %6879 = vmatpush.msrb.mxu3 %v11110_v49 }
 0x509   :  { %6803 = vmatpush.msrb.mxu1 %v11124_v12  ;;  %6575 = vmatmul.f32.gmra.mxu3 %v11195_v61 }
 0x50a   :  { %6881 = vmatpush.msrb.mxu3 %v11124_v12  ;;  %6501 = vmatmul.f32.gmra.mxu1 %v11175_v3 }
 0x50b   :  { %6805 = vmatpush.msrb.mxu1 %v11138_v2 }
 0x50c   :  { %6883 = vmatpush.msrb.mxu3 %v11138_v2 }
 0x50d   :  { %6807 = vmatpush.msrb.mxu1 %v11151_v48 }
 0x50e   :  { %6885 = vmatpush.msrb.mxu3 %v11151_v48  ;;  %6614 = vmatmul.f32.vlgmr.msra.gmra.mxu0 %v11083_v22  ;;  %v5448_v50 = vpop.f32.mrf.mxu1 }
 0x50f   :  { %6680 = vmatmul.f32.vlgmr.msra.gmra.mxu2 %v11172_v51  ;;  %v5397_v40 = vpop.f32.mrf.mxu0  ;;  %v5449_v45 = vadd.f32 %v5448_v50, %v5389_v4  ;;  %v5486_v38 = vpop.f32.mrf.mxu2 }
 0x510   :  { %v5520_v52 = vpop.f32.mrf.mxu3 }
 0x511   :  { %6739 = vmatmul.f32.vlgmr.msra.gmra.mxu3 %v11083_v22  ;;  %v5487_v54 = vadd.f32 %v5486_v38, %v5449_v45 }
 0x512   :  { %6645 = vmatmul.f32.vlgmr.msra.gmra.mxu1 %v11083_v22 }
 0x513   :  { %v5521_v44 = vadd.f32 %v5520_v52, %v5487_v54 }
 0x516   :  { %6618 = vmatmul.f32.gmra.mxu0 %v11175_v3 }
 0x517   :  { %6688 = vmatmul.f32.gmra.mxu2 %v6445_v41  ;;  %v5452_v28 = vpop.f32.mrf.mxu1  ;;  %v5491_v27 = vpop.f32.mrf.mxu2 }
 0x518   :  { %v5453_v39 = vadd.f32 %v5452_v28, %v5397_v40  ;;  %v5526_v14 = vpop.f32.mrf.mxu3 }
 0x519   :  { %6743 = vmatmul.f32.gmra.mxu3 %v11175_v3  ;;  %v5565_v8 = vpop.f32.mrf.mxu0 }
 0x51a   :  { %6649 = vmatmul.f32.gmra.mxu1 %v11175_v3  ;;  %v5566_v6 = vadd.f32 %v5565_v8, %v5521_v44  ;;  %v5492_v21 = vadd.f32 %v5491_v27, %v5453_v39 }
 0x51c   :  { %v5527_v9 = vadd.f32 %v5526_v14, %v5492_v21 }
 0x51e   :  { %6777 = vmatmul.f32.vlgmr.msrb.gmra.mxu0 %v11104_v43 }
 0x51f   :  { %6856 = vmatmul.f32.vlgmr.msrb.gmra.mxu2 %v11083_v22 }
 0x521   :  { %6887 = vmatmul.f32.vlgmr.msrb.gmra.mxu3 %v11083_v22  ;;  %v5631_v11 = vpop.f32.mrf.mxu2 }
 0x522   :  { %6811 = vmatmul.f32.vlgmr.msrb.gmra.mxu1 %v11130_v57  ;;  %v5569_v63 = vpop.f32.mrf.mxu0  ;;  %v5596_v34 = vpop.f32.mrf.mxu1 }
 0x523   :  { %v5570_v31 = vadd.f32 %v5569_v63, %v5527_v9  ;;  %v5597_v7 = vadd.f32 %v5596_v34, %v5566_v6 }
 0x526   :  { %6782 = vmatmul.f32.gmra.mxu0 %v11185_v1 }
 0x527   :  { %6860 = vmatmul.f32.gmra.mxu2 %v11175_v3 }
 0x529   :  { %6891 = vmatmul.f32.gmra.mxu3 %v11175_v3  ;;  %v5690_v49 = vpop.f32.mrf.mxu3 }
 0x52a   :  { %6817 = vmatmul.f32.gmra.mxu1 %v11195_v61  ;;  %v5691_v43 = vadd.f32 %v5690_v49, %v5631_v11 }
 0x52b   :  { %v5639_v17 = vpop.f32.mrf.mxu2 }
 0x52c   :  { %v5600_v60 = vpop.f32.mrf.mxu1 }
 0x52d   :  { %v5601_v22 = vadd.f32 %v5600_v60, %v5570_v31  ;;  %v5728_v53 = vpop.f32.mrf.mxu0 }
 0x52e   :  { %v5729_v16 = vadd.f32 %v5728_v53, %v5691_v43 }
 0x533   :  { %v5694_v10 = vpop.f32.mrf.mxu3 }
 0x534   :  { %v5695_v12 = vadd.f32 %v5694_v10, %v5639_v17 }
 0x536   :  { %v5807_v57 = vpop.f32.mrf.mxu2 }
 0x537   :  { %v5733_v33 = vpop.f32.mrf.mxu0 }
 0x538   :  { %v5762_v59 = vpop.f32.mrf.mxu1  ;;  %v5734_v2 = vadd.f32 %v5733_v33, %v5695_v12 }
 0x539   :  { %v5763_v42 = vadd.f32 %v5762_v59, %v5729_v16 }
 0x53b   :  { %v5808_v32 = vadd.f32 %v5807_v57, %v5763_v42 }
 0x53e   :  { %v5838_v18 = vpop.f32.mrf.mxu3 }
 0x53f   :  { %v11237_v47 = vadd.f32 %v5838_v18, %v5808_v32  ;;  %v5879_v48 = vpop.f32.mrf.mxu0 }
 0x540   :  { %v5880_v44 = vadd.f32 %v5879_v48, %v5597_v7 }
 0x541   :  { %v5768_v55 = vpop.f32.mrf.mxu1  ;;  %v5811_v56 = vpop.f32.mrf.mxu2 }
 0x542   :  { %v5769_v35 = vadd.f32 %v5768_v55, %v5734_v2 }
 0x544   :  { %v5812_v5 = vadd.f32 %v5811_v56, %v5769_v35 }
 0x547   :  { %v5842_v46 = vpop.f32.mrf.mxu3 }
 0x548   :  { %v11239_v13 = vadd.f32 %v5842_v46, %v5812_v5  ;;  %v5887_v26 = vpop.f32.mrf.mxu0 }
 0x549   :  { %v5888_v63 = vadd.f32 %v5887_v26, %v5601_v22 }
 0x54a   :  { %v5938_v51 = vpop.f32.mrf.mxu1  ;;  %v5976_v25 = vpop.f32.mrf.mxu2 }
 0x54b   :  { %v5939_v39 = vadd.f32 %v5938_v51, %v5880_v44 }
 0x54d   :  { %v5977_v14 = vadd.f32 %v5976_v25, %v5939_v39 }
 0x550   :  { %v6055_v29 = vpop.f32.mrf.mxu0 }
 0x551   :  { %v6010_v3 = vpop.f32.mrf.mxu3 }
 0x552   :  { %v5942_v24 = vpop.f32.mrf.mxu1  ;;  %v6011_v31 = vadd.f32 %v6010_v3, %v5977_v14 }
 0x553   :  { %v5943_v49 = vadd.f32 %v5942_v24, %v5888_v63 }
 0x554   :  { %v5981_v36 = vpop.f32.mrf.mxu2  ;;  %v6056_v17 = vadd.f32 %v6055_v29, %v6011_v31 }
 0x555   :  { %v5982_v10 = vadd.f32 %v5981_v36, %v5943_v49 }
 0x559   :  { %v6016_v15 = vpop.f32.mrf.mxu3 }
 0x55a   :  { %v6059_v62 = vpop.f32.mrf.mxu0  ;;  %v6017_v33 = vadd.f32 %v6016_v15, %v5982_v10 }
 0x55c   :  { %v6086_v1 = vpop.f32.mrf.mxu1  ;;  %v6121_v0 = vpop.f32.mrf.mxu2  ;;  %v6060_v18 = vadd.f32 %v6059_v62, %v6017_v33 }
 0x55d   :  { %v6087_v7 = vadd.f32 %v6086_v1, %v6056_v17  ;;  %v6122_v55 = vadd.f32 %v6121_v0, %v11237_v47 }
 0x561   :  { %v6180_v58 = vpop.f32.mrf.mxu3 }
 0x562   :  { %v6218_v61 = vpop.f32.mrf.mxu0  ;;  %v6181_v46 = vadd.f32 %v6180_v58, %v6122_v55 }
 0x564   :  { %v6090_v37 = vpop.f32.mrf.mxu1  ;;  %v6219_v24 = vadd.f32 %v6218_v61, %v6181_v46 }
 0x565   :  { %v6129_v20 = vpop.f32.mrf.mxu2  ;;  %v6091_v56 = vadd.f32 %v6090_v37, %v6060_v18 }
 0x566   :  { %v6130_v15 = vadd.f32 %v6129_v20, %v11239_v13 }
 0x56a   :  { %v11241_v41 = vpop.f32.mrf.mxu0 }
 0x56b   :  { %v6184_v23 = vpop.f32.mrf.mxu3 }
 0x56c   :  { %v6252_v30 = vpop.f32.mrf.mxu1 }
 0x56d   :  { %v6297_v19 = vpop.f32.mrf.mxu2  ;;  %v6253_v1 = vadd.f32 %v6252_v30, %v6219_v24 }
 0x56f   :  { %v6298_v0 = vadd.f32 %v6297_v19, %v6253_v1 }
 0x573   :  { %v11243_v4 = vpop.f32.mrf.mxu3  ;;  %v6439_v45 = vpop.f32.mrf.mxu0 }
 0x574   :  { %v6329_v39 = vadd.f32 %v11243_v4, %v6298_v0 }
 0x575   :  { %v11245_v40 = vpop.f32.mrf.mxu1  ;;  %v11247_v50 = vpop.f32.mrf.mxu2 }
 0x57b   :  { %v11249_v38 = vpop.f32.mrf.mxu3 }
 0x57d   :  { %v6536_v54 = vpop.f32.mrf.mxu2 }
 0x57e   :  { %v6498_v52 = vpop.f32.mrf.mxu1 }
 0x57f   :  { %v6499_v27 = vadd.f32 %v6498_v52, %v6439_v45  ;;  %v6185_v52 = vadd.f32 %v6184_v23, %v6130_v15 }
 0x581   :  { %v6537_v21 = vadd.f32 %v6536_v54, %v6499_v27 }
 0x583   :  { %v6447_v28 = vpop.f32.mrf.mxu0 }
 0x584   :  { %v6570_v8 = vpop.f32.mrf.mxu3 }
 0x585   :  { %v6571_v34 = vadd.f32 %v6570_v8, %v6537_v21 }
 0x587   :  { %v6502_v6 = vpop.f32.mrf.mxu1 }
 0x588   :  { %v6503_v43 = vadd.f32 %v6502_v6, %v6447_v28  ;;  %v6224_v28 = vadd.f32 %v11241_v41, %v6185_v52 }
 0x589   :  { %v6541_v9 = vpop.f32.mrf.mxu2 }
 0x58a   :  { %v6542_v12 = vadd.f32 %v6541_v9, %v6503_v43  ;;  %v6259_v61 = vadd.f32 %v11245_v40, %v6224_v28 }
 0x58b   :  { %v6615_v11 = vpop.f32.mrf.mxu0 }
 0x58c   :  { %v6576_v60 = vpop.f32.mrf.mxu3  ;;  %v6616_v53 = vadd.f32 %v6615_v11, %v6571_v34  ;;  %v6302_v23 = vadd.f32 %v11247_v50, %v6259_v61 }
 0x58d   :  { %v6577_v59 = vadd.f32 %v6576_v60, %v6542_v12 }
 0x58e   :  { %v6333_v41 = vadd.f32 %v11249_v38, %v6302_v23 }
 0x58f   :  { %v6646_v16 = vpop.f32.mrf.mxu1 }
 0x590   :  { %v6647_v57 = vadd.f32 %v6646_v16, %v6616_v53 }
 0x592   :  { %v6895_v2 = vadd.f32 %v6647_v57, %v6087_v7  ;;  %v6681_v42 = vpop.f32.mrf.mxu2 }
 0x593   :  { %v6619_v32 = vpop.f32.mrf.mxu0 }
 0x594   :  { %6900 = vst [vmem:[#allocation9 + $0x20] sm:$0xff] %v6895_v2  ;;  %v6740_v22 = vpop.f32.mrf.mxu3  ;;  %v6620_v48 = vadd.f32 %v6619_v32, %v6577_v59 }
 0x595   :  { %v6741_v26 = vadd.f32 %v6740_v22, %v6681_v42 }
 0x597   :  { %v6650_v35 = vpop.f32.mrf.mxu1 }
 0x598   :  { %v6651_v5 = vadd.f32 %v6650_v35, %v6620_v48 }
 0x59a   :  { %v6897_v51 = vadd.f32 %v6651_v5, %v6091_v56  ;;  %v6689_v25 = vpop.f32.mrf.mxu2 }
 0x59b   :  { %v6778_v3 = vpop.f32.mrf.mxu0 }
 0x59c   :  { %6902 = vst [vmem:[#allocation9 + $0x30] sm:$0xff] %v6897_v51  ;;  %v6744_v29 = vpop.f32.mrf.mxu3  ;;  %v6779_v36 = vadd.f32 %v6778_v3, %v6741_v26 }
 0x59d   :  { %v6745_v54 = vadd.f32 %v6744_v29, %v6689_v25 }
 0x59f   :  { %v6812_v45 = vpop.f32.mrf.mxu1 }
 0x5a0   :  { %v6813_v62 = vadd.f32 %v6812_v45, %v6779_v36 }
 0x5a2   :  { %v6857_v47 = vpop.f32.mrf.mxu2 }
 0x5a3   :  { %v6858_v37 = vadd.f32 %v6857_v47, %v6813_v62  ;;  %v6783_v44 = vpop.f32.mrf.mxu0 }
 0x5a4   :  { %v6888_v58 = vpop.f32.mrf.mxu3  ;;  %v6784_v8 = vadd.f32 %v6783_v44, %v6745_v54 }
 0x5a5   :  { %v6889_v27 = vadd.f32 %v6888_v58, %v6858_v37 }
 0x5a7   :  { %v6896_v6 = vadd.f32 %v6889_v27, %v6329_v39  ;;  %v6818_v13 = vpop.f32.mrf.mxu1 }
 0x5a8   :  { %v6819_v20 = vadd.f32 %v6818_v13, %v6784_v8 }
 0x5a9   :  { %6901 = vst [vmem:[#allocation9 + $0x28] sm:$0xff] %v6896_v6 }
 0x5aa   :  { %v6861_v30 = vpop.f32.mrf.mxu2 }
 0x5ab   :  { %v6862_v14 = vadd.f32 %v6861_v30, %v6819_v20 }
 0x5ac   :  { %v6892_v19 = vpop.f32.mrf.mxu3 }
 0x5ad   :  { %v6893_v4 = vadd.f32 %v6892_v19, %v6862_v14 }
 0x5af   :  { %v6898_v21 = vadd.f32 %v6893_v4, %v6333_v41 }
 0x5b1   :  { %6903 = vst [vmem:[#allocation9 + $0x38] sm:$0xff] %v6898_v21 }
 0x5b2   :  { %6916 = dma.vmem_to_hbm [thread:$0]  %s6909_s9, 1024, %s6911_s12, [#allocation5], %s7210_s24, %s7210_s24, %s7211_s25  }
 0x5b3   :  { %7204 = dma.done.wait [#allocation5], 1024  }
 0x5b4   :  { %7205 = vsyncadd [#allocation5], 4294966272 }
 0x5b5   :  { %6921 = vsyncpa [#allocation4], 1 }
 0x5b6   :  { %6922 = vsyncpa [#allocation7], 1 }
 0x5b7   :  { %6923 = vsyncpa [#allocation5], 1 }

</bundles_post_ra>
